<compile_context>
chip_gen: v7x
topology: tpu7x:2x2x1
jax: 0.10.0
libtpu: 0.0.40
codegen_flags: <defaults>
</compile_context>

<pallas_src>
import jax
import jax.numpy as jnp
from jax.experimental import pallas as pl
from jax.experimental.pallas import tpu as pltpu


def _round_up(x, m):
    return (x + m - 1) // m * m


# ---------------------------------------------------------------------------
# Kernel 1: conv (as im2col matmul) + bias + ReLU + fused 2x2/2 max-pool
# ---------------------------------------------------------------------------
def _conv_pool_kernel(cols_ref, w_ref, b_ref, o_ref):
    # cols_ref: [4*Nb*HW, Kp] bf16, rows ordered (sh, sw, n_local, hp, wp)
    # w_ref:    [Kp, Cout]    bf16
    # b_ref:    [1, Cout]     f32
    # o_ref:    [Nb*HW, Cout] bf16, rows ordered (n_local, hp, wp)
    acc = jnp.dot(cols_ref[...], w_ref[...], preferred_element_type=jnp.float32)
    acc = jnp.maximum(acc + b_ref[...], 0.0)        # bias + ReLU (f32 epilogue)
    m = o_ref.shape[0]                              # Nb*HW (multiple of 8)
    pooled = jnp.maximum(
        jnp.maximum(acc[0 * m:1 * m], acc[1 * m:2 * m]),
        jnp.maximum(acc[2 * m:3 * m], acc[3 * m:4 * m]))
    o_ref[...] = pooled.astype(o_ref.dtype)


def conv_relu_pool(x_nhwc, w_mat, bias, *, kh=5, kw=5, nb=8):
    """Conv2d(stride=1, pad=0) + ReLU + max_pool2d(2, 2), channel-last.

    x_nhwc: [N, H, W, Cin] (any float dtype; cast to bf16 before im2col)
    w_mat:  [Kp, Cout] bf16, rows ordered (ki, kj, ci), zero-padded K (& Cout)
    bias:   [1, Cout] f32 (zero in padded Cout columns)
    returns [N, Ho//2, Wo//2, Cout] bf16
    """
    N, H, W, Cin = x_nhwc.shape
    Kp, Cout = w_mat.shape
    Ho, Wo = H - kh + 1, W - kw + 1
    Hp, Wp = Ho // 2, Wo // 2
    HW = Hp * Wp
    K = kh * kw * Cin

    nb = max(1, min(nb, N))
    Npad = _round_up(N, nb)
    nbb = Npad // nb                                  # grid length

    x = x_nhwc.astype(jnp.bfloat16)                   # bf16 BEFORE im2col glue
    if Npad != N:
        x = jnp.pad(x, ((0, Npad - N), (0, 0), (0, 0), (0, 0)))

    # im2col (XLA glue), k ordered (ki, kj, ci) to match w_mat rows.
    patches = jnp.stack(
        [x[:, i:i + Ho, j:j + Wo, :] for i in range(kh) for j in range(kw)],
        axis=3)                                       # [Np, Ho, Wo, kh*kw, Cin]
    patches = patches.reshape(Npad, Ho, Wo, K)
    # Per-block row order (sh, sw, n_local, hp, wp): the 4 pool-window
    # positions become 4 contiguous row chunks of the per-step matmul.
    patches = patches.reshape(nbb, nb, Hp, 2, Wp, 2, K)
    patches = patches.transpose(0, 3, 5, 1, 2, 4, 6)  # [nbb, 2, 2, nb, Hp, Wp, K]
    cols = patches.reshape(nbb * 4 * nb * HW, K)
    if Kp != K:                                       # align K (25->32, 500->512)
        cols = jnp.pad(cols, ((0, 0), (0, Kp - K)))

    rows_out = nb * HW
    out = pl.pallas_call(
        _conv_pool_kernel,
        out_shape=jax.ShapeDtypeStruct((nbb * rows_out, Cout), jnp.bfloat16),
        grid=(nbb,),
        in_specs=[
            pl.BlockSpec((4 * rows_out, Kp), lambda i: (i, 0)),
            pl.BlockSpec((Kp, Cout), lambda i: (0, 0)),
            pl.BlockSpec((1, Cout), lambda i: (0, 0)),
        ],
        out_specs=pl.BlockSpec((rows_out, Cout), lambda i: (i, 0)),
        compiler_params=pltpu.CompilerParams(dimension_semantics=("parallel",)),
    )(cols, w_mat, bias)
    out = out[:N * HW]                                # drop batch-padding rows
    return out.reshape(N, Hp, Wp, Cout)


# ---------------------------------------------------------------------------
# Kernel 2: fc1 + ReLU + fc2 fused (hidden activation never leaves VMEM)
# ---------------------------------------------------------------------------
def _fc_fused_kernel(x_ref, w1_ref, b1_ref, w2_ref, b2_ref, o_ref):
    # x_ref: [Mb, 2048] bf16; w1: [2048, 512] bf16; b1: [1, 512] f32
    # w2:    [512, 128] bf16; b2: [1, 128] f32;     o:  [Mb, 128] f32 (lane dense)
    h = jnp.dot(x_ref[...], w1_ref[...], preferred_element_type=jnp.float32)
    h = jnp.maximum(h + b1_ref[...], 0.0)
    out = jnp.dot(h.astype(jnp.bfloat16), w2_ref[...],
                  preferred_element_type=jnp.float32)
    o_ref[...] = (out + b2_ref[...]).astype(o_ref.dtype)


def fc1_relu_fc2(x, w1, b1, w2, b2, *, m_blk=512):
    """x: [M, 2048] bf16 -> logits [M, 10] f32, one pallas_call tiled over M."""
    M, K1 = x.shape
    Hpad = w1.shape[1]                     # 512 (padded hidden)
    NO = w2.shape[1]                       # 128 (lane-dense padded output)
    m_blk = min(m_blk, _round_up(M, 8))
    Mp = _round_up(M, m_blk)
    if Mp != M:
        x = jnp.pad(x, ((0, Mp - M), (0, 0)))
    if x.dtype != jnp.bfloat16:
        x = x.astype(jnp.bfloat16)

    out = pl.pallas_call(
        _fc_fused_kernel,
        out_shape=jax.ShapeDtypeStruct((Mp, NO), jnp.float32),
        grid=(Mp // m_blk,),
        in_specs=[
            pl.BlockSpec((m_blk, K1), lambda i: (i, 0)),
            pl.BlockSpec((K1, Hpad), lambda i: (0, 0)),
            pl.BlockSpec((1, Hpad), lambda i: (0, 0)),
            pl.BlockSpec((Hpad, NO), lambda i: (0, 0)),
            pl.BlockSpec((1, NO), lambda i: (0, 0)),
        ],
        out_specs=pl.BlockSpec((m_blk, NO), lambda i: (i, 0)),
        compiler_params=pltpu.CompilerParams(dimension_semantics=("parallel",)),
    )(x, w1, b1, w2, b2)
    return out[:M, :10]


# ---------------------------------------------------------------------------
# Parameters: PyTorch layout -> one-time kernel-friendly layout
# ---------------------------------------------------------------------------
def init_params(key):
    """PyTorch-layout LeNet parameters (same layout as the nn.Module state_dict)."""
    ks = jax.random.split(key, 8)
    s = 0.05
    return {
        "conv1_w": s * jax.random.normal(ks[0], (20, 1, 5, 5), jnp.float32),
        "conv1_b": s * jax.random.normal(ks[1], (20,), jnp.float32),
        "conv2_w": s * jax.random.normal(ks[2], (50, 20, 5, 5), jnp.float32),
        "conv2_b": s * jax.random.normal(ks[3], (50,), jnp.float32),
        "fc1_w":   s * jax.random.normal(ks[4], (500, 800), jnp.float32),
        "fc1_b":   s * jax.random.normal(ks[5], (500,), jnp.float32),
        "fc2_w":   s * jax.random.normal(ks[6], (10, 500), jnp.float32),
        "fc2_b":   s * jax.random.normal(ks[7], (10,), jnp.float32),
    }


def prepare_params(p):
    """One-time (outside jit) layout prep: (ki,kj,ci)-ordered conv weight
    matrices (K padded; conv2 Cout padded 50->128 for lane-dense stores),
    column-permuted / pre-transposed / zero-padded bf16 FC weights."""
    def conv_w(w, kpad, cpad):                 # [Cout, Cin, kh, kw] -> [Kp, Cpad]
        cout, cin, kh, kw = w.shape
        k = cin * kh * kw
        wm = w.transpose(2, 3, 1, 0).reshape(k, cout)       # rows = (ki, kj, ci)
        wm = jnp.pad(wm, ((0, kpad - k), (0, cpad - cout)))
        return wm.astype(jnp.bfloat16)

    conv1_w = conv_w(p["conv1_w"], 32, 20)                  # [32, 20]
    conv1_b = p["conv1_b"].reshape(1, 20).astype(jnp.float32)
    conv2_w = conv_w(p["conv2_w"], 512, 128)                # [512, 128] lane-dense
    conv2_b = jnp.pad(p["conv2_b"], (0, 128 - 50)).reshape(1, 128).astype(jnp.float32)

    # fc1: PyTorch flattens NCHW (c, h, w); the kernel-side flatten is
    # (h, w, c) with c padded to 128 -> 4*4*128 = 2048 columns.
    w1 = p["fc1_w"].reshape(500, 50, 4, 4).transpose(0, 2, 3, 1)   # [500,4,4,50]
    w1 = jnp.pad(w1, ((0, 0), (0, 0), (0, 0), (0, 128 - 50)))      # [500,4,4,128]
    w1 = w1.reshape(500, 2048).T                                   # [2048, 500]
    w1 = jnp.pad(w1, ((0, 0), (0, 512 - 500))).astype(jnp.bfloat16)  # [2048, 512]
    b1 = jnp.pad(p["fc1_b"], (0, 512 - 500)).reshape(1, 512).astype(jnp.float32)
    w2 = jnp.pad(p["fc2_w"].T, ((0, 512 - 500), (0, 128 - 10))).astype(jnp.bfloat16)
    b2 = jnp.pad(p["fc2_b"], (0, 128 - 10)).reshape(1, 128).astype(jnp.float32)

    return {
        "conv1_w": conv1_w, "conv1_b": conv1_b,
        "conv2_w": conv2_w, "conv2_b": conv2_b,
        "fc1_w": w1, "fc1_b": b1, "fc2_w": w2, "fc2_b": b2,
    }


# ---------------------------------------------------------------------------
# LeNet forward (accepts PyTorch-style NCHW input)
# ---------------------------------------------------------------------------
def lenet_forward(x_nchw, prep):
    x = x_nchw.transpose(0, 2, 3, 1)                                # NCHW->NHWC once
    x = conv_relu_pool(x, prep["conv1_w"], prep["conv1_b"], nb=4)   # [N,12,12, 20] bf16
    x = conv_relu_pool(x, prep["conv2_w"], prep["conv2_b"], nb=8)   # [N, 4, 4,128] bf16
    x = x.reshape(x.shape[0], -1)                                   # [N, 2048] (h,w,c)
    return fc1_relu_fc2(x, prep["fc1_w"], prep["fc1_b"],
                        prep["fc2_w"], prep["fc2_b"])               # [N, 10] f32


# ---------------------------------------------------------------------------
# Pure-JAX f32 reference (mirrors the PyTorch module) for validation
# ---------------------------------------------------------------------------
def lenet_reference(x_nchw, p):
    def conv2d(x, w, b):
        y = jax.lax.conv_general_dilated(
            x, w, (1, 1), "VALID", dimension_numbers=("NCHW", "OIHW", "NCHW"))
        return y + b[None, :, None, None]

    x = jax.nn.relu(conv2d(x_nchw, p["conv1_w"], p["conv1_b"]))
    x = jax.lax.reduce_window(x, -jnp.inf, jax.lax.max, (1, 1, 2, 2), (1, 1, 2, 2), "VALID")
    x = jax.nn.relu(conv2d(x, p["conv2_w"], p["conv2_b"]))
    x = jax.lax.reduce_window(x, -jnp.inf, jax.lax.max, (1, 1, 2, 2), (1, 1, 2, 2), "VALID")
    x = x.reshape(x.shape[0], -1)                                   # NCHW flatten (c,h,w)
    x = jax.nn.relu(x @ p["fc1_w"].T + p["fc1_b"])
    return x @ p["fc2_w"].T + p["fc2_b"]


if __name__ == "__main__":
    key = jax.random.PRNGKey(0)
    pkey, xkey = jax.random.split(key)
    params = init_params(pkey)
    prep = prepare_params(params)                 # one-time weight layout prep
    # MNIST-shaped input required by the 4*4*50 flatten: [N, 1, 28, 28]
    x = jax.random.normal(xkey, (2, 1, 28, 28), jnp.float32)

    logits = jax.jit(lenet_forward)(x, prep)
    logits = jax.block_until_ready(logits)
    assert logits.shape == (2, 10) and logits.dtype == jnp.float32

    # Tolerance check vs. a pure-JAX f32 reference (bf16 MXU inputs -> ~1e-3 abs err).
    ref = lenet_reference(x, params)
    max_err = float(jnp.max(jnp.abs(logits - ref)))
    assert max_err < 5e-2, f"max abs error vs f32 reference: {max_err}"

    print("KERNEL_OK")
</pallas_src>

<mosaic_0001>
module attributes {stable_mosaic.version = 11 : i64} {
  func.func @_conv_pool_kernel(%arg0: i32, %arg1: memref<1152x32xbf16, #tpu.memory_space<vmem>>, %arg2: memref<32x20xbf16, #tpu.memory_space<vmem>>, %arg3: memref<1x20xf32, #tpu.memory_space<vmem>>, %arg4: memref<288x20xbf16, #tpu.memory_space<vmem>>) attributes {dimension_semantics = [#tpu.dimension_semantics<parallel>], iteration_bounds = array<i64: 1>, scalar_prefetch = 0 : i64, scratch_operands = 0 : i64, tpu.core_type = #tpu.core_type<tc>, window_params = [{transform_indices = @transform_0, window_bounds = array<i64: 1152, 32>}, {pipeline_mode = #tpu.pipeline_mode<synchronous>, transform_indices = @transform_1, window_bounds = array<i64: 32, 20>}, {pipeline_mode = #tpu.pipeline_mode<synchronous>, transform_indices = @transform_2, window_bounds = array<i64: 1, 20>}, {transform_indices = @transform_3, window_bounds = array<i64: 288, 20>}]} {
    %c0 = arith.constant 0 : index
    %c0_0 = arith.constant 0 : index
    %0 = vector.load %arg1[%c0, %c0_0] : memref<1152x32xbf16, #tpu.memory_space<vmem>>, vector<1152x32xbf16>
    %c0_1 = arith.constant 0 : index
    %c0_2 = arith.constant 0 : index
    %1 = vector.load %arg2[%c0_1, %c0_2] : memref<32x20xbf16, #tpu.memory_space<vmem>>, vector<32x20xbf16>
    %cst = arith.constant dense<0.000000e+00> : vector<1152x20xf32>
    %2 = tpu.matmul %0, %1, %cst {dimension_numbers = #tpu.dot_dimension_numbers<[1], [0], [0], [1], [0, 0, 1, 1], [], []>} : vector<1152x32xbf16>, vector<32x20xbf16>, vector<1152x20xf32> -> vector<1152x20xf32>
    %c0_3 = arith.constant 0 : index
    %c0_4 = arith.constant 0 : index
    %3 = vector.load %arg3[%c0_3, %c0_4] : memref<1x20xf32, #tpu.memory_space<vmem>>, vector<1x20xf32>
    %4 = vector.broadcast %3 : vector<1x20xf32> to vector<1152x20xf32>
    %5 = arith.addf %2, %4 : vector<1152x20xf32>
    %cst_5 = arith.constant 0.000000e+00 : f32
    %6 = vector.broadcast %cst_5 : f32 to vector<1152x20xf32>
    %7 = arith.maximumf %5, %6 : vector<1152x20xf32>
    %8 = vector.extract_strided_slice %7 {offsets = [0, 0], sizes = [288, 20], strides = [1, 1]} : vector<1152x20xf32> to vector<288x20xf32>
    %9 = vector.extract_strided_slice %7 {offsets = [288, 0], sizes = [288, 20], strides = [1, 1]} : vector<1152x20xf32> to vector<288x20xf32>
    %10 = arith.maximumf %8, %9 : vector<288x20xf32>
    %11 = vector.extract_strided_slice %7 {offsets = [576, 0], sizes = [288, 20], strides = [1, 1]} : vector<1152x20xf32> to vector<288x20xf32>
    %12 = vector.extract_strided_slice %7 {offsets = [864, 0], sizes = [288, 20], strides = [1, 1]} : vector<1152x20xf32> to vector<288x20xf32>
    %13 = arith.maximumf %11, %12 : vector<288x20xf32>
    %14 = arith.maximumf %10, %13 : vector<288x20xf32>
    %15 = arith.truncf %14 : vector<288x20xf32> to vector<288x20xbf16>
    %c0_6 = arith.constant 0 : index
    %c0_7 = arith.constant 0 : index
    %16 = vector.load %arg4[%c0_6, %c0_7] : memref<288x20xbf16, #tpu.memory_space<vmem>>, vector<288x20xbf16>
    tpu.vector_store %arg4[%c0_6, %c0_7], %15 {strides = array<i32>} : memref<288x20xbf16, #tpu.memory_space<vmem>>, vector<288x20xbf16>,
    return
  }
  func.func @transform_0(%arg0: i32) -> (i32, i32) {
    %c0_i32 = arith.constant 0 : i32
    %c0_i32_0 = arith.constant 0 : i32
    return %arg0, %c0_i32 : i32, i32
  }
  func.func @transform_1(%arg0: i32) -> (i32, i32) {
    %c0_i32 = arith.constant 0 : i32
    %c0_i32_0 = arith.constant 0 : i32
    %c0_i32_1 = arith.constant 0 : i32
    return %c0_i32, %c0_i32_0 : i32, i32
  }
  func.func @transform_2(%arg0: i32) -> (i32, i32) {
    %c0_i32 = arith.constant 0 : i32
    %c0_i32_0 = arith.constant 0 : i32
    %c0_i32_1 = arith.constant 0 : i32
    return %c0_i32, %c0_i32_0 : i32, i32
  }
  func.func @transform_3(%arg0: i32) -> (i32, i32) {
    %c0_i32 = arith.constant 0 : i32
    %c0_i32_0 = arith.constant 0 : i32
    return %arg0, %c0_i32 : i32, i32
  }
}

module attributes {stable_mosaic.version = 11 : i64} {
  func.func @_conv_pool_kernel(%arg0: i32, %arg1: memref<128x512xbf16, #tpu.memory_space<vmem>>, %arg2: memref<512x128xbf16, #tpu.memory_space<vmem>>, %arg3: memref<1x128xf32, #tpu.memory_space<vmem>>, %arg4: memref<32x128xbf16, #tpu.memory_space<vmem>>) attributes {dimension_semantics = [#tpu.dimension_semantics<parallel>], iteration_bounds = array<i64: 1>, scalar_prefetch = 0 : i64, scratch_operands = 0 : i64, tpu.core_type = #tpu.core_type<tc>, window_params = [{transform_indices = @transform_0, window_bounds = array<i64: 128, 512>}, {pipeline_mode = #tpu.pipeline_mode<synchronous>, transform_indices = @transform_1, window_bounds = array<i64: 512, 128>}, {pipeline_mode = #tpu.pipeline_mode<synchronous>, transform_indices = @transform_2, window_bounds = array<i64: 1, 128>}, {transform_indices = @transform_3, window_bounds = array<i64: 32, 128>}]} {
    %c0 = arith.constant 0 : index
    %c0_0 = arith.constant 0 : index
    %0 = vector.load %arg1[%c0, %c0_0] : memref<128x512xbf16, #tpu.memory_space<vmem>>, vector<128x512xbf16>
    %c0_1 = arith.constant 0 : index
    %c0_2 = arith.constant 0 : index
    %1 = vector.load %arg2[%c0_1, %c0_2] : memref<512x128xbf16, #tpu.memory_space<vmem>>, vector<512x128xbf16>
    %cst = arith.constant dense<0.000000e+00> : vector<128x128xf32>
    %2 = tpu.matmul %0, %1, %cst {dimension_numbers = #tpu.dot_dimension_numbers<[1], [0], [0], [1], [0, 0, 1, 1], [], []>} : vector<128x512xbf16>, vector<512x128xbf16>, vector<128x128xf32> -> vector<128x128xf32>
    %c0_3 = arith.constant 0 : index
    %c0_4 = arith.constant 0 : index
    %3 = vector.load %arg3[%c0_3, %c0_4] : memref<1x128xf32, #tpu.memory_space<vmem>>, vector<1x128xf32>
    %4 = vector.broadcast %3 : vector<1x128xf32> to vector<128x128xf32>
    %5 = arith.addf %2, %4 : vector<128x128xf32>
    %cst_5 = arith.constant 0.000000e+00 : f32
    %6 = vector.broadcast %cst_5 : f32 to vector<128x128xf32>
    %7 = arith.maximumf %5, %6 : vector<128x128xf32>
    %8 = vector.extract_strided_slice %7 {offsets = [0, 0], sizes = [32, 128], strides = [1, 1]} : vector<128x128xf32> to vector<32x128xf32>
    %9 = vector.extract_strided_slice %7 {offsets = [32, 0], sizes = [32, 128], strides = [1, 1]} : vector<128x128xf32> to vector<32x128xf32>
    %10 = arith.maximumf %8, %9 : vector<32x128xf32>
    %11 = vector.extract_strided_slice %7 {offsets = [64, 0], sizes = [32, 128], strides = [1, 1]} : vector<128x128xf32> to vector<32x128xf32>
    %12 = vector.extract_strided_slice %7 {offsets = [96, 0], sizes = [32, 128], strides = [1, 1]} : vector<128x128xf32> to vector<32x128xf32>
    %13 = arith.maximumf %11, %12 : vector<32x128xf32>
    %14 = arith.maximumf %10, %13 : vector<32x128xf32>
    %15 = arith.truncf %14 : vector<32x128xf32> to vector<32x128xbf16>
    %c0_6 = arith.constant 0 : index
    %c0_7 = arith.constant 0 : index
    %16 = vector.load %arg4[%c0_6, %c0_7] : memref<32x128xbf16, #tpu.memory_space<vmem>>, vector<32x128xbf16>
    tpu.vector_store %arg4[%c0_6, %c0_7], %15 {strides = array<i32>} : memref<32x128xbf16, #tpu.memory_space<vmem>>, vector<32x128xbf16>,
    return
  }
  func.func @transform_0(%arg0: i32) -> (i32, i32) {
    %c0_i32 = arith.constant 0 : i32
    %c0_i32_0 = arith.constant 0 : i32
    return %arg0, %c0_i32 : i32, i32
  }
  func.func @transform_1(%arg0: i32) -> (i32, i32) {
    %c0_i32 = arith.constant 0 : i32
    %c0_i32_0 = arith.constant 0 : i32
    %c0_i32_1 = arith.constant 0 : i32
    return %c0_i32, %c0_i32_0 : i32, i32
  }
  func.func @transform_2(%arg0: i32) -> (i32, i32) {
    %c0_i32 = arith.constant 0 : i32
    %c0_i32_0 = arith.constant 0 : i32
    %c0_i32_1 = arith.constant 0 : i32
    return %c0_i32, %c0_i32_0 : i32, i32
  }
  func.func @transform_3(%arg0: i32) -> (i32, i32) {
    %c0_i32 = arith.constant 0 : i32
    %c0_i32_0 = arith.constant 0 : i32
    return %arg0, %c0_i32 : i32, i32
  }
}

module attributes {stable_mosaic.version = 11 : i64} {
  func.func @_fc_fused_kernel(%arg0: i32, %arg1: memref<8x2048xbf16, #tpu.memory_space<vmem>>, %arg2: memref<2048x512xbf16, #tpu.memory_space<vmem>>, %arg3: memref<1x512xf32, #tpu.memory_space<vmem>>, %arg4: memref<512x128xbf16, #tpu.memory_space<vmem>>, %arg5: memref<1x128xf32, #tpu.memory_space<vmem>>, %arg6: memref<8x128xf32, #tpu.memory_space<vmem>>) attributes {dimension_semantics = [#tpu.dimension_semantics<parallel>], iteration_bounds = array<i64: 1>, scalar_prefetch = 0 : i64, scratch_operands = 0 : i64, tpu.core_type = #tpu.core_type<tc>, window_params = [{transform_indices = @transform_0, window_bounds = array<i64: 8, 2048>}, {pipeline_mode = #tpu.pipeline_mode<synchronous>, transform_indices = @transform_1, window_bounds = array<i64: 2048, 512>}, {pipeline_mode = #tpu.pipeline_mode<synchronous>, transform_indices = @transform_2, window_bounds = array<i64: 1, 512>}, {pipeline_mode = #tpu.pipeline_mode<synchronous>, transform_indices = @transform_3, window_bounds = array<i64: 512, 128>}, {pipeline_mode = #tpu.pipeline_mode<synchronous>, transform_indices = @transform_4, window_bounds = array<i64: 1, 128>}, {transform_indices = @transform_5, window_bounds = array<i64: 8, 128>}]} {
    %c0 = arith.constant 0 : index
    %c0_0 = arith.constant 0 : index
    %0 = vector.load %arg1[%c0, %c0_0] : memref<8x2048xbf16, #tpu.memory_space<vmem>>, vector<8x2048xbf16>
    %c0_1 = arith.constant 0 : index
    %c0_2 = arith.constant 0 : index
    %1 = vector.load %arg2[%c0_1, %c0_2] : memref<2048x512xbf16, #tpu.memory_space<vmem>>, vector<2048x512xbf16>
    %cst = arith.constant dense<0.000000e+00> : vector<8x512xf32>
    %2 = tpu.matmul %0, %1, %cst {dimension_numbers = #tpu.dot_dimension_numbers<[1], [0], [0], [1], [0, 0, 1, 1], [], []>} : vector<8x2048xbf16>, vector<2048x512xbf16>, vector<8x512xf32> -> vector<8x512xf32>
    %c0_3 = arith.constant 0 : index
    %c0_4 = arith.constant 0 : index
    %3 = vector.load %arg3[%c0_3, %c0_4] : memref<1x512xf32, #tpu.memory_space<vmem>>, vector<1x512xf32>
    %4 = vector.broadcast %3 : vector<1x512xf32> to vector<8x512xf32>
    %5 = arith.addf %2, %4 : vector<8x512xf32>
    %cst_5 = arith.constant 0.000000e+00 : f32
    %6 = vector.broadcast %cst_5 : f32 to vector<8x512xf32>
    %7 = arith.maximumf %5, %6 : vector<8x512xf32>
    %8 = arith.truncf %7 : vector<8x512xf32> to vector<8x512xbf16>
    %c0_6 = arith.constant 0 : index
    %c0_7 = arith.constant 0 : index
    %9 = vector.load %arg4[%c0_6, %c0_7] : memref<512x128xbf16, #tpu.memory_space<vmem>>, vector<512x128xbf16>
    %cst_8 = arith.constant dense<0.000000e+00> : vector<8x128xf32>
    %10 = tpu.matmul %8, %9, %cst_8 {dimension_numbers = #tpu.dot_dimension_numbers<[1], [0], [0], [1], [0, 0, 1, 1], [], []>} : vector<8x512xbf16>, vector<512x128xbf16>, vector<8x128xf32> -> vector<8x128xf32>
    %c0_9 = arith.constant 0 : index
    %c0_10 = arith.constant 0 : index
    %11 = vector.load %arg5[%c0_9, %c0_10] : memref<1x128xf32, #tpu.memory_space<vmem>>, vector<1x128xf32>
    %12 = vector.broadcast %11 : vector<1x128xf32> to vector<8x128xf32>
    %13 = arith.addf %10, %12 : vector<8x128xf32>
    %c0_11 = arith.constant 0 : index
    %c0_12 = arith.constant 0 : index
    %14 = vector.load %arg6[%c0_11, %c0_12] : memref<8x128xf32, #tpu.memory_space<vmem>>, vector<8x128xf32>
    tpu.vector_store %arg6[%c0_11, %c0_12], %13 {strides = array<i32>} : memref<8x128xf32, #tpu.memory_space<vmem>>, vector<8x128xf32>,
    return
  }
  func.func @transform_0(%arg0: i32) -> (i32, i32) {
    %c0_i32 = arith.constant 0 : i32
    %c0_i32_0 = arith.constant 0 : i32
    return %arg0, %c0_i32 : i32, i32
  }
  func.func @transform_1(%arg0: i32) -> (i32, i32) {
    %c0_i32 = arith.constant 0 : i32
    %c0_i32_0 = arith.constant 0 : i32
    %c0_i32_1 = arith.constant 0 : i32
    return %c0_i32, %c0_i32_0 : i32, i32
  }
  func.func @transform_2(%arg0: i32) -> (i32, i32) {
    %c0_i32 = arith.constant 0 : i32
    %c0_i32_0 = arith.constant 0 : i32
    %c0_i32_1 = arith.constant 0 : i32
    return %c0_i32, %c0_i32_0 : i32, i32
  }
  func.func @transform_3(%arg0: i32) -> (i32, i32) {
    %c0_i32 = arith.constant 0 : i32
    %c0_i32_0 = arith.constant 0 : i32
    %c0_i32_1 = arith.constant 0 : i32
    return %c0_i32, %c0_i32_0 : i32, i32
  }
  func.func @transform_4(%arg0: i32) -> (i32, i32) {
    %c0_i32 = arith.constant 0 : i32
    %c0_i32_0 = arith.constant 0 : i32
    %c0_i32_1 = arith.constant 0 : i32
    return %c0_i32, %c0_i32_0 : i32, i32
  }
  func.func @transform_5(%arg0: i32) -> (i32, i32) {
    %c0_i32 = arith.constant 0 : i32
    %c0_i32_0 = arith.constant 0 : i32
    return %arg0, %c0_i32 : i32, i32
  }
}

</mosaic_0001>

<bundles_post_ra>
// kernel: lenet_forward.3
= control target key start
LH: loop header
LB: loop body
LE: loop exit
PB: predicated region body
PF: predicated region fallthrough
CT: control target
= control target key end

     0   :  { %vm542_vm0 = vcmask 261120   ;;  %vm1764_vm1 = vcmask 158720   ;;  %s3411_s1 = inlined_call_operand.vmem [shape: bf16[32,20], index: 1, kind: input, shape index: {}]   ;;  %s3412_s0 = inlined_call_operand.vmem [shape: bf16[1152,32], index: 0, kind: input, shape index: {}]   ;;  %s3413_s2 = inlined_call_operand.vmem [shape: f32[1,20], index: 2, kind: input, shape index: {}]   ;;  %s3414_s3 = inlined_call_operand.vmem [shape: bf16[288,20], index: 3, kind: output, shape index: {}]  }
   0x1   :  { %v2250_v0 = vld [vmem:[%s3411_s1] sm:$0xff]   ;;  %v2251_v1 = vld [vmem:[%s3411_s1 + $0x8] sm:$0xff]   ;;  %v2256_v6 = vld [vmem:[%s3412_s0 + $0x10] sm:$0xff]  }
   0x2   :  { %2098 = vmatprep.subr.bf16.mxu0 %v2250_v0  ;;  %2246 = vmatprep.subr.bf16.mxu1 %v2250_v0  ;;  %v2252_v2 = vld [vmem:[%s3412_s0] sm:$0xff]   ;;  %v2254_v4 = vld [vmem:[%s3412_s0 + $0x8] sm:$0xff]   ;;  %v2257_v7 = vld [vmem:[%s3412_s0 + $0x130] sm:$0xff]  }
   0x3   :  { %2099 = vmatpush3.bf16.msra.mxu0 %v2250_v0  ;;  %2248 = vmatpush3.bf16.msra.mxu1 %v2250_v0  ;;  %v2253_v3 = vld [vmem:[%s3412_s0 + $0x120] sm:$0xff]   ;;  %v2255_v5 = vld [vmem:[%s3412_s0 + $0x128] sm:$0xff]   ;;  %v2258_v8 = vld [vmem:[%s3412_s0 + $0x18] sm:$0xff]  }
   0x4   :  { %2100 = vmatprep.subr.bf16.mxu0 %v2251_v1  ;;  %2247 = vmatprep.subr.bf16.mxu1 %v2251_v1  ;;  %v2259_v9 = vld [vmem:[%s3412_s0 + $0x138] sm:$0xff]   ;;  %v2260_v10 = vld [vmem:[%s3412_s0 + $0x20] sm:$0xff]   ;;  %v2262_v12 = vld [vmem:[%s3412_s0 + $0x28] sm:$0xff]  }
   0x5   :  { %2102 = vmatprep.mubr.msk.bf16.mxu0 %vm542_vm0, %v2252_v2  ;;  %2174 = vmatprep.mubr.msk.bf16.mxu1 %vm542_vm0, %v2253_v3  ;;  %v2261_v11 = vld [vmem:[%s3412_s0 + $0x140] sm:$0xff]   ;;  %v2263_v13 = vld [vmem:[%s3412_s0 + $0x148] sm:$0xff]   ;;  %v2264_v14 = vld [vmem:[%s3412_s0 + $0x30] sm:$0xff]  }
   0x6   :  { %v2265_v15 = vld [vmem:[%s3412_s0 + $0x150] sm:$0xff]   ;;  %v2266_v16 = vld [vmem:[%s3412_s0 + $0x38] sm:$0xff]   ;;  %v2268_v18 = vld [vmem:[%s3412_s0 + $0x40] sm:$0xff]  }
   0x7   :  { %2101 = vmatpush3.bf16.msra.mxu0 %v2251_v1  ;;  %2249 = vmatpush3.bf16.msra.mxu1 %v2251_v1  ;;  %v2267_v17 = vld [vmem:[%s3412_s0 + $0x158] sm:$0xff]   ;;  %v2269_v19 = vld [vmem:[%s3412_s0 + $0x160] sm:$0xff]   ;;  %v2270_v20 = vld [vmem:[%s3412_s0 + $0x48] sm:$0xff]  }
   0x8   :  { %v2271_v21 = vld [vmem:[%s3412_s0 + $0x168] sm:$0xff]   ;;  %v2272_v22 = vld [vmem:[%s3412_s0 + $0x50] sm:$0xff]   ;;  %v2274_v24 = vld [vmem:[%s3412_s0 + $0x58] sm:$0xff]  }
   0x9   :  { %v2273_v23 = vld [vmem:[%s3412_s0 + $0x170] sm:$0xff]   ;;  %v2275_v25 = vld [vmem:[%s3412_s0 + $0x178] sm:$0xff]   ;;  %v2276_v26 = vld [vmem:[%s3412_s0 + $0x60] sm:$0xff]  }
   0xa   :  { %2103 = vmatmul.mubr.msk.bf16.vlgmr.msra.gmra.mrb[0].mxu0 %vm542_vm0, %v2254_v4  ;;  %2175 = vmatmul.mubr.msk.bf16.vlgmr.msra.gmra.mrb[0].mxu1 %vm542_vm0, %v2255_v5  ;;  %v2277_v27 = vld [vmem:[%s3412_s0 + $0x180] sm:$0xff]   ;;  %v2278_v28 = vld [vmem:[%s3412_s0 + $0x68] sm:$0xff]   ;;  %v2280_v30 = vld [vmem:[%s3412_s0 + $0x70] sm:$0xff]  }
   0xb   :  { %2106 = vmatprep.mubr.msk.bf16.mxu0 %vm542_vm0, %v2256_v6  ;;  %2178 = vmatprep.mubr.msk.bf16.mxu1 %vm542_vm0, %v2257_v7  ;;  %v2279_v29 = vld [vmem:[%s3412_s0 + $0x188] sm:$0xff]   ;;  %v2281_v31 = vld [vmem:[%s3412_s0 + $0x190] sm:$0xff]   ;;  %v2282_v32 = vld [vmem:[%s3412_s0 + $0x78] sm:$0xff]  }
   0xc   :  { %v2283_v33 = vld [vmem:[%s3412_s0 + $0x198] sm:$0xff]   ;;  %v2284_v34 = vld [vmem:[%s3412_s0 + $0x80] sm:$0xff]   ;;  %v2286_v36 = vld [vmem:[%s3412_s0 + $0x88] sm:$0xff]  }
   0xd   :  { %v2285_v35 = vld [vmem:[%s3412_s0 + $0x1a0] sm:$0xff]   ;;  %v2287_v37 = vld [vmem:[%s3412_s0 + $0x1a8] sm:$0xff]   ;;  %v2288_v38 = vld [vmem:[%s3412_s0 + $0x90] sm:$0xff]  }
   0xe   :  { %v2289_v39 = vld [vmem:[%s3412_s0 + $0x1b0] sm:$0xff]   ;;  %v2290_v40 = vld [vmem:[%s3412_s0 + $0x98] sm:$0xff]   ;;  %v2292_v42 = vld [vmem:[%s3412_s0 + $0xa0] sm:$0xff]  }
   0xf   :  { %v2291_v41 = vld [vmem:[%s3412_s0 + $0x1b8] sm:$0xff]   ;;  %v2293_v43 = vld [vmem:[%s3412_s0 + $0x1c0] sm:$0xff]   ;;  %v2294_v44 = vld [vmem:[%s3412_s0 + $0xa8] sm:$0xff]  }
  0x10   :  { %v2295_v45 = vld [vmem:[%s3412_s0 + $0x1c8] sm:$0xff]   ;;  %v2296_v46 = vld [vmem:[%s3412_s0 + $0xb0] sm:$0xff]   ;;  %v2298_v48 = vld [vmem:[%s3412_s0 + $0xb8] sm:$0xff]  }
  0x11   :  { %v2297_v47 = vld [vmem:[%s3412_s0 + $0x1d0] sm:$0xff]   ;;  %v2299_v49 = vld [vmem:[%s3412_s0 + $0x1d8] sm:$0xff]   ;;  %v2300_v50 = vld [vmem:[%s3412_s0 + $0xc0] sm:$0xff]  }
  0x12   :  { %2107 = vmatmul.mubr.msk.bf16.gmra.mrb[4].mxu0 %vm542_vm0, %v2258_v8  ;;  %2179 = vmatmul.mubr.msk.bf16.gmra.mrb[4].mxu1 %vm542_vm0, %v2259_v9  ;;  %v2301_v51 = vld [vmem:[%s3412_s0 + $0x1e0] sm:$0xff]   ;;  %v2302_v52 = vld [vmem:[%s3412_s0 + $0xc8] sm:$0xff]   ;;  %v2304_v54 = vld [vmem:[%s3412_s0 + $0xd0] sm:$0xff]  }
  0x13   :  { %2110 = vmatprep.mubr.msk.bf16.mxu0 %vm542_vm0, %v2260_v10  ;;  %2182 = vmatprep.mubr.msk.bf16.mxu1 %vm542_vm0, %v2261_v11  ;;  %v2303_v53 = vld [vmem:[%s3412_s0 + $0x1e8] sm:$0xff]   ;;  %v2305_v55 = vld [vmem:[%s3412_s0 + $0x1f0] sm:$0xff]   ;;  %v2306_v56 = vld [vmem:[%s3412_s0 + $0xd8] sm:$0xff]  }
  0x14   :  { %v2307_v57 = vld [vmem:[%s3412_s0 + $0x1f8] sm:$0xff]   ;;  %v2308_v58 = vld [vmem:[%s3412_s0 + $0xe0] sm:$0xff]   ;;  %v2310_v60 = vld [vmem:[%s3412_s0 + $0xe8] sm:$0xff]  }
  0x15   :  { %v2309_v59 = vld [vmem:[%s3412_s0 + $0x200] sm:$0xff]   ;;  %v2311_v61 = vld [vmem:[%s3412_s0 + $0x208] sm:$0xff]   ;;  %v2312_v62 = vld [vmem:[%s3412_s0 + $0xf0] sm:$0xff]  }
  0x16   :  { %v2313_v63 = vld [vmem:[%s3412_s0 + $0x210] sm:$0xff]   ;;  %v2314_v0 = vld [vmem:[%s3412_s0 + $0xf8] sm:$0xff]   ;;  %v2316_v2 = vld [vmem:[%s3412_s0 + $0x100] sm:$0xff]  }
  0x17   :  { %v2315_v1 = vld [vmem:[%s3412_s0 + $0x218] sm:$0xff]   ;;  %v2317_v3 = vld [vmem:[%s3412_s0 + $0x220] sm:$0xff]   ;;  %v2318_v4 = vld [vmem:[%s3412_s0 + $0x108] sm:$0xff]  }
  0x18   :  { %v2319_v5 = vld [vmem:[%s3412_s0 + $0x228] sm:$0xff]   ;;  %v2320_v6 = vld [vmem:[%s3412_s0 + $0x110] sm:$0xff]   ;;  %v2322_v8 = vld [vmem:[%s3412_s0 + $0x118] sm:$0xff]  }
  0x19   :  { %v2321_v7 = vld [vmem:[%s3412_s0 + $0x230] sm:$0xff]   ;;  %v2323_v9 = vld [vmem:[%s3412_s0 + $0x238] sm:$0xff]  }
  0x1a   :  { %2111 = vmatmul.mubr.msk.bf16.gmra.mrb[8].mxu0 %vm542_vm0, %v2262_v12  ;;  %2183 = vmatmul.mubr.msk.bf16.gmra.mrb[8].mxu1 %vm542_vm0, %v2263_v13 }
  0x1b   :  { %2114 = vmatprep.mubr.msk.bf16.mxu0 %vm542_vm0, %v2264_v14  ;;  %2186 = vmatprep.mubr.msk.bf16.mxu1 %vm542_vm0, %v2265_v15 }
  0x22   :  { %2115 = vmatmul.mubr.msk.bf16.gmra.mrb[12].mxu0 %vm542_vm0, %v2266_v16  ;;  %2187 = vmatmul.mubr.msk.bf16.gmra.mrb[12].mxu1 %vm542_vm0, %v2267_v17 }
  0x23   :  { %2118 = vmatprep.mubr.msk.bf16.mxu0 %vm542_vm0, %v2268_v18  ;;  %2190 = vmatprep.mubr.msk.bf16.mxu1 %vm542_vm0, %v2269_v19 }
  0x2a   :  { %2119 = vmatmul.mubr.msk.bf16.gmra.mrb[16].mxu0 %vm542_vm0, %v2270_v20  ;;  %2191 = vmatmul.mubr.msk.bf16.gmra.mrb[16].mxu1 %vm542_vm0, %v2271_v21 }
  0x2b   :  { %2122 = vmatprep.mubr.msk.bf16.mxu0 %vm542_vm0, %v2272_v22  ;;  %2194 = vmatprep.mubr.msk.bf16.mxu1 %vm542_vm0, %v2273_v23 }
  0x32   :  { %2123 = vmatmul.mubr.msk.bf16.gmra.mrb[20].mxu0 %vm542_vm0, %v2274_v24  ;;  %2195 = vmatmul.mubr.msk.bf16.gmra.mrb[20].mxu1 %vm542_vm0, %v2275_v25 }
  0x33   :  { %2126 = vmatprep.mubr.msk.bf16.mxu0 %vm542_vm0, %v2276_v26  ;;  %2198 = vmatprep.mubr.msk.bf16.mxu1 %vm542_vm0, %v2277_v27 }
  0x3a   :  { %2127 = vmatmul.mubr.msk.bf16.gmra.mrb[24].mxu0 %vm542_vm0, %v2278_v28  ;;  %2199 = vmatmul.mubr.msk.bf16.gmra.mrb[24].mxu1 %vm542_vm0, %v2279_v29 }
  0x3b   :  { %2130 = vmatprep.mubr.msk.bf16.mxu0 %vm542_vm0, %v2280_v30  ;;  %2202 = vmatprep.mubr.msk.bf16.mxu1 %vm542_vm0, %v2281_v31 }
  0x42   :  { %2131 = vmatmul.mubr.msk.bf16.gmra.mrb[28].mxu0 %vm542_vm0, %v2282_v32  ;;  %2203 = vmatmul.mubr.msk.bf16.gmra.mrb[28].mxu1 %vm542_vm0, %v2283_v33 }
  0x43   :  { %2134 = vmatprep.mubr.msk.bf16.mxu0 %vm542_vm0, %v2284_v34  ;;  %2206 = vmatprep.mubr.msk.bf16.mxu1 %vm542_vm0, %v2285_v35 }
  0x4a   :  { %2135 = vmatmul.mubr.msk.bf16.gmra.mrb[32].mxu0 %vm542_vm0, %v2286_v36  ;;  %2207 = vmatmul.mubr.msk.bf16.gmra.mrb[32].mxu1 %vm542_vm0, %v2287_v37 }
  0x4b   :  { %2138 = vmatprep.mubr.msk.bf16.mxu0 %vm542_vm0, %v2288_v38  ;;  %2210 = vmatprep.mubr.msk.bf16.mxu1 %vm542_vm0, %v2289_v39 }
  0x52   :  { %2139 = vmatmul.mubr.msk.bf16.gmra.mrb[36].mxu0 %vm542_vm0, %v2290_v40  ;;  %2211 = vmatmul.mubr.msk.bf16.gmra.mrb[36].mxu1 %vm542_vm0, %v2291_v41 }
  0x53   :  { %2142 = vmatprep.mubr.msk.bf16.mxu0 %vm542_vm0, %v2292_v42  ;;  %2214 = vmatprep.mubr.msk.bf16.mxu1 %vm542_vm0, %v2293_v43 }
  0x5a   :  { %2143 = vmatmul.mubr.msk.bf16.gmra.mrb[40].mxu0 %vm542_vm0, %v2294_v44  ;;  %2215 = vmatmul.mubr.msk.bf16.gmra.mrb[40].mxu1 %vm542_vm0, %v2295_v45 }
  0x5b   :  { %2146 = vmatprep.mubr.msk.bf16.mxu0 %vm542_vm0, %v2296_v46  ;;  %2218 = vmatprep.mubr.msk.bf16.mxu1 %vm542_vm0, %v2297_v47 }
  0x62   :  { %2147 = vmatmul.mubr.msk.bf16.gmra.mrb[44].mxu0 %vm542_vm0, %v2298_v48  ;;  %2219 = vmatmul.mubr.msk.bf16.gmra.mrb[44].mxu1 %vm542_vm0, %v2299_v49  ;;  %v2684_v48 = vld [vmem:[%s3413_s2] ss:$0 sm:$0xff] }
  0x63   :  { %2150 = vmatprep.mubr.msk.bf16.mxu0 %vm542_vm0, %v2300_v50  ;;  %2222 = vmatprep.mubr.msk.bf16.mxu1 %vm542_vm0, %v2301_v51 }
  0x6a   :  { %2151 = vmatmul.mubr.msk.bf16.gmra.mrb[48].mxu0 %vm542_vm0, %v2302_v52  ;;  %2223 = vmatmul.mubr.msk.bf16.gmra.mrb[48].mxu1 %vm542_vm0, %v2303_v53 }
  0x6b   :  { %2154 = vmatprep.mubr.msk.bf16.mxu0 %vm542_vm0, %v2304_v54  ;;  %2226 = vmatprep.mubr.msk.bf16.mxu1 %vm542_vm0, %v2305_v55 }
  0x72   :  { %2155 = vmatmul.mubr.msk.bf16.gmra.mrb[52].mxu0 %vm542_vm0, %v2306_v56  ;;  %2227 = vmatmul.mubr.msk.bf16.gmra.mrb[52].mxu1 %vm542_vm0, %v2307_v57 }
  0x73   :  { %2158 = vmatprep.mubr.msk.bf16.mxu0 %vm542_vm0, %v2308_v58  ;;  %2230 = vmatprep.mubr.msk.bf16.mxu1 %vm542_vm0, %v2309_v59 }
  0x7a   :  { %2159 = vmatmul.mubr.msk.bf16.gmra.mrb[56].mxu0 %vm542_vm0, %v2310_v60  ;;  %2231 = vmatmul.mubr.msk.bf16.gmra.mrb[56].mxu1 %vm542_vm0, %v2311_v61 }
  0x7b   :  { %2162 = vmatprep.mubr.msk.bf16.mxu0 %vm542_vm0, %v2312_v62  ;;  %2234 = vmatprep.mubr.msk.bf16.mxu1 %vm542_vm0, %v2313_v63 }
  0x82   :  { %2163 = vmatmul.mubr.msk.bf16.gmra.mrb[60].mxu0 %vm542_vm0, %v2314_v0  ;;  %2235 = vmatmul.mubr.msk.bf16.gmra.mrb[60].mxu1 %vm542_vm0, %v2315_v1 }
  0x83   :  { %2166 = vmatprep.mubr.msk.bf16.mxu0 %vm542_vm0, %v2316_v2  ;;  %2238 = vmatprep.mubr.msk.bf16.mxu1 %vm542_vm0, %v2317_v3 }
  0x8a   :  { %2167 = vmatmul.mubr.msk.bf16.gmra.mrb[64].mxu0 %vm542_vm0, %v2318_v4  ;;  %2239 = vmatmul.mubr.msk.bf16.gmra.mrb[64].mxu1 %vm542_vm0, %v2319_v5 }
  0x8b   :  { %2170 = vmatprep.mubr.msk.bf16.mxu0 %vm542_vm0, %v2320_v6  ;;  %2242 = vmatprep.mubr.msk.bf16.mxu1 %vm542_vm0, %v2321_v7 }
  0x92   :  { %2171 = vmatmul.mubr.msk.bf16.gmra.mrb[68].mxu0 %vm542_vm0, %v2322_v8  ;;  %2243 = vmatmul.mubr.msk.bf16.gmra.mrb[68].mxu1 %vm542_vm0, %v2323_v9 }
  0xdd   :  { %v2104_v10 = vpop.f32.mrb[0].mxu0  ;;  %v2176_v11 = vpop.f32.mrb[0].mxu1 }
  0xde   :  { %v793_v12 = vpop.f32.mrb[1].mxu0  ;;  %v1081_v13 = vpop.f32.mrb[1].mxu1  ;;  %v2691_v51 = vadd.f32 %v2104_v10, %v2684_v48  ;;  %v2698_v54 = vadd.f32 %v2176_v11, %v2684_v48 }
  0xdf   :  { %v2105_v14 = vpop.f32.mrb[2].mxu0  ;;  %v2177_v15 = vpop.f32.mrb[2].mxu1  ;;  %v2701_v55 = vadd.f32 %v2684_v48, %v793_v12  ;;  %v2704_v56 = vadd.f32 %v2684_v48, %v1081_v13 }
  0xe0   :  { %v796_v16 = vpop.f32.mrb[3].mxu0  ;;  %v1084_v17 = vpop.f32.mrb[3].mxu1  ;;  %v2707_v57 = vadd.f32 %v2105_v14, %v2684_v48  ;;  %v2715_v61 = vadd.f32 %v2177_v15, %v2684_v48 }
  0xe1   :  { %v2718_v62 = vadd.f32 %v2684_v48, %v796_v16  ;;  %v2721_v63 = vadd.f32 %v2684_v48, %v1084_v17 }
  0xe5   :  { %v2108_v18 = vpop.f32.mrb[4].mxu0  ;;  %v2180_v19 = vpop.f32.mrb[4].mxu1 }
  0xe6   :  { %v809_v20 = vpop.f32.mrb[5].mxu0  ;;  %v1097_v21 = vpop.f32.mrb[5].mxu1  ;;  %v2728_v2 = vadd.f32 %v2108_v18, %v2684_v48  ;;  %v2731_v3 = vadd.f32 %v2180_v19, %v2684_v48 }
  0xe7   :  { %v2109_v22 = vpop.f32.mrb[6].mxu0  ;;  %v2181_v23 = vpop.f32.mrb[6].mxu1  ;;  %v2734_v4 = vadd.f32 %v2684_v48, %v809_v20  ;;  %v2737_v5 = vadd.f32 %v2684_v48, %v1097_v21 }
  0xe8   :  { %v812_v24 = vpop.f32.mrb[7].mxu0  ;;  %v1100_v25 = vpop.f32.mrb[7].mxu1  ;;  %v2744_v8 = vadd.f32 %v2109_v22, %v2684_v48  ;;  %v2747_v9 = vadd.f32 %v2181_v23, %v2684_v48 }
  0xe9   :  { %v2750_v10 = vadd.f32 %v2684_v48, %v812_v24  ;;  %v2753_v11 = vadd.f32 %v2684_v48, %v1100_v25 }
  0xeb   :  { %3447 = vst [vmem:[#allocation2_spill] sm:$0xff] %v2753_v11 }
  0xed   :  { %v2112_v26 = vpop.f32.mrb[8].mxu0  ;;  %v2639_v27 = vpop.f32.mrb[8].mxu1 }
  0xee   :  { %v2641_v28 = vpop.f32.mrb[9].mxu0  ;;  %v2643_v29 = vpop.f32.mrb[9].mxu1  ;;  %v2763_v19 = vadd.f32 %v2112_v26, %v2684_v48  ;;  %v2779_v20 = vadd.f32 %v2639_v27, %v2684_v48 }
  0xef   :  { %v2645_v30 = vpop.f32.mrb[10].mxu0  ;;  %v2647_v31 = vpop.f32.mrb[10].mxu1  ;;  %v2783_v22 = vadd.f32 %v2684_v48, %v2641_v28  ;;  %v2787_v24 = vadd.f32 %v2684_v48, %v2643_v29 }
  0xf0   :  { %v2649_v32 = vpop.f32.mrb[11].mxu0  ;;  %v2651_v33 = vpop.f32.mrb[11].mxu1  ;;  %3448 = vst [vmem:[#allocation3_spill] sm:$0xff] %v2763_v19  ;;  %v2791_v16 = vadd.f32 %v2645_v30, %v2684_v48  ;;  %v2800_v27 = vadd.f32 %v2647_v31, %v2684_v48 }
  0xf1   :  { %v2804_v28 = vadd.f32 %v2684_v48, %v2649_v32  ;;  %v2808_v29 = vadd.f32 %v2684_v48, %v2651_v33 }
  0xf3   :  { %3449 = vst [vmem:[#allocation4_spill] sm:$0xff] %v2804_v28  ;;  %3450 = vst [vmem:[#allocation5_spill] sm:$0xff] %v2808_v29 }
  0xf5   :  { %v2653_v34 = vpop.f32.mrb[12].mxu0  ;;  %v2655_v35 = vpop.f32.mrb[12].mxu1 }
  0xf6   :  { %v2657_v36 = vpop.f32.mrb[13].mxu0  ;;  %v2659_v37 = vpop.f32.mrb[13].mxu1  ;;  %v2816_v15 = vadd.f32 %v2653_v34, %v2684_v48  ;;  %v2820_v31 = vadd.f32 %v2655_v35, %v2684_v48 }
  0xf7   :  { %v2661_v38 = vpop.f32.mrb[14].mxu0  ;;  %v2663_v39 = vpop.f32.mrb[14].mxu1  ;;  %v2824_v32 = vadd.f32 %v2684_v48, %v2657_v36  ;;  %v2828_v33 = vadd.f32 %v2684_v48, %v2659_v37 }
  0xf8   :  { %v2665_v40 = vpop.f32.mrb[15].mxu0  ;;  %v2667_v41 = vpop.f32.mrb[15].mxu1  ;;  %v2836_v34 = vadd.f32 %v2661_v38, %v2684_v48  ;;  %v2840_v35 = vadd.f32 %v2663_v39, %v2684_v48 }
  0xf9   :  { %3451 = vst [vmem:[#allocation6_spill] sm:$0xff] %v2828_v33  ;;  %v2844_v36 = vadd.f32 %v2684_v48, %v2665_v40  ;;  %v2848_v37 = vadd.f32 %v2684_v48, %v2667_v41 }
  0xfa   :  { %3452 = vst [vmem:[#allocation7_spill] sm:$0xff] %v2836_v34  ;;  %3453 = vst [vmem:[#allocation8_spill] sm:$0xff] %v2840_v35 }
  0xfb   :  { %3454 = vst [vmem:[#allocation9_spill] sm:$0xff] %v2844_v36  ;;  %3455 = vst [vmem:[#allocation10_spill] sm:$0xff] %v2848_v37 }
  0xfd   :  { %v2669_v42 = vpop.f32.mrb[16].mxu0  ;;  %v2671_v43 = vpop.f32.mrb[16].mxu1 }
  0xfe   :  { %v2673_v44 = vpop.f32.mrb[17].mxu0  ;;  %v2675_v45 = vpop.f32.mrb[17].mxu1  ;;  %v2859_v40 = vadd.f32 %v2669_v42, %v2684_v48  ;;  %v2871_v42 = vadd.f32 %v2671_v43, %v2684_v48 }
  0xff   :  { %v2677_v46 = vpop.f32.mrb[18].mxu0  ;;  %v2679_v47 = vpop.f32.mrb[18].mxu1  ;;  %v2875_v13 = vadd.f32 %v2684_v48, %v2673_v44  ;;  %v2879_v60 = vadd.f32 %v2684_v48, %v2675_v45 }
 0x100   :  { %v2686_v49 = vpop.f32.mrb[19].mxu0  ;;  %v2688_v50 = vpop.f32.mrb[19].mxu1  ;;  %3456 = vst [vmem:[#allocation11_spill] sm:$0xff] %v2859_v40  ;;  %v2883_v19 = vadd.f32 %v2677_v46, %v2684_v48  ;;  %v2888_v43 = vadd.f32 %v2679_v47, %v2684_v48 }
 0x101   :  { %v2892_v44 = vadd.f32 %v2684_v48, %v2686_v49  ;;  %v2896_v45 = vadd.f32 %v2684_v48, %v2688_v50 }
 0x103   :  { %3457 = vst [vmem:[#allocation12_spill] sm:$0xff] %v2892_v44  ;;  %3458 = vst [vmem:[#allocation13_spill] sm:$0xff] %v2896_v45 }
 0x105   :  { %v2693_v52 = vpop.f32.mrb[20].mxu0  ;;  %v2695_v53 = vpop.f32.mrb[20].mxu1 }
 0x106   :  { %v2709_v58 = vpop.f32.mrb[21].mxu0  ;;  %v2711_v59 = vpop.f32.mrb[21].mxu1  ;;  %v2900_v46 = vadd.f32 %v2693_v52, %v2684_v48  ;;  %v2904_v38 = vadd.f32 %v2695_v53, %v2684_v48 }
 0x107   :  { %v2723_v0 = vpop.f32.mrb[22].mxu0  ;;  %v2725_v1 = vpop.f32.mrb[22].mxu1  ;;  %v2908_v47 = vadd.f32 %v2684_v48, %v2709_v58  ;;  %v2912_v49 = vadd.f32 %v2684_v48, %v2711_v59 }
 0x108   :  { %v2739_v6 = vpop.f32.mrb[23].mxu0  ;;  %v2741_v7 = vpop.f32.mrb[23].mxu1  ;;  %v2916_v37 = vadd.f32 %v2723_v0, %v2684_v48  ;;  %v2920_v52 = vadd.f32 %v2725_v1, %v2684_v48 }
 0x109   :  { %3459 = vst [vmem:[#allocation14_spill] sm:$0xff] %v2908_v47  ;;  %3460 = vst [vmem:[#allocation15_spill] sm:$0xff] %v2912_v49  ;;  %v2924_v53 = vadd.f32 %v2684_v48, %v2739_v6  ;;  %v2928_v58 = vadd.f32 %v2684_v48, %v2741_v7 }
 0x10a   :  { %3461 = vst [vmem:[#allocation16_spill] sm:$0xff] %v2916_v37  ;;  %3462 = vst [vmem:[#allocation17_spill] sm:$0xff] %v2920_v52 }
 0x10b   :  { %3463 = vst [vmem:[#allocation18_spill] sm:$0xff] %v2924_v53  ;;  %3464 = vst [vmem:[#allocation19_spill] sm:$0xff] %v2928_v58 }
 0x10d   :  { %v2773_v18 = vpop.f32.mrb[24].mxu0  ;;  %v2775_v26 = vpop.f32.mrb[24].mxu1 }
 0x10e   :  { %v2793_v17 = vpop.f32.mrb[25].mxu0  ;;  %v2795_v25 = vpop.f32.mrb[25].mxu1  ;;  %v2939_v6 = vadd.f32 %v2773_v18, %v2684_v48  ;;  %v2951_v18 = vadd.f32 %v2775_v26, %v2684_v48 }
 0x10f   :  { %v2810_v30 = vpop.f32.mrb[26].mxu0  ;;  %v2812_v21 = vpop.f32.mrb[26].mxu1  ;;  %v2955_v59 = vadd.f32 %v2684_v48, %v2793_v17  ;;  %v2959_v35 = vadd.f32 %v2684_v48, %v2795_v25 }
 0x110   :  { %v2830_v23 = vpop.f32.mrb[27].mxu0  ;;  %v2832_v14 = vpop.f32.mrb[27].mxu1  ;;  %3465 = vst [vmem:[#allocation20_spill] sm:$0xff] %v2939_v6  ;;  %v2963_v34 = vadd.f32 %v2810_v30, %v2684_v48  ;;  %v2968_v26 = vadd.f32 %v2812_v21, %v2684_v48 }
 0x111   :  { %v2972_v17 = vadd.f32 %v2684_v48, %v2830_v23  ;;  %v2976_v25 = vadd.f32 %v2684_v48, %v2832_v14 }
 0x112   :  { %3466 = vst [vmem:[#allocation21_spill] sm:$0xff] %v2963_v34  ;;  %3467 = vst [vmem:[#allocation22_spill] sm:$0xff] %v2968_v26 }
 0x113   :  { %3468 = vst [vmem:[#allocation23_spill] sm:$0xff] %v2972_v17  ;;  %3469 = vst [vmem:[#allocation24_spill] sm:$0xff] %v2976_v25 }
 0x115   :  { %v2132_v29 = vpop.f32.mrb[28].mxu0  ;;  %v2204_v28 = vpop.f32.mrb[28].mxu1 }
 0x116   :  { %v905_v39 = vpop.f32.mrb[29].mxu0  ;;  %v1193_v11 = vpop.f32.mrb[29].mxu1  ;;  %v2983_v7 = vadd.f32 %v2132_v29, %v2684_v48  ;;  %v2986_v0 = vadd.f32 %v2204_v28, %v2684_v48 }
 0x117   :  { %v2133_v12 = vpop.f32.mrb[30].mxu0  ;;  %v2205_v41 = vpop.f32.mrb[30].mxu1  ;;  %v2989_v21 = vadd.f32 %v2684_v48, %v905_v39  ;;  %v2992_v23 = vadd.f32 %v2684_v48, %v1193_v11 }
 0x118   :  { %v908_v50 = vpop.f32.mrb[31].mxu0  ;;  %v1196_v40 = vpop.f32.mrb[31].mxu1  ;;  %3470 = vst [vmem:[#allocation25_spill] sm:$0xff] %v2983_v7  ;;  %3471 = vst [vmem:[#allocation26_spill] sm:$0xff] %v2986_v0  ;;  %v2999_v58 = vadd.f32 %v2133_v12, %v2684_v48  ;;  %v3002_v53 = vadd.f32 %v2205_v41, %v2684_v48 }
 0x119   :  { %3472 = vst [vmem:[#allocation27_spill] sm:$0xff] %v2989_v21  ;;  %3473 = vst [vmem:[#allocation28_spill] sm:$0xff] %v2992_v23  ;;  %v3005_v29 = vadd.f32 %v2684_v48, %v908_v50  ;;  %v3008_v28 = vadd.f32 %v2684_v48, %v1196_v40 }
 0x11a   :  { %3474 = vst [vmem:[#allocation29_spill] sm:$0xff] %v2999_v58  ;;  %3475 = vst [vmem:[#allocation30_spill] sm:$0xff] %v3002_v53 }
 0x11b   :  { %3476 = vst [vmem:[#allocation31_spill] sm:$0xff] %v3005_v29  ;;  %3477 = vst [vmem:[#allocation32_spill] sm:$0xff] %v3008_v28 }
 0x11d   :  { %v2136_v45 = vpop.f32.mrb[32].mxu0  ;;  %v2208_v44 = vpop.f32.mrb[32].mxu1 }
 0x11e   :  { %v921_v1 = vpop.f32.mrb[33].mxu0  ;;  %v1209_v33 = vpop.f32.mrb[33].mxu1  ;;  %v3018_v50 = vadd.f32 %v2136_v45, %v2684_v48  ;;  %v3029_v45 = vadd.f32 %v2208_v44, %v2684_v48 }
 0x11f   :  { %v2978_v36 = vpop.f32.mrb[34].mxu0  ;;  %v2980_v30 = vpop.f32.mrb[34].mxu1  ;;  %v3032_v47 = vadd.f32 %v2684_v48, %v921_v1  ;;  %v3038_v12 = vadd.f32 %v2684_v48, %v1209_v33 }
 0x120   :  { %v2994_v6 = vpop.f32.mrb[35].mxu0  ;;  %v2996_v14 = vpop.f32.mrb[35].mxu1  ;;  %3478 = vst [vmem:[#allocation33_spill] sm:$0xff] %v3018_v50 }
 0x125   :  { %v2140_v41 = vpop.f32.mrb[36].mxu0  ;;  %v2212_v25 = vpop.f32.mrb[36].mxu1 }
 0x126   :  { %v946_v39 = vadd.f32 %v2140_v41, %v2684_v48  ;;  %v1234_v11 = vadd.f32 %v2212_v25, %v2684_v48  ;;  %v937_v52 = vpop.f32.mrb[37].mxu0  ;;  %v1225_v40 = vpop.f32.mrb[37].mxu1 }
 0x127   :  { %v938_v49 = vadd.f32 %v2684_v48, %v937_v52  ;;  %v1226_v28 = vadd.f32 %v2684_v48, %v1225_v40  ;;  %v2141_v44 = vpop.f32.mrb[38].mxu0  ;;  %v2213_v29 = vpop.f32.mrb[38].mxu1  ;;  %v3479_v52 = vmax.f32 %v2691_v51, 0.0  ;;  %v3480_v40 = vmax.f32 %v2698_v54, 0.0 }
 0x128   :  { %v1406_v53 = vmax.f32 %v946_v39, 0.0  ;;  %v1478_v1 = vmax.f32 %v1234_v11, 0.0  ;;  %v949_v58 = vadd.f32 %v2141_v44, %v2684_v48  ;;  %v1237_v41 = vadd.f32 %v2213_v29, %v2684_v48  ;;  %v940_v25 = vpop.f32.mrb[39].mxu0  ;;  %v1228_v23 = vpop.f32.mrb[39].mxu1 }
 0x129   :  { %v1404_v21 = vmax.f32 %v938_v49, 0.0  ;;  %v1476_v0 = vmax.f32 %v1226_v28, 0.0  ;;  %v941_v37 = vadd.f32 %v2684_v48, %v940_v25  ;;  %v1229_v33 = vadd.f32 %v2684_v48, %v1228_v23 }
 0x12a   :  { %v1514_v50 = vmax.f32 %v3479_v52, %v1406_v53  ;;  %v1550_v7 = vmax.f32 %v3480_v40, %v1478_v1  ;;  %v1407_v39 = vmax.f32 %v949_v58, 0.0  ;;  %v1479_v11 = vmax.f32 %v1237_v41, 0.0 }
 0x12b   :  { %v3481_v44 = vmax.f32 %v2701_v55, 0.0  ;;  %v3482_v29 = vmax.f32 %v2704_v56, 0.0  ;;  %v1405_v49 = vmax.f32 %v941_v37, 0.0  ;;  %v1477_v28 = vmax.f32 %v1229_v33, 0.0 }
 0x12c   :  { %v1474_v25 = vmax.f32 %v3029_v45, 0.0  ;;  %v1586_v34 = vmax.f32 %v1514_v50, %v1550_v7  ;;  %v3483_v23 = vmax.f32 %v2707_v57, 0.0  ;;  %v3484_v53 = vmax.f32 %v2715_v61, 0.0 }
 0x12d   :  { %v1512_v17 = vmax.f32 %v3481_v44, %v1404_v21  ;;  %v1548_v26 = vmax.f32 %v3482_v29, %v1476_v0  ;;  %v3061_v58 = vadd.f32 %v2978_v36, %v2684_v48  ;;  %v3485_v21 = vmax.f32 %v2718_v62, 0.0  ;;  %v2144_v1 = vpop.f32.mrb[40].mxu0  ;;  %v2216_v41 = vpop.f32.mrb[40].mxu1 }
 0x12e   :  { %v1515_v51 = vmax.f32 %v3483_v23, %v1407_v39  ;;  %v1551_v54 = vmax.f32 %v3484_v53, %v1479_v11  ;;  %v3486_v37 = vmax.f32 %v2721_v63, 0.0  ;;  %v1990_v7 = vpack.c.bf16 %v1586_v34, %v1586_v34  ;;  %v953_v33 = vpop.f32.mrb[41].mxu0  ;;  %v1241_v52 = vpop.f32.mrb[41].mxu1 }
 0x12f   :  { %v1584_v55 = vmax.f32 %v1512_v17, %v1548_v26  ;;  %v1513_v56 = vmax.f32 %v3485_v21, %v1405_v49  ;;  %v962_v57 = vadd.f32 %v2144_v1, %v2684_v48  ;;  %v1250_v61 = vadd.f32 %v2216_v41, %v2684_v48  ;;  %v2145_v17 = vpop.f32.mrb[42].mxu0  ;;  %v2217_v39 = vpop.f32.mrb[42].mxu1 }
 0x130   :  { %v1549_v0 = vmax.f32 %v3486_v37, %v1477_v28  ;;  %v1587_v50 = vmax.f32 %v1515_v51, %v1551_v54  ;;  %v954_v26 = vadd.f32 %v2684_v48, %v953_v33  ;;  %v1242_v62 = vadd.f32 %v2684_v48, %v1241_v52  ;;  %1767 = vst.msk [vmem:[%s3414_s3 + $0x8] sm:$0xf] %vm1764_vm1, %v1990_v7  ;;  %v956_v29 = vpop.f32.mrb[43].mxu0  ;;  %v1244_v49 = vpop.f32.mrb[43].mxu1 }
 0x131   :  { %v1988_v40 = vpack.c.bf16 %v1584_v55, %v1584_v55  ;;  %v1410_v34 = vmax.f32 %v962_v57, 0.0  ;;  %v1482_v11 = vmax.f32 %v1250_v61, 0.0  ;;  %v965_v44 = vadd.f32 %v2145_v17, %v2684_v48 }
 0x132   :  { %v1585_v36 = vmax.f32 %v1513_v56, %v1549_v0  ;;  %v1991_v63 = vpack.c.bf16 %v1587_v50, %v1587_v50  ;;  %v1408_v23 = vmax.f32 %v954_v26, 0.0  ;;  %v1480_v51 = vmax.f32 %v1242_v62, 0.0 }
 0x133   :  { %1765 = vst.msk [vmem:[%s3414_s3] sm:$0xf] %vm1764_vm1, %v1988_v40  ;;  %v1253_v53 = vadd.f32 %v2217_v39, %v2684_v48  ;;  %v3487_v54 = vmax.f32 %v2728_v2, 0.0  ;;  %v3488_v21 = vmax.f32 %v2731_v3, 0.0  ;;  %v1411_v37 = vmax.f32 %v965_v44, 0.0 }
 0x134   :  { %v1989_v28 = vpack.c.bf16 %v1585_v36, %v1585_v36  ;;  %1768 = vst.msk [vmem:[%s3414_s3 + $0xc] sm:$0xf] %vm1764_vm1, %v1991_v63  ;;  %v957_v0 = vadd.f32 %v2684_v48, %v956_v29  ;;  %v3489_v1 = vmax.f32 %v2734_v4, 0.0  ;;  %v3490_v7 = vmax.f32 %v2737_v5, 0.0 }
 0x135   :  { %v1518_v55 = vmax.f32 %v3487_v54, %v1410_v34  ;;  %v1554_v56 = vmax.f32 %v3488_v21, %v1482_v11  ;;  %v1483_v57 = vmax.f32 %v1253_v53, 0.0  ;;  %v1245_v2 = vadd.f32 %v2684_v48, %v1244_v49  ;;  %v2148_v17 = vpop.f32.mrb[44].mxu0  ;;  %v2220_v39 = vpop.f32.mrb[44].mxu1 }
 0x136   :  { %1766 = vst.msk [vmem:[%s3414_s3 + $0x4] sm:$0xf] %vm1764_vm1, %v1989_v28  ;;  %v1516_v41 = vmax.f32 %v3489_v1, %v1408_v23  ;;  %v1552_v50 = vmax.f32 %v3490_v7, %v1480_v51  ;;  %v3101_v3 = vadd.f32 %v2980_v30, %v2684_v48  ;;  %v3491_v33 = vmax.f32 %v2744_v8, 0.0  ;;  %v969_v8 = vpop.f32.mrb[45].mxu0  ;;  %v1257_v29 = vpop.f32.mrb[45].mxu1  ;;  %v3494_v23 = vld [vmem:[#allocation2_spill] sm:$0xff] }
 0x137   :  { %v1590_v61 = vmax.f32 %v1518_v55, %v1554_v56  ;;  %v1409_v40 = vmax.f32 %v957_v0, 0.0  ;;  %v1400_v36 = vmax.f32 %v3032_v47, 0.0  ;;  %v3492_v4 = vmax.f32 %v2747_v9, 0.0  ;;  %v2149_v54 = vpop.f32.mrb[46].mxu0  ;;  %v2221_v55 = vpop.f32.mrb[46].mxu1 }
 0x138   :  { %v1519_v52 = vmax.f32 %v3491_v33, %v1411_v37  ;;  %v1588_v26 = vmax.f32 %v1516_v41, %v1552_v50  ;;  %v1481_v5 = vmax.f32 %v1245_v2, 0.0  ;;  %v3493_v34 = vmax.f32 %v2750_v10, 0.0  ;;  %v972_v0 = vpop.f32.mrb[47].mxu0  ;;  %v1260_v1 = vpop.f32.mrb[47].mxu1  ;;  %v3496_v2 = vld [vmem:[#allocation3_spill] sm:$0xff] }
 0x139   :  { %v1555_v62 = vmax.f32 %v3492_v4, %v1483_v57  ;;  %v1994_v63 = vpack.c.bf16 %v1590_v61, %v1590_v61  ;;  %v978_v30 = vadd.f32 %v2148_v17, %v2684_v48  ;;  %v1266_v44 = vadd.f32 %v2220_v39, %v2684_v48 }
 0x13a   :  { %v1517_v11 = vmax.f32 %v3493_v34, %v1409_v40  ;;  %v1992_v49 = vpack.c.bf16 %v1588_v26, %v1588_v26  ;;  %v3495_v51 = vmax.f32 %v3494_v23, 0.0  ;;  %v970_v9 = vadd.f32 %v2684_v48, %v969_v8 }
 0x13b   :  { %v1591_v28 = vmax.f32 %v1519_v52, %v1555_v62  ;;  %1771 = vst.msk [vmem:[%s3414_s3 + $0x18] sm:$0xf] %vm1764_vm1, %v1994_v63  ;;  %v1414_v10 = vmax.f32 %v978_v30, 0.0  ;;  %v1486_v21 = vmax.f32 %v1266_v44, 0.0  ;;  %v1258_v56 = vadd.f32 %v2684_v48, %v1257_v29 }
 0x13c   :  { %v1553_v53 = vmax.f32 %v3495_v51, %v1481_v5  ;;  %v981_v37 = vadd.f32 %v2149_v54, %v2684_v48  ;;  %1769 = vst.msk [vmem:[%s3414_s3 + $0x10] sm:$0xf] %vm1764_vm1, %v1992_v49  ;;  %v1412_v50 = vmax.f32 %v970_v9, 0.0  ;;  %v1269_v57 = vadd.f32 %v2221_v55, %v2684_v48 }
 0x13d   :  { %v1995_v41 = vpack.c.bf16 %v1591_v28, %v1591_v28  ;;  %v3497_v61 = vmax.f32 %v3496_v2, 0.0  ;;  %v3498_v52 = vmax.f32 %v2779_v20, 0.0  ;;  %v1484_v26 = vmax.f32 %v1258_v56, 0.0  ;;  %v2152_v23 = vpop.f32.mrb[48].mxu0 }
 0x13e   :  { %v1589_v7 = vmax.f32 %v1517_v11, %v1553_v53  ;;  %v1415_v4 = vmax.f32 %v981_v37, 0.0  ;;  %v3499_v5 = vmax.f32 %v2783_v22, 0.0  ;;  %v1487_v39 = vmax.f32 %v1269_v57, 0.0  ;;  %v985_v55 = vpop.f32.mrb[49].mxu0 }
 0x13f   :  { %v1522_v33 = vmax.f32 %v3497_v61, %v1414_v10  ;;  %v1558_v40 = vmax.f32 %v3498_v52, %v1486_v21  ;;  %1772 = vst.msk [vmem:[%s3414_s3 + $0x1c] sm:$0xf] %vm1764_vm1, %v1995_v41  ;;  %v973_v63 = vadd.f32 %v2684_v48, %v972_v0  ;;  %v3500_v11 = vmax.f32 %v2787_v24, 0.0  ;;  %v3503_v21 = vld [vmem:[#allocation4_spill] sm:$0xff] }
 0x140   :  { %v1993_v62 = vpack.c.bf16 %v1589_v7, %v1589_v7  ;;  %v1520_v17 = vmax.f32 %v3499_v5, %v1412_v50  ;;  %v3501_v20 = vmax.f32 %v2791_v16, 0.0  ;;  %v1261_v8 = vadd.f32 %v2684_v48, %v1260_v1  ;;  %v2224_v16 = vpop.f32.mrb[48].mxu1  ;;  %v3505_v50 = vld [vmem:[#allocation5_spill] sm:$0xff] }
 0x141   :  { %v1594_v34 = vmax.f32 %v1522_v33, %v1558_v40  ;;  %v1556_v30 = vmax.f32 %v3500_v11, %v1484_v26  ;;  %v1472_v29 = vmax.f32 %v3038_v12, 0.0  ;;  %v3145_v49 = vadd.f32 %v2684_v48, %v2994_v6  ;;  %v1273_v10 = vpop.f32.mrb[49].mxu1 }
 0x142   :  { %v1523_v44 = vmax.f32 %v3501_v20, %v1415_v4  ;;  %1770 = vst.msk [vmem:[%s3414_s3 + $0x14] sm:$0xf] %vm1764_vm1, %v1993_v62  ;;  %v3502_v22 = vmax.f32 %v2800_v27, 0.0  ;;  %v1413_v28 = vmax.f32 %v973_v63, 0.0  ;;  %v1485_v9 = vmax.f32 %v1261_v8, 0.0  ;;  %v2153_v27 = vpop.f32.mrb[50].mxu0 }
 0x143   :  { %v1998_v51 = vpack.c.bf16 %v1594_v34, %v1594_v34  ;;  %v1592_v53 = vmax.f32 %v1520_v17, %v1556_v30  ;;  %v994_v54 = vadd.f32 %v2152_v23, %v2684_v48  ;;  %v3504_v56 = vmax.f32 %v3503_v21, 0.0  ;;  %v2225_v41 = vpop.f32.mrb[50].mxu1  ;;  %v988_v52 = vpop.f32.mrb[51].mxu0 }
 0x144   :  { %v1559_v24 = vmax.f32 %v3502_v22, %v1487_v39  ;;  %v1282_v0 = vadd.f32 %v2224_v16, %v2684_v48  ;;  %v986_v1 = vadd.f32 %v2684_v48, %v985_v55  ;;  %v3506_v57 = vmax.f32 %v3505_v50, 0.0  ;;  %v1276_v40 = vpop.f32.mrb[51].mxu1 }
 0x145   :  { %v1521_v37 = vmax.f32 %v3504_v56, %v1413_v28  ;;  %1775 = vst.msk [vmem:[%s3414_s3 + $0x28] sm:$0xf] %vm1764_vm1, %v1998_v51  ;;  %v1996_v7 = vpack.c.bf16 %v1592_v53, %v1592_v53  ;;  %v1418_v61 = vmax.f32 %v994_v54, 0.0  ;;  %v1274_v33 = vadd.f32 %v2684_v48, %v1273_v10  ;;  %v2228_v21 = vpop.f32.mrb[52].mxu1 }
 0x146   :  { %v1595_v6 = vmax.f32 %v1523_v44, %v1559_v24  ;;  %v1557_v2 = vmax.f32 %v3506_v57, %v1485_v9  ;;  %v1490_v4 = vmax.f32 %v1282_v0, 0.0  ;;  %v1416_v62 = vmax.f32 %v986_v1, 0.0  ;;  %v3516_v57 = vld [vmem:[#allocation9_spill] sm:$0xff] }
 0x147   :  { %v997_v5 = vadd.f32 %v2153_v27, %v2684_v48  ;;  %1773 = vst.msk [vmem:[%s3414_s3 + $0x20] sm:$0xf] %vm1764_vm1, %v1996_v7  ;;  %v3507_v39 = vmax.f32 %v2816_v15, 0.0  ;;  %v1488_v34 = vmax.f32 %v1274_v33, 0.0  ;;  %v1285_v11 = vadd.f32 %v2225_v41, %v2684_v48  ;;  %v3510_v15 = vld [vmem:[#allocation6_spill] sm:$0xff]  ;;  %v1289_v7 = vpop.f32.mrb[53].mxu1 }
 0x148   :  { %v1999_v26 = vpack.c.bf16 %v1595_v6, %v1595_v6  ;;  %v1593_v17 = vmax.f32 %v1521_v37, %v1557_v2  ;;  %v3508_v30 = vmax.f32 %v2820_v31, 0.0  ;;  %v3509_v44 = vmax.f32 %v2824_v32, 0.0  ;;  %v3512_v31 = vld [vmem:[#allocation7_spill] sm:$0xff]  ;;  %v2156_v6 = vpop.f32.mrb[52].mxu0  ;;  %v3514_v37 = vld [vmem:[#allocation8_spill] sm:$0xff] }
 0x149   :  { %v1526_v63 = vmax.f32 %v3507_v39, %v1418_v61  ;;  %v1419_v22 = vmax.f32 %v997_v5, 0.0  ;;  %v989_v24 = vadd.f32 %v2684_v48, %v988_v52  ;;  %v3511_v23 = vmax.f32 %v3510_v15, 0.0  ;;  %v1001_v41 = vpop.f32.mrb[53].mxu0  ;;  %v3518_v5 = vld [vmem:[#allocation10_spill] sm:$0xff] }
 0x14a   :  { %1776 = vst.msk [vmem:[%s3414_s3 + $0x2c] sm:$0xf] %vm1764_vm1, %v1999_v26  ;;  %v1562_v20 = vmax.f32 %v3508_v30, %v1490_v4  ;;  %v1524_v8 = vmax.f32 %v3509_v44, %v1416_v62  ;;  %v1997_v28 = vpack.c.bf16 %v1593_v17, %v1593_v17  ;;  %v1491_v51 = vmax.f32 %v1285_v11, 0.0  ;;  %v2229_v26 = vpop.f32.mrb[54].mxu1 }
 0x14b   :  { %v1560_v16 = vmax.f32 %v3511_v23, %v1488_v34  ;;  %v1277_v53 = vadd.f32 %v2684_v48, %v1276_v40  ;;  %v3187_v9 = vadd.f32 %v2684_v48, %v2996_v14  ;;  %v3513_v55 = vmax.f32 %v3512_v31, 0.0  ;;  %v2157_v40 = vpop.f32.mrb[54].mxu0  ;;  %v1292_v11 = vpop.f32.mrb[55].mxu1 }
 0x14c   :  { %v1598_v54 = vmax.f32 %v1526_v63, %v1562_v20  ;;  %v1417_v32 = vmax.f32 %v989_v24, 0.0  ;;  %1774 = vst.msk [vmem:[%s3414_s3 + $0x24] sm:$0xf] %vm1764_vm1, %v1997_v28  ;;  %v3515_v0 = vmax.f32 %v3514_v37, 0.0  ;;  %v1010_v14 = vadd.f32 %v2156_v6, %v2684_v48  ;;  %v1004_v34 = vpop.f32.mrb[55].mxu0  ;;  %v3520_v28 = vld [vmem:[#allocation11_spill] sm:$0xff] }
 0x14d   :  { %v1527_v10 = vmax.f32 %v3513_v55, %v1419_v22  ;;  %v1596_v56 = vmax.f32 %v1524_v8, %v1560_v16  ;;  %v1489_v27 = vmax.f32 %v1277_v53, 0.0  ;;  %v3517_v2 = vmax.f32 %v3516_v57, 0.0 }
 0x14e   :  { %v1563_v1 = vmax.f32 %v3515_v0, %v1491_v51  ;;  %v2002_v50 = vpack.c.bf16 %v1598_v54, %v1598_v54  ;;  %v1298_v33 = vadd.f32 %v2228_v21, %v2684_v48  ;;  %v1002_v52 = vadd.f32 %v2684_v48, %v1001_v41  ;;  %v2232_v41 = vpop.f32.mrb[56].mxu1 }
 0x14f   :  { %v1525_v61 = vmax.f32 %v3517_v2, %v1417_v32  ;;  %v2000_v4 = vpack.c.bf16 %v1596_v56, %v1596_v56  ;;  %v3519_v17 = vmax.f32 %v3518_v5, 0.0  ;;  %v1422_v63 = vmax.f32 %v1010_v14, 0.0  ;;  %v2160_v14 = vpop.f32.mrb[56].mxu0 }
 0x150   :  { %v1599_v62 = vmax.f32 %v1527_v10, %v1563_v1  ;;  %1779 = vst.msk [vmem:[%s3414_s3 + $0x38] sm:$0xf] %vm1764_vm1, %v2002_v50  ;;  %v1494_v30 = vmax.f32 %v1298_v33, 0.0  ;;  %v1420_v20 = vmax.f32 %v1002_v52, 0.0  ;;  %v1290_v44 = vadd.f32 %v2684_v48, %v1289_v7  ;;  %v1017_v33 = vpop.f32.mrb[57].mxu0 }
 0x151   :  { %v1561_v39 = vmax.f32 %v3519_v17, %v1489_v27  ;;  %v1013_v8 = vadd.f32 %v2157_v40, %v2684_v48  ;;  %1777 = vst.msk [vmem:[%s3414_s3 + $0x30] sm:$0xf] %vm1764_vm1, %v2000_v4  ;;  %v3521_v15 = vmax.f32 %v3520_v28, 0.0  ;;  %v1301_v16 = vadd.f32 %v2229_v26, %v2684_v48  ;;  %v2161_v4 = vpop.f32.mrb[58].mxu0  ;;  %v3527_v17 = vld [vmem:[#allocation12_spill] sm:$0xff] }
 0x152   :  { %v2003_v22 = vpack.c.bf16 %v1599_v62, %v1599_v62  ;;  %v3522_v51 = vmax.f32 %v2871_v42, 0.0  ;;  %v3523_v54 = vmax.f32 %v2875_v13, 0.0  ;;  %v1492_v55 = vmax.f32 %v1290_v44, 0.0 }
 0x153   :  { %v1597_v24 = vmax.f32 %v1525_v61, %v1561_v39  ;;  %v1530_v23 = vmax.f32 %v3521_v15, %v1422_v63  ;;  %v1423_v10 = vmax.f32 %v1013_v8, 0.0  ;;  %v1495_v6 = vmax.f32 %v1301_v16, 0.0 }
 0x154   :  { %v1566_v53 = vmax.f32 %v3522_v51, %v1494_v30  ;;  %v1528_v31 = vmax.f32 %v3523_v54, %v1420_v20  ;;  %1780 = vst.msk [vmem:[%s3414_s3 + $0x3c] sm:$0xf] %vm1764_vm1, %v2003_v22  ;;  %v1005_v21 = vadd.f32 %v2684_v48, %v1004_v34  ;;  %v1293_v56 = vadd.f32 %v2684_v48, %v1292_v11  ;;  %v1020_v20 = vpop.f32.mrb[59].mxu0 }
 0x155   :  { %v2001_v32 = vpack.c.bf16 %v1597_v24, %v1597_v24  ;;  %v1403_v37 = vmax.f32 %v3061_v58, 0.0  ;;  %v3524_v0 = vmax.f32 %v2879_v60, 0.0  ;;  %v3525_v1 = vmax.f32 %v2883_v19, 0.0  ;;  %v1305_v60 = vpop.f32.mrb[57].mxu1 }
 0x156   :  { %v1602_v42 = vmax.f32 %v1530_v23, %v1566_v53  ;;  %v3526_v7 = vmax.f32 %v2888_v43, 0.0  ;;  %v1421_v57 = vmax.f32 %v1005_v21, 0.0  ;;  %v1493_v2 = vmax.f32 %v1293_v56, 0.0  ;;  %v2233_v62 = vpop.f32.mrb[58].mxu1  ;;  %v3529_v43 = vld [vmem:[#allocation13_spill] sm:$0xff] }
 0x157   :  { %v1564_v13 = vmax.f32 %v3524_v0, %v1492_v55  ;;  %v1531_v27 = vmax.f32 %v3525_v1, %v1423_v10  ;;  %1778 = vst.msk [vmem:[%s3414_s3 + $0x34] sm:$0xf] %vm1764_vm1, %v2001_v32  ;;  %v1026_v61 = vadd.f32 %v2160_v14, %v2684_v48  ;;  %v1314_v19 = vadd.f32 %v2232_v41, %v2684_v48  ;;  %v1308_v44 = vpop.f32.mrb[59].mxu1  ;;  %v3533_v55 = vld [vmem:[#allocation14_spill] sm:$0xff]  ;;  %v3535_v1 = vld [vmem:[#allocation15_spill] sm:$0xff] }
 0x158   :  { %v1567_v50 = vmax.f32 %v3526_v7, %v1495_v6  ;;  %v2006_v52 = vpack.c.bf16 %v1602_v42, %v1602_v42  ;;  %v1018_v26 = vadd.f32 %v2684_v48, %v1017_v33  ;;  %v3528_v39 = vmax.f32 %v3527_v17, 0.0  ;;  %v2164_v7 = vpop.f32.mrb[60].mxu0 }
 0x159   :  { %v1600_v40 = vmax.f32 %v1528_v31, %v1564_v13  ;;  %v3530_v34 = vmax.f32 %v3529_v43, 0.0  ;;  %v1426_v30 = vmax.f32 %v1026_v61, 0.0  ;;  %v1498_v22 = vmax.f32 %v1314_v19, 0.0 }
 0x15a   :  { %v1603_v5 = vmax.f32 %v1531_v27, %v1567_v50  ;;  %v1529_v63 = vmax.f32 %v3528_v39, %v1421_v57  ;;  %1783 = vst.msk [vmem:[%s3414_s3 + $0x48] sm:$0xf] %vm1764_vm1, %v2006_v52  ;;  %v1424_v24 = vmax.f32 %v1018_v26, 0.0  ;;  %v1306_v28 = vadd.f32 %v2684_v48, %v1305_v60  ;;  %v2236_v50 = vpop.f32.mrb[60].mxu1  ;;  %v3537_v57 = vld [vmem:[#allocation16_spill] sm:$0xff] }
 0x15b   :  { %v1565_v11 = vmax.f32 %v3530_v34, %v1493_v2  ;;  %v2004_v8 = vpack.c.bf16 %v1600_v40, %v1600_v40  ;;  %v3531_v16 = vmax.f32 %v2900_v46, 0.0  ;;  %v1029_v53 = vadd.f32 %v2161_v4, %v2684_v48  ;;  %v1033_v40 = vpop.f32.mrb[61].mxu0  ;;  %v1321_v19 = vpop.f32.mrb[61].mxu1  ;;  %v3541_v34 = vld [vmem:[#allocation18_spill] sm:$0xff] }
 0x15c   :  { %v2007_v15 = vpack.c.bf16 %v1603_v5, %v1603_v5  ;;  %v3532_v54 = vmax.f32 %v2904_v38, 0.0  ;;  %v3534_v10 = vmax.f32 %v3533_v55, 0.0  ;;  %v1496_v6 = vmax.f32 %v1306_v28, 0.0  ;;  %v2237_v43 = vpop.f32.mrb[62].mxu1 }
 0x15d   :  { %v1601_v23 = vmax.f32 %v1529_v63, %v1565_v11  ;;  %v1534_v51 = vmax.f32 %v3531_v16, %v1426_v30  ;;  %1781 = vst.msk [vmem:[%s3414_s3 + $0x40] sm:$0xf] %vm1764_vm1, %v2004_v8  ;;  %v1317_v21 = vadd.f32 %v2233_v62, %v2684_v48  ;;  %v1427_v56 = vmax.f32 %v1029_v53, 0.0  ;;  %v3539_v62 = vld [vmem:[#allocation17_spill] sm:$0xff]  ;;  %v2165_v63 = vpop.f32.mrb[62].mxu0 }
 0x15e   :  { %v1570_v31 = vmax.f32 %v3532_v54, %v1498_v22  ;;  %v1532_v32 = vmax.f32 %v3534_v10, %v1424_v24  ;;  %1784 = vst.msk [vmem:[%s3414_s3 + $0x4c] sm:$0xf] %vm1764_vm1, %v2007_v15  ;;  %v1021_v42 = vadd.f32 %v2684_v48, %v1020_v20  ;;  %v1309_v0 = vadd.f32 %v2684_v48, %v1308_v44  ;;  %v3543_v20 = vld [vmem:[#allocation19_spill] sm:$0xff]  ;;  %v1036_v28 = vpop.f32.mrb[63].mxu0  ;;  %v1324_v15 = vpop.f32.mrb[63].mxu1 }
 0x15f   :  { %v2005_v46 = vpack.c.bf16 %v1601_v23, %v1601_v23  ;;  %v1475_v38 = vmax.f32 %v3101_v3, 0.0  ;;  %v3536_v27 = vmax.f32 %v3535_v1, 0.0  ;;  %v1499_v41 = vmax.f32 %v1317_v21, 0.0 }
 0x160   :  { %v1606_v13 = vmax.f32 %v1534_v51, %v1570_v31  ;;  %v3538_v2 = vmax.f32 %v3537_v57, 0.0  ;;  %v1425_v33 = vmax.f32 %v1021_v42, 0.0  ;;  %v1497_v60 = vmax.f32 %v1309_v0, 0.0  ;;  %v3545_v31 = vld [vmem:[#allocation20_spill] sm:$0xff] }
 0x161   :  { %v1568_v14 = vmax.f32 %v3536_v27, %v1496_v6  ;;  %1782 = vst.msk [vmem:[%s3414_s3 + $0x44] sm:$0xf] %vm1764_vm1, %v2005_v46  ;;  %v1042_v52 = vadd.f32 %v2164_v7, %v2684_v48  ;;  %v3540_v5 = vmax.f32 %v3539_v62, 0.0  ;;  %v1330_v39 = vadd.f32 %v2236_v50, %v2684_v48 }
 0x162   :  { %v1535_v61 = vmax.f32 %v3538_v2, %v1427_v56  ;;  %v2010_v26 = vpack.c.bf16 %v1606_v13, %v1606_v13  ;;  %v3542_v11 = vmax.f32 %v3541_v34, 0.0  ;;  %v3544_v44 = vmax.f32 %v3543_v20, 0.0 }
 0x163   :  { %v1604_v4 = vmax.f32 %v1532_v32, %v1568_v14  ;;  %v1571_v17 = vmax.f32 %v3540_v5, %v1499_v41  ;;  %v1430_v22 = vmax.f32 %v1042_v52, 0.0  ;;  %v1034_v24 = vadd.f32 %v2684_v48, %v1033_v40 }
 0x164   :  { %v1533_v30 = vmax.f32 %v3542_v11, %v1425_v33  ;;  %v1569_v8 = vmax.f32 %v3544_v44, %v1497_v60  ;;  %1787 = vst.msk [vmem:[%s3414_s3 + $0x58] sm:$0xf] %vm1764_vm1, %v2010_v26  ;;  %v1502_v51 = vmax.f32 %v1330_v39, 0.0  ;;  %v1322_v53 = vadd.f32 %v2684_v48, %v1321_v19  ;;  %v2240_v33 = vpop.f32.mrb[64].mxu1 }
 0x165   :  { %v2008_v23 = vpack.c.bf16 %v1604_v4, %v1604_v4  ;;  %v1607_v16 = vmax.f32 %v1535_v61, %v1571_v17  ;;  %v3546_v55 = vmax.f32 %v3545_v31, 0.0  ;;  %v1428_v32 = vmax.f32 %v1034_v24, 0.0  ;;  %v2168_v61 = vpop.f32.mrb[64].mxu0  ;;  %v1337_v4 = vpop.f32.mrb[65].mxu1  ;;  %v3552_v17 = vld [vmem:[#allocation22_spill] sm:$0xff] }
 0x166   :  { %v1605_v54 = vmax.f32 %v1533_v30, %v1569_v8  ;;  %v1045_v6 = vadd.f32 %v2165_v63, %v2684_v48  ;;  %v3547_v46 = vmax.f32 %v2951_v18, 0.0  ;;  %v1500_v42 = vmax.f32 %v1322_v53, 0.0  ;;  %v2241_v11 = vpop.f32.mrb[66].mxu1  ;;  %v3554_v30 = vld [vmem:[#allocation23_spill] sm:$0xff] }
 0x167   :  { %v1538_v10 = vmax.f32 %v3546_v55, %v1430_v22  ;;  %1785 = vst.msk [vmem:[%s3414_s3 + $0x50] sm:$0xf] %vm1764_vm1, %v2008_v23  ;;  %v2011_v21 = vpack.c.bf16 %v1607_v16, %v1607_v16  ;;  %v1333_v0 = vadd.f32 %v2237_v43, %v2684_v48  ;;  %v3548_v1 = vmax.f32 %v2955_v59, 0.0  ;;  %v3550_v59 = vld [vmem:[#allocation21_spill] sm:$0xff] }
 0x168   :  { %v1574_v56 = vmax.f32 %v3547_v46, %v1502_v51  ;;  %v2009_v13 = vpack.c.bf16 %v1605_v54, %v1605_v54  ;;  %v1431_v14 = vmax.f32 %v1045_v6, 0.0  ;;  %v1037_v41 = vadd.f32 %v2684_v48, %v1036_v28  ;;  %v3556_v51 = vld [vmem:[#allocation24_spill] sm:$0xff]  ;;  %v3558_v55 = vld [vmem:[#allocation25_spill] sm:$0xff]  ;;  %v3560_v6 = vld [vmem:[#allocation26_spill] sm:$0xff] }
 0x169   :  { %v1536_v27 = vmax.f32 %v3548_v1, %v1428_v32  ;;  %1788 = vst.msk [vmem:[%s3414_s3 + $0x5c] sm:$0xf] %vm1764_vm1, %v2011_v21  ;;  %v3549_v50 = vmax.f32 %v2959_v35, 0.0  ;;  %v1503_v57 = vmax.f32 %v1333_v0, 0.0  ;;  %v1325_v2 = vadd.f32 %v2684_v48, %v1324_v15  ;;  %v1049_v35 = vpop.f32.mrb[65].mxu0  ;;  %v1340_v15 = vpop.f32.mrb[67].mxu1 }
 0x16a   :  { %v1610_v7 = vmax.f32 %v1538_v10, %v1574_v56  ;;  %1786 = vst.msk [vmem:[%s3414_s3 + $0x54] sm:$0xf] %vm1764_vm1, %v2009_v13  ;;  %v3551_v60 = vmax.f32 %v3550_v59, 0.0  ;;  %v1429_v40 = vmax.f32 %v1037_v41, 0.0  ;;  %v1058_v19 = vadd.f32 %v2168_v61, %v2684_v48  ;;  %v2169_v34 = vpop.f32.mrb[66].mxu0  ;;  %v3562_v41 = vld [vmem:[#allocation27_spill] sm:$0xff] }
 0x16b   :  { %v1572_v18 = vmax.f32 %v3549_v50, %v1500_v42  ;;  %v1346_v26 = vadd.f32 %v2240_v33, %v2684_v48  ;;  %v3553_v39 = vmax.f32 %v3552_v17, 0.0  ;;  %v1501_v43 = vmax.f32 %v1325_v2, 0.0  ;;  %v1052_v28 = vpop.f32.mrb[67].mxu0  ;;  %v3564_v61 = vld [vmem:[#allocation28_spill] sm:$0xff] }
 0x16c   :  { %v1539_v52 = vmax.f32 %v3551_v60, %v1431_v14  ;;  %v2014_v62 = vpack.c.bf16 %v1610_v7, %v1610_v7  ;;  %v3555_v20 = vmax.f32 %v3554_v30, 0.0  ;;  %v1434_v8 = vmax.f32 %v1058_v19, 0.0  ;;  %v2172_v19 = vpop.f32.mrb[68].mxu0 }
 0x16d   :  { %v1608_v5 = vmax.f32 %v1536_v27, %v1572_v18  ;;  %v1575_v63 = vmax.f32 %v3553_v39, %v1503_v57  ;;  %v1506_v22 = vmax.f32 %v1346_v26, 0.0  ;;  %v1050_v24 = vadd.f32 %v2684_v48, %v1049_v35  ;;  %v2244_v26 = vpop.f32.mrb[68].mxu1  ;;  %v1065_v39 = vpop.f32.mrb[69].mxu0 }
 0x16e   :  { %v1537_v44 = vmax.f32 %v3555_v20, %v1429_v40  ;;  %1791 = vst.msk [vmem:[%s3414_s3 + $0x68] sm:$0xf] %vm1764_vm1, %v2014_v62  ;;  %v3557_v53 = vmax.f32 %v3556_v51, 0.0  ;;  %v1338_v31 = vadd.f32 %v2684_v48, %v1337_v4  ;;  %v3559_v10 = vmax.f32 %v3558_v55, 0.0  ;;  %v3566_v4 = vld [vmem:[#allocation29_spill] sm:$0xff] }
 0x16f   :  { %v2012_v23 = vpack.c.bf16 %v1608_v5, %v1608_v5  ;;  %v1611_v16 = vmax.f32 %v1539_v52, %v1575_v63  ;;  %v3561_v21 = vmax.f32 %v3560_v6, 0.0  ;;  %v1432_v56 = vmax.f32 %v1050_v24, 0.0  ;;  %v2324_v52 = vld [vmem:[%s3413_s2] ss:$0 sm:$0xff]  ;;  %v1353_v63 = vpop.f32.mrb[69].mxu1  ;;  %v3570_v24 = vld [vmem:[#allocation31_spill] sm:$0xff] }
 0x170   :  { %v1573_v54 = vmax.f32 %v3557_v53, %v1501_v43  ;;  %v1542_v32 = vmax.f32 %v3559_v10, %v1434_v8  ;;  %v1061_v42 = vadd.f32 %v2169_v34, %v2684_v48  ;;  %v1504_v1 = vmax.f32 %v1338_v31, 0.0  ;;  %v3568_v34 = vld [vmem:[#allocation30_spill] sm:$0xff]  ;;  %v2173_v8 = vpop.f32.mrb[70].mxu0  ;;  %v3572_v10 = vld [vmem:[#allocation32_spill] sm:$0xff] }
 0x171   :  { %v1578_v46 = vmax.f32 %v3561_v21, %v1506_v22  ;;  %1789 = vst.msk [vmem:[%s3414_s3 + $0x60] sm:$0xf] %vm1764_vm1, %v2012_v23  ;;  %v2015_v0 = vpack.c.bf16 %v1611_v16, %v1611_v16  ;;  %v1349_v27 = vadd.f32 %v2241_v11, %v2684_v48  ;;  %v3563_v7 = vmax.f32 %v3562_v41, 0.0  ;;  %v2245_v22 = vpop.f32.mrb[70].mxu1  ;;  %v1068_v53 = vpop.f32.mrb[71].mxu0 }
 0x172   :  { %v1609_v13 = vmax.f32 %v1537_v44, %v1573_v54  ;;  %v1435_v18 = vmax.f32 %v1061_v42, 0.0  ;;  %v1053_v57 = vadd.f32 %v2684_v48, %v1052_v28  ;;  %v3565_v33 = vmax.f32 %v3564_v61, 0.0  ;;  %v1356_v54 = vpop.f32.mrb[71].mxu1 }
 0x173   :  { %v1614_v14 = vmax.f32 %v1542_v32, %v1578_v46  ;;  %v1540_v50 = vmax.f32 %v3563_v7, %v1432_v56  ;;  %1792 = vst.msk [vmem:[%s3414_s3 + $0x6c] sm:$0xf] %vm1764_vm1, %v2015_v0  ;;  %v1507_v60 = vmax.f32 %v1349_v27, 0.0  ;;  %v1341_v40 = vadd.f32 %v2324_v52, %v1340_v15  ;;  %v3574_v46 = vld [vmem:[#allocation33_spill] sm:$0xff] }
 0x174   :  { %v2013_v2 = vpack.c.bf16 %v1609_v13, %v1609_v13  ;;  %v1576_v59 = vmax.f32 %v3565_v33, %v1504_v1  ;;  %v3567_v48 = vmax.f32 %v3566_v4, 0.0  ;;  %v1433_v5 = vmax.f32 %v1053_v57, 0.0 }
 0x175   :  { %v2018_v35 = vpack.c.bf16 %v1614_v14, %v1614_v14  ;;  %v1074_v17 = vadd.f32 %v2324_v52, %v2172_v19  ;;  %v3569_v11 = vmax.f32 %v3568_v34, 0.0  ;;  %v1505_v20 = vmax.f32 %v1341_v40, 0.0 }
 0x176   :  { %v1543_v62 = vmax.f32 %v3567_v48, %v1435_v18  ;;  %1790 = vst.msk [vmem:[%s3414_s3 + $0x64] sm:$0xf] %vm1764_vm1, %v2013_v2  ;;  %v1612_v43 = vmax.f32 %v1540_v50, %v1576_v59  ;;  %v1362_v44 = vadd.f32 %v2324_v52, %v2244_v26  ;;  %v3571_v28 = vmax.f32 %v3570_v24, 0.0 }
 0x177   :  { %v1579_v30 = vmax.f32 %v3569_v11, %v1507_v60  ;;  %1795 = vst.msk [vmem:[%s3414_s3 + $0x78] sm:$0xf] %vm1764_vm1, %v2018_v35  ;;  %v1438_v23 = vmax.f32 %v1074_v17, 0.0  ;;  %v1066_v16 = vadd.f32 %v2324_v52, %v1065_v39  ;;  %v1354_v51 = vadd.f32 %v2324_v52, %v1353_v63 }
 0x178   :  { %v1541_v15 = vmax.f32 %v3571_v28, %v1433_v5  ;;  %v2016_v31 = vpack.c.bf16 %v1612_v43, %v1612_v43  ;;  %v3573_v32 = vmax.f32 %v3572_v10, 0.0  ;;  %v1510_v21 = vmax.f32 %v1362_v44, 0.0 }
 0x179   :  { %v1615_v55 = vmax.f32 %v1543_v62, %v1579_v30  ;;  %v3575_v56 = vmax.f32 %v3574_v46, 0.0  ;;  %v1436_v0 = vmax.f32 %v1066_v16, 0.0  ;;  %v1508_v13 = vmax.f32 %v1354_v51, 0.0 }
 0x17a   :  { %v1577_v6 = vmax.f32 %v3573_v32, %v1505_v20  ;;  %v1077_v1 = vadd.f32 %v2324_v52, %v2173_v8  ;;  %1793 = vst.msk [vmem:[%s3414_s3 + $0x70] sm:$0xf] %vm1764_vm1, %v2016_v31  ;;  %v1582_v41 = vmax.f32 %v1474_v25, %v1510_v21  ;;  %v1365_v7 = vadd.f32 %v2324_v52, %v2245_v22 }
 0x17b   :  { %v1546_v42 = vmax.f32 %v3575_v56, %v1438_v23  ;;  %v2019_v27 = vpack.c.bf16 %v1615_v55, %v1615_v55  ;;  %v1544_v50 = vmax.f32 %v1400_v36, %v1436_v0  ;;  %v1580_v18 = vmax.f32 %v1472_v29, %v1508_v13 }
 0x17c   :  { %v1613_v14 = vmax.f32 %v1541_v15, %v1577_v6  ;;  %v1439_v57 = vmax.f32 %v1077_v1, 0.0  ;;  %v1069_v2 = vadd.f32 %v2324_v52, %v1068_v53  ;;  %v1511_v59 = vmax.f32 %v1365_v7, 0.0 }
 0x17d   :  { %1796 = vst.msk [vmem:[%s3414_s3 + $0x7c] sm:$0xf] %vm1764_vm1, %v2019_v27  ;;  %v1618_v33 = vmax.f32 %v1546_v42, %v1582_v41  ;;  %v1357_v60 = vadd.f32 %v2324_v52, %v1356_v54  ;;  %v1401_v45 = vmax.f32 %v3145_v49, 0.0  ;;  %v1616_v25 = vmax.f32 %v1544_v50, %v1580_v18 }
 0x17e   :  { %v2017_v61 = vpack.c.bf16 %v1613_v14, %v1613_v14  ;;  %v1547_v47 = vmax.f32 %v1403_v37, %v1439_v57  ;;  %v1437_v36 = vmax.f32 %v1069_v2, 0.0  ;;  %v1473_v12 = vmax.f32 %v3187_v9, 0.0 }
 0x17f   :  { %v2022_v29 = vpack.c.bf16 %v1618_v33, %v1618_v33  ;;  %v1583_v40 = vmax.f32 %v1475_v38, %v1511_v59  ;;  %v1509_v19 = vmax.f32 %v1357_v60, 0.0  ;;  %v2020_v52 = vpack.c.bf16 %v1616_v25, %v1616_v25 }
 0x180   :  { %1794 = vst.msk [vmem:[%s3414_s3 + $0x74] sm:$0xf] %vm1764_vm1, %v2017_v61  ;;  %v1545_v26 = vmax.f32 %v1401_v45, %v1437_v36 }
 0x181   :  { %1799 = vst.msk [vmem:[%s3414_s3 + $0x88] sm:$0xf] %vm1764_vm1, %v2022_v29  ;;  %v1619_v58 = vmax.f32 %v1547_v47, %v1583_v40  ;;  %v1581_v49 = vmax.f32 %v1473_v12, %v1509_v19  ;;  %1797 = vst.msk [vmem:[%s3414_s3 + $0x80] sm:$0xf] %vm1764_vm1, %v2020_v52 }
 0x183   :  { %v2023_v9 = vpack.c.bf16 %v1619_v58, %v1619_v58  ;;  %v1617_v37 = vmax.f32 %v1545_v26, %v1581_v49 }
 0x185   :  { %1800 = vst.msk [vmem:[%s3414_s3 + $0x8c] sm:$0xf] %vm1764_vm1, %v2023_v9  ;;  %v2021_v3 = vpack.c.bf16 %v1617_v37, %v1617_v37 }
 0x187   :  { %1798 = vst.msk [vmem:[%s3414_s3 + $0x84] sm:$0xf] %vm1764_vm1, %v2021_v3 }

// kernel: lenet_forward.4
= control target key start
LH: loop header
LB: loop body
LE: loop exit
PB: predicated region body
PF: predicated region fallthrough
CT: control target
= control target key end

     0   :  { %s1259_s1 = inlined_call_operand.vmem [shape: bf16[512,128], index: 1, kind: input, shape index: {}]   ;;  %s1260_s0 = inlined_call_operand.vmem [shape: bf16[128,512], index: 0, kind: input, shape index: {}]   ;;  %s1261_s2 = inlined_call_operand.vmem [shape: f32[1,128], index: 2, kind: input, shape index: {}]   ;;  %s1262_s3 = inlined_call_operand.vmem [shape: bf16[32,128], index: 3, kind: output, shape index: {}]  }
   0x1   :  { %v928_v0 = vld [vmem:[%s1259_s1 + $0x40] sm:$0xff]   ;;  %v932_v4 = vld [vmem:[%s1259_s1 + $0x48] sm:$0xff]   ;;  %v936_v8 = vld [vmem:[%s1259_s1 + $0x50] sm:$0xff]  }
   0x2   :  { %v929_v1 = vld [vmem:[%s1259_s1 + $0xc0] sm:$0xff]   ;;  %800 = vmatprep.subr.bf16.mxu0 %v928_v0  ;;  %v933_v5 = vld [vmem:[%s1259_s1 + $0xc8] sm:$0xff]   ;;  %v937_v9 = vld [vmem:[%s1259_s1 + $0xd0] sm:$0xff]  }
   0x3   :  { %v930_v2 = vld [vmem:[%s1259_s1] sm:$0xff]   ;;  %864 = vmatprep.subr.bf16.mxu1 %v929_v1  ;;  %v934_v6 = vld [vmem:[%s1259_s1 + $0x8] sm:$0xff]   ;;  %v938_v10 = vld [vmem:[%s1259_s1 + $0x10] sm:$0xff]  }
   0x4   :  { %v931_v3 = vld [vmem:[%s1259_s1 + $0x80] sm:$0xff]   ;;  %801 = vmatpush3.bf16.msra.mxu0 %v930_v2  ;;  %v935_v7 = vld [vmem:[%s1259_s1 + $0x88] sm:$0xff]   ;;  %v939_v11 = vld [vmem:[%s1259_s1 + $0x90] sm:$0xff]  }
   0x5   :  { %865 = vmatpush3.bf16.msra.mxu1 %v931_v3  ;;  %802 = vmatprep.subr.bf16.mxu0 %v932_v4  ;;  %v940_v12 = vld [vmem:[%s1259_s1 + $0x58] sm:$0xff]   ;;  %v944_v16 = vld [vmem:[%s1259_s1 + $0x60] sm:$0xff]   ;;  %v948_v20 = vld [vmem:[%s1259_s1 + $0x68] sm:$0xff]  }
   0x6   :  { %866 = vmatprep.subr.bf16.mxu1 %v933_v5  ;;  %v941_v13 = vld [vmem:[%s1259_s1 + $0xd8] sm:$0xff]   ;;  %v945_v17 = vld [vmem:[%s1259_s1 + $0xe0] sm:$0xff]   ;;  %v949_v21 = vld [vmem:[%s1259_s1 + $0xe8] sm:$0xff]  }
   0x7   :  { %v942_v14 = vld [vmem:[%s1259_s1 + $0x18] sm:$0xff]   ;;  %v946_v18 = vld [vmem:[%s1259_s1 + $0x20] sm:$0xff]   ;;  %v950_v22 = vld [vmem:[%s1259_s1 + $0x28] sm:$0xff]  }
   0x8   :  { %803 = vmatpush3.bf16.msra.mxu0 %v934_v6  ;;  %v943_v15 = vld [vmem:[%s1259_s1 + $0x98] sm:$0xff]   ;;  %v947_v19 = vld [vmem:[%s1259_s1 + $0xa0] sm:$0xff]   ;;  %v951_v23 = vld [vmem:[%s1259_s1 + $0xa8] sm:$0xff]  }
   0x9   :  { %867 = vmatpush3.bf16.msra.mxu1 %v935_v7  ;;  %804 = vmatprep.subr.bf16.mxu0 %v936_v8  ;;  %v952_v24 = vld [vmem:[%s1259_s1 + $0x70] sm:$0xff]   ;;  %v956_v28 = vld [vmem:[%s1259_s1 + $0x78] sm:$0xff]   ;;  %v1223_v2 = vld [vmem:[%s1261_s2] ss:$0 sm:$0xff] }
   0xa   :  { %868 = vmatprep.subr.bf16.mxu1 %v937_v9  ;;  %v953_v25 = vld [vmem:[%s1259_s1 + $0xf0] sm:$0xff]   ;;  %v957_v29 = vld [vmem:[%s1259_s1 + $0xf8] sm:$0xff]  }
   0xb   :  { %v954_v26 = vld [vmem:[%s1259_s1 + $0x30] sm:$0xff]   ;;  %v958_v30 = vld [vmem:[%s1259_s1 + $0x38] sm:$0xff]  }
   0xc   :  { %805 = vmatpush3.bf16.msra.mxu0 %v938_v10  ;;  %v955_v27 = vld [vmem:[%s1259_s1 + $0xb0] sm:$0xff]   ;;  %v959_v31 = vld [vmem:[%s1259_s1 + $0xb8] sm:$0xff]  }
   0xd   :  { %869 = vmatpush3.bf16.msra.mxu1 %v939_v11  ;;  %806 = vmatprep.subr.bf16.mxu0 %v940_v12  ;;  %v960_v32 = vld [vmem:[%s1260_s0] ss:$16 sps:$4 sm:$0xff]   ;;  %v962_v33 = vld [vmem:[%s1260_s0 + $0x4] ss:$16 sps:$4 sm:$0xff]   ;;  %v963_v34 = vld [vmem:[%s1260_s0 + $0x8] ss:$16 sps:$4 sm:$0xff]  }
   0xe   :  { %870 = vmatprep.subr.bf16.mxu1 %v941_v13  ;;  %v965_v35 = vld [vmem:[%s1260_s0 + $0xc] ss:$16 sps:$4 sm:$0xff]   ;;  %502 = vmatprep.mubr.bf16.mxu0 %v962_v33  ;;  %v966_v36 = vld [vmem:[%s1260_s0 + $0x24] ss:$16 sps:$4 sm:$0xff]   ;;  %v970_v38 = vld [vmem:[%s1260_s0 + $0x20] ss:$16 sps:$4 sm:$0xff]  }
   0xf   :  { %599 = vmatprep.mubr.bf16.mxu1 %v965_v35  ;;  %v968_v37 = vld [vmem:[%s1260_s0 + $0x2c] ss:$16 sps:$4 sm:$0xff]   ;;  %v971_v39 = vld [vmem:[%s1260_s0 + $0x28] ss:$16 sps:$4 sm:$0xff]   ;;  %v972_v40 = vld [vmem:[%s1260_s0 + $0x44] ss:$16 sps:$4 sm:$0xff]  }
  0x10   :  { %807 = vmatpush3.bf16.msra.mxu0 %v942_v14  ;;  %v974_v41 = vld [vmem:[%s1260_s0 + $0x4c] ss:$16 sps:$4 sm:$0xff]   ;;  %v976_v42 = vld [vmem:[%s1260_s0 + $0x40] ss:$16 sps:$4 sm:$0xff]   ;;  %v977_v43 = vld [vmem:[%s1260_s0 + $0x48] ss:$16 sps:$4 sm:$0xff]  }
  0x11   :  { %871 = vmatpush3.bf16.msra.mxu1 %v943_v15  ;;  %808 = vmatprep.subr.bf16.mxu0 %v944_v16  ;;  %v978_v44 = vld [vmem:[%s1260_s0 + $0x64] ss:$16 sps:$4 sm:$0xff]   ;;  %v980_v45 = vld [vmem:[%s1260_s0 + $0x6c] ss:$16 sps:$4 sm:$0xff]   ;;  %v982_v46 = vld [vmem:[%s1260_s0 + $0x60] ss:$16 sps:$4 sm:$0xff]  }
  0x12   :  { %872 = vmatprep.subr.bf16.mxu1 %v945_v17  ;;  %v983_v47 = vld [vmem:[%s1260_s0 + $0x68] ss:$16 sps:$4 sm:$0xff]   ;;  %v984_v48 = vld [vmem:[%s1260_s0 + $0x84] ss:$16 sps:$4 sm:$0xff]   ;;  %v986_v49 = vld [vmem:[%s1260_s0 + $0x8c] ss:$16 sps:$4 sm:$0xff]  }
  0x13   :  { %v988_v50 = vld [vmem:[%s1260_s0 + $0x80] ss:$16 sps:$4 sm:$0xff]   ;;  %v989_v51 = vld [vmem:[%s1260_s0 + $0x88] ss:$16 sps:$4 sm:$0xff]   ;;  %v990_v52 = vld [vmem:[%s1260_s0 + $0xa4] ss:$16 sps:$4 sm:$0xff]  }
  0x14   :  { %809 = vmatpush3.bf16.msra.mxu0 %v946_v18  ;;  %v992_v53 = vld [vmem:[%s1260_s0 + $0xac] ss:$16 sps:$4 sm:$0xff]   ;;  %v994_v54 = vld [vmem:[%s1260_s0 + $0xa0] ss:$16 sps:$4 sm:$0xff]   ;;  %v995_v55 = vld [vmem:[%s1260_s0 + $0xa8] ss:$16 sps:$4 sm:$0xff]  }
  0x15   :  { %873 = vmatpush3.bf16.msra.mxu1 %v947_v19  ;;  %810 = vmatprep.subr.bf16.mxu0 %v948_v20  ;;  %v996_v56 = vld [vmem:[%s1260_s0 + $0xc4] ss:$16 sps:$4 sm:$0xff]   ;;  %v998_v57 = vld [vmem:[%s1260_s0 + $0xcc] ss:$16 sps:$4 sm:$0xff]   ;;  %v1000_v58 = vld [vmem:[%s1260_s0 + $0xc0] ss:$16 sps:$4 sm:$0xff]  }
  0x16   :  { %874 = vmatprep.subr.bf16.mxu1 %v949_v21  ;;  %v1001_v59 = vld [vmem:[%s1260_s0 + $0xc8] ss:$16 sps:$4 sm:$0xff]   ;;  %v1002_v60 = vld [vmem:[%s1260_s0 + $0xe4] ss:$16 sps:$4 sm:$0xff]   ;;  %v1004_v61 = vld [vmem:[%s1260_s0 + $0xec] ss:$16 sps:$4 sm:$0xff]  }
  0x17   :  { %v1006_v62 = vld [vmem:[%s1260_s0 + $0xe0] ss:$16 sps:$4 sm:$0xff]   ;;  %v1007_v63 = vld [vmem:[%s1260_s0 + $0xe8] ss:$16 sps:$4 sm:$0xff]  }
  0x18   :  { %811 = vmatpush3.bf16.msra.mxu0 %v950_v22 }
  0x19   :  { %875 = vmatpush3.bf16.msra.mxu1 %v951_v23  ;;  %812 = vmatprep.subr.bf16.mxu0 %v952_v24 }
  0x1a   :  { %876 = vmatprep.subr.bf16.mxu1 %v953_v25 }
  0x1c   :  { %813 = vmatpush3.bf16.msra.mxu0 %v954_v26 }
  0x1d   :  { %877 = vmatpush3.bf16.msra.mxu1 %v955_v27  ;;  %814 = vmatprep.subr.bf16.mxu0 %v956_v28 }
  0x1e   :  { %878 = vmatprep.subr.bf16.mxu1 %v957_v29 }
  0x20   :  { %815 = vmatpush3.bf16.msra.mxu0 %v958_v30 }
  0x21   :  { %879 = vmatpush3.bf16.msra.mxu1 %v959_v31 }
  0x23   :  { %503 = vmatmul.mubr.bf16.vlgmr.msra.gmra.mrb[0].mxu0 %v960_v32 }
  0x24   :  { %600 = vmatmul.mubr.bf16.vlgmr.msra.gmra.mrb[0].mxu1 %v963_v34  ;;  %510 = vmatprep.mubr.bf16.mxu0 %v966_v36 }
  0x25   :  { %607 = vmatprep.mubr.bf16.mxu1 %v968_v37 }
  0x2b   :  { %511 = vmatmul.mubr.bf16.gmra.mrb[4].mxu0 %v970_v38 }
  0x2c   :  { %608 = vmatmul.mubr.bf16.gmra.mrb[4].mxu1 %v971_v39  ;;  %518 = vmatprep.mubr.bf16.mxu0 %v972_v40 }
  0x2d   :  { %615 = vmatprep.mubr.bf16.mxu1 %v974_v41 }
  0x33   :  { %519 = vmatmul.mubr.bf16.gmra.mrb[8].mxu0 %v976_v42 }
  0x34   :  { %616 = vmatmul.mubr.bf16.gmra.mrb[8].mxu1 %v977_v43  ;;  %526 = vmatprep.mubr.bf16.mxu0 %v978_v44 }
  0x35   :  { %623 = vmatprep.mubr.bf16.mxu1 %v980_v45 }
  0x3b   :  { %527 = vmatmul.mubr.bf16.gmra.mrb[12].mxu0 %v982_v46 }
  0x3c   :  { %624 = vmatmul.mubr.bf16.gmra.mrb[12].mxu1 %v983_v47  ;;  %534 = vmatprep.mubr.bf16.mxu0 %v984_v48 }
  0x3d   :  { %631 = vmatprep.mubr.bf16.mxu1 %v986_v49 }
  0x43   :  { %535 = vmatmul.mubr.bf16.gmra.mrb[16].mxu0 %v988_v50 }
  0x44   :  { %632 = vmatmul.mubr.bf16.gmra.mrb[16].mxu1 %v989_v51  ;;  %542 = vmatprep.mubr.bf16.mxu0 %v990_v52 }
  0x45   :  { %639 = vmatprep.mubr.bf16.mxu1 %v992_v53 }
  0x4b   :  { %543 = vmatmul.mubr.bf16.gmra.mrb[20].mxu0 %v994_v54 }
  0x4c   :  { %640 = vmatmul.mubr.bf16.gmra.mrb[20].mxu1 %v995_v55  ;;  %550 = vmatprep.mubr.bf16.mxu0 %v996_v56 }
  0x4d   :  { %647 = vmatprep.mubr.bf16.mxu1 %v998_v57 }
  0x53   :  { %551 = vmatmul.mubr.bf16.gmra.mrb[24].mxu0 %v1000_v58 }
  0x54   :  { %648 = vmatmul.mubr.bf16.gmra.mrb[24].mxu1 %v1001_v59  ;;  %558 = vmatprep.mubr.bf16.mxu0 %v1002_v60 }
  0x55   :  { %655 = vmatprep.mubr.bf16.mxu1 %v1004_v61 }
  0x5b   :  { %559 = vmatmul.mubr.bf16.gmra.mrb[28].mxu0 %v1006_v62 }
  0x5c   :  { %656 = vmatmul.mubr.bf16.gmra.mrb[28].mxu1 %v1007_v63 }
  0xf6   :  { %v816_v0 = vpop.f32.mrb[0].mxu0 }
  0xf7   :  { %v880_v1 = vpop.f32.mrb[0].mxu1  ;;  %v817_v3 = vpop.f32.mrb[1].mxu0 }
  0xf8   :  { %v818_v4 = vadd.f32 %v817_v3, %v816_v0  ;;  %v881_v5 = vpop.f32.mrb[1].mxu1  ;;  %v819_v6 = vpop.f32.mrb[2].mxu0 }
  0xf9   :  { %v882_v7 = vadd.f32 %v881_v5, %v880_v1  ;;  %v883_v8 = vpop.f32.mrb[2].mxu1  ;;  %v820_v9 = vpop.f32.mrb[3].mxu0 }
  0xfa   :  { %v505_v10 = vadd.f32 %v818_v4, %v1223_v2  ;;  %v821_v11 = vadd.f32 %v820_v9, %v819_v6  ;;  %v884_v12 = vpop.f32.mrb[3].mxu1 }
  0xfb   :  { %v885_v13 = vadd.f32 %v884_v12, %v883_v8 }
  0xfc   :  { %v602_v14 = vadd.f32 %v882_v7, %v505_v10  ;;  %v508_v15 = vadd.f32 %v821_v11, %v1223_v2 }
  0xfe   :  { %v605_v16 = vadd.f32 %v885_v13, %v508_v15  ;;  %v822_v17 = vpop.f32.mrb[4].mxu0  ;;  %v664_v48 = vmax.f32 %v602_v14, 0.0 }
  0xff   :  { %v886_v18 = vpop.f32.mrb[4].mxu1  ;;  %v823_v19 = vpop.f32.mrb[5].mxu0 }
 0x100   :  { %v824_v20 = vadd.f32 %v823_v19, %v822_v17  ;;  %v887_v21 = vpop.f32.mrb[5].mxu1  ;;  %v825_v22 = vpop.f32.mrb[6].mxu0  ;;  %v665_v54 = vmax.f32 %v605_v16, 0.0 }
 0x101   :  { %v888_v23 = vadd.f32 %v887_v21, %v886_v18  ;;  %v889_v24 = vpop.f32.mrb[6].mxu1  ;;  %v826_v25 = vpop.f32.mrb[7].mxu0 }
 0x102   :  { %v513_v26 = vadd.f32 %v824_v20, %v1223_v2  ;;  %v827_v27 = vadd.f32 %v826_v25, %v825_v22  ;;  %v890_v28 = vpop.f32.mrb[7].mxu1 }
 0x103   :  { %v891_v29 = vadd.f32 %v890_v28, %v889_v24 }
 0x104   :  { %v610_v30 = vadd.f32 %v888_v23, %v513_v26  ;;  %v516_v31 = vadd.f32 %v827_v27, %v1223_v2 }
 0x106   :  { %v613_v32 = vadd.f32 %v891_v29, %v516_v31  ;;  %v828_v33 = vpop.f32.mrb[8].mxu0  ;;  %v666_v7 = vmax.f32 %v610_v30, 0.0 }
 0x107   :  { %v892_v34 = vpop.f32.mrb[8].mxu1  ;;  %v829_v35 = vpop.f32.mrb[9].mxu0 }
 0x108   :  { %v830_v36 = vadd.f32 %v829_v35, %v828_v33  ;;  %v893_v37 = vpop.f32.mrb[9].mxu1  ;;  %v831_v38 = vpop.f32.mrb[10].mxu0  ;;  %v667_v13 = vmax.f32 %v613_v32, 0.0 }
 0x109   :  { %v894_v39 = vadd.f32 %v893_v37, %v892_v34  ;;  %v895_v40 = vpop.f32.mrb[10].mxu1  ;;  %v832_v41 = vpop.f32.mrb[11].mxu0 }
 0x10a   :  { %v521_v42 = vadd.f32 %v830_v36, %v1223_v2  ;;  %v833_v43 = vadd.f32 %v832_v41, %v831_v38  ;;  %v896_v44 = vpop.f32.mrb[11].mxu1 }
 0x10b   :  { %v897_v45 = vadd.f32 %v896_v44, %v895_v40 }
 0x10c   :  { %v618_v46 = vadd.f32 %v894_v39, %v521_v42  ;;  %v524_v47 = vadd.f32 %v833_v43, %v1223_v2 }
 0x10e   :  { %v668_v49 = vmax.f32 %v618_v46, 0.0  ;;  %v621_v50 = vadd.f32 %v897_v45, %v524_v47  ;;  %v834_v51 = vpop.f32.mrb[12].mxu0 }
 0x10f   :  { %v898_v52 = vpop.f32.mrb[12].mxu1  ;;  %v835_v53 = vpop.f32.mrb[13].mxu0 }
 0x110   :  { %v1231_v55 = vmax.f32 %v664_v48, %v668_v49  ;;  %v669_v56 = vmax.f32 %v621_v50, 0.0  ;;  %v836_v57 = vadd.f32 %v835_v53, %v834_v51  ;;  %v899_v58 = vpop.f32.mrb[13].mxu1  ;;  %v837_v59 = vpop.f32.mrb[14].mxu0 }
 0x111   :  { %v900_v60 = vadd.f32 %v899_v58, %v898_v52  ;;  %v901_v61 = vpop.f32.mrb[14].mxu1  ;;  %v838_v62 = vpop.f32.mrb[15].mxu0 }
 0x112   :  { %v1233_v63 = vmax.f32 %v665_v54, %v669_v56  ;;  %v529_v0 = vadd.f32 %v836_v57, %v1223_v2  ;;  %v839_v1 = vadd.f32 %v838_v62, %v837_v59  ;;  %v902_v3 = vpop.f32.mrb[15].mxu1 }
 0x113   :  { %v903_v4 = vadd.f32 %v902_v3, %v901_v61 }
 0x114   :  { %v626_v5 = vadd.f32 %v900_v60, %v529_v0  ;;  %v532_v6 = vadd.f32 %v839_v1, %v1223_v2 }
 0x116   :  { %v670_v8 = vmax.f32 %v626_v5, 0.0  ;;  %v629_v9 = vadd.f32 %v903_v4, %v532_v6  ;;  %v840_v10 = vpop.f32.mrb[16].mxu0 }
 0x117   :  { %v904_v11 = vpop.f32.mrb[16].mxu1  ;;  %v841_v12 = vpop.f32.mrb[17].mxu0 }
 0x118   :  { %v1237_v14 = vmax.f32 %v666_v7, %v670_v8  ;;  %v671_v15 = vmax.f32 %v629_v9, 0.0  ;;  %v842_v16 = vadd.f32 %v841_v12, %v840_v10  ;;  %v905_v17 = vpop.f32.mrb[17].mxu1  ;;  %v843_v18 = vpop.f32.mrb[18].mxu0 }
 0x119   :  { %v906_v19 = vadd.f32 %v905_v17, %v904_v11  ;;  %v907_v20 = vpop.f32.mrb[18].mxu1  ;;  %v844_v21 = vpop.f32.mrb[19].mxu0 }
 0x11a   :  { %v1239_v22 = vmax.f32 %v667_v13, %v671_v15  ;;  %v537_v23 = vadd.f32 %v842_v16, %v1223_v2  ;;  %v845_v24 = vadd.f32 %v844_v21, %v843_v18  ;;  %v908_v25 = vpop.f32.mrb[19].mxu1 }
 0x11b   :  { %v909_v26 = vadd.f32 %v908_v25, %v907_v20 }
 0x11c   :  { %v634_v27 = vadd.f32 %v906_v19, %v537_v23  ;;  %v540_v28 = vadd.f32 %v845_v24, %v1223_v2 }
 0x11e   :  { %v637_v29 = vadd.f32 %v909_v26, %v540_v28  ;;  %v846_v30 = vpop.f32.mrb[20].mxu0  ;;  %v672_v62 = vmax.f32 %v634_v27, 0.0 }
 0x11f   :  { %v910_v31 = vpop.f32.mrb[20].mxu1  ;;  %v847_v32 = vpop.f32.mrb[21].mxu0 }
 0x120   :  { %v848_v33 = vadd.f32 %v847_v32, %v846_v30  ;;  %v911_v34 = vpop.f32.mrb[21].mxu1  ;;  %v849_v35 = vpop.f32.mrb[22].mxu0  ;;  %v673_v6 = vmax.f32 %v637_v29, 0.0 }
 0x121   :  { %v912_v36 = vadd.f32 %v911_v34, %v910_v31  ;;  %v913_v37 = vpop.f32.mrb[22].mxu1  ;;  %v850_v38 = vpop.f32.mrb[23].mxu0 }
 0x122   :  { %v545_v39 = vadd.f32 %v848_v33, %v1223_v2  ;;  %v851_v40 = vadd.f32 %v850_v38, %v849_v35  ;;  %v914_v41 = vpop.f32.mrb[23].mxu1 }
 0x123   :  { %v915_v42 = vadd.f32 %v914_v41, %v913_v37 }
 0x124   :  { %v642_v43 = vadd.f32 %v912_v36, %v545_v39  ;;  %v548_v44 = vadd.f32 %v851_v40, %v1223_v2 }
 0x126   :  { %v645_v45 = vadd.f32 %v915_v42, %v548_v44  ;;  %v852_v46 = vpop.f32.mrb[24].mxu0  ;;  %v674_v26 = vmax.f32 %v642_v43, 0.0 }
 0x127   :  { %v916_v47 = vpop.f32.mrb[24].mxu1  ;;  %v853_v48 = vpop.f32.mrb[25].mxu0 }
 0x128   :  { %v854_v49 = vadd.f32 %v853_v48, %v852_v46  ;;  %v917_v50 = vpop.f32.mrb[25].mxu1  ;;  %v855_v51 = vpop.f32.mrb[26].mxu0  ;;  %v675_v30 = vmax.f32 %v645_v45, 0.0 }
 0x129   :  { %v918_v52 = vadd.f32 %v917_v50, %v916_v47  ;;  %v919_v53 = vpop.f32.mrb[26].mxu1  ;;  %v856_v54 = vpop.f32.mrb[27].mxu0 }
 0x12a   :  { %v553_v56 = vadd.f32 %v854_v49, %v1223_v2  ;;  %v857_v57 = vadd.f32 %v856_v54, %v855_v51  ;;  %v920_v58 = vpop.f32.mrb[27].mxu1 }
 0x12b   :  { %v921_v59 = vadd.f32 %v920_v58, %v919_v53 }
 0x12c   :  { %v650_v60 = vadd.f32 %v918_v52, %v553_v56  ;;  %v556_v61 = vadd.f32 %v857_v57, %v1223_v2 }
 0x12e   :  { %v676_v0 = vmax.f32 %v650_v60, 0.0  ;;  %v653_v1 = vadd.f32 %v921_v59, %v556_v61  ;;  %v858_v3 = vpop.f32.mrb[28].mxu0 }
 0x12f   :  { %v922_v4 = vpop.f32.mrb[28].mxu1  ;;  %v859_v5 = vpop.f32.mrb[29].mxu0 }
 0x130   :  { %v684_v7 = vmax.f32 %v672_v62, %v676_v0  ;;  %v677_v8 = vmax.f32 %v653_v1, 0.0  ;;  %v860_v9 = vadd.f32 %v859_v5, %v858_v3  ;;  %v923_v10 = vpop.f32.mrb[29].mxu1  ;;  %v861_v11 = vpop.f32.mrb[30].mxu0 }
 0x131   :  { %v924_v12 = vadd.f32 %v923_v10, %v922_v4  ;;  %v925_v13 = vpop.f32.mrb[30].mxu1  ;;  %v862_v15 = vpop.f32.mrb[31].mxu0 }
 0x132   :  { %v688_v16 = vmax.f32 %v1231_v55, %v684_v7  ;;  %v685_v17 = vmax.f32 %v673_v6, %v677_v8  ;;  %v561_v18 = vadd.f32 %v860_v9, %v1223_v2  ;;  %v863_v19 = vadd.f32 %v862_v15, %v861_v11  ;;  %v926_v20 = vpop.f32.mrb[31].mxu1 }
 0x133   :  { %v927_v21 = vadd.f32 %v926_v20, %v925_v13 }
 0x134   :  { %v689_v23 = vmax.f32 %v1233_v63, %v685_v17  ;;  %v658_v24 = vadd.f32 %v924_v12, %v561_v18  ;;  %v564_v25 = vadd.f32 %v863_v19, %v1223_v2 }
 0x136   :  { %v792_v27 = vpack.c.bf16 %v689_v23, %v688_v16  ;;  %v678_v28 = vmax.f32 %v658_v24, 0.0  ;;  %v661_v29 = vadd.f32 %v927_v21, %v564_v25 }
 0x138   :  { %793 = vst [vmem:[%s1262_s3] sm:$0xff] %v792_v27   ;;  %v686_v55 = vmax.f32 %v674_v26, %v678_v28  ;;  %v679_v31 = vmax.f32 %v661_v29, 0.0 }
 0x13a   :  { %v690_v32 = vmax.f32 %v1237_v14, %v686_v55  ;;  %v687_v33 = vmax.f32 %v675_v30, %v679_v31 }
 0x13c   :  { %v691_v34 = vmax.f32 %v1239_v22, %v687_v33 }
 0x13e   :  { %v797_v63 = vpack.c.bf16 %v691_v34, %v690_v32 }
 0x140   :  { %799 = vst [vmem:[%s1262_s3 + $0x8] sm:$0xff] %v797_v63  }

// kernel: lenet_forward.5
= control target key start
LH: loop header
LB: loop body
LE: loop exit
PB: predicated region body
PF: predicated region fallthrough
CT: control target
= control target key end

     0   :  { %s7409_s1 = inlined_call_operand.vmem [shape: bf16[2048,512], index: 1, kind: input, shape index: {}]   ;;  %s7410_s0 = inlined_call_operand.vmem [shape: bf16[8,2048], index: 0, kind: input, shape index: {}]   ;;  %s7411_s3 = inlined_call_operand.vmem [shape: bf16[512,128], index: 3, kind: input, shape index: {}]   ;;  %s7412_s2 = inlined_call_operand.vmem [shape: f32[1,512], index: 2, kind: input, shape index: {}]   ;;  %s7413_s4 = inlined_call_operand.vmem [shape: f32[1,128], index: 4, kind: input, shape index: {}]   ;;  %s7414_s5 = inlined_call_operand.vmem [shape: f32[8,128], index: 5, kind: output, shape index: {}]  }
   0x1   :  { %v4856_v0 = vld [vmem:[%s7409_s1 + $0x4] ss:$16 sps:$4 sm:$0xff]   ;;  %v4858_v1 = vld [vmem:[%s7409_s1 + $0xc] ss:$16 sps:$4 sm:$0xff]   ;;  %v4860_v2 = vld [vmem:[%s7409_s1] ss:$16 sps:$4 sm:$0xff]  }
   0x2   :  { %3179 = vmatprep.subr.bf16.mxu0 %v4856_v0  ;;  %v4861_v3 = vld [vmem:[%s7409_s1 + $0x8] ss:$16 sps:$4 sm:$0xff]   ;;  %3507 = vmatprep.subr.bf16.mxu1 %v4858_v1  ;;  %v4862_v4 = vld [vmem:[%s7409_s1 + $0x24] ss:$16 sps:$4 sm:$0xff]   ;;  %v4864_v5 = vld [vmem:[%s7409_s1 + $0x2c] ss:$16 sps:$4 sm:$0xff]  }
   0x3   :  { %3180 = vmatpush1.bf16.msra.mxu0 %v4860_v2  ;;  %3508 = vmatpush1.bf16.msra.mxu1 %v4861_v3  ;;  %v4866_v6 = vld [vmem:[%s7409_s1 + $0x20] ss:$16 sps:$4 sm:$0xff]   ;;  %v4867_v7 = vld [vmem:[%s7409_s1 + $0x28] ss:$16 sps:$4 sm:$0xff]   ;;  %v4868_v8 = vld [vmem:[%s7409_s1 + $0x44] ss:$16 sps:$4 sm:$0xff]  }
   0x4   :  { %3181 = vmatprep.subr.bf16.mxu0 %v4862_v4  ;;  %3509 = vmatprep.subr.bf16.mxu1 %v4864_v5  ;;  %v4870_v9 = vld [vmem:[%s7409_s1 + $0x4c] ss:$16 sps:$4 sm:$0xff]   ;;  %v4872_v10 = vld [vmem:[%s7409_s1 + $0x40] ss:$16 sps:$4 sm:$0xff]   ;;  %v4873_v11 = vld [vmem:[%s7409_s1 + $0x48] ss:$16 sps:$4 sm:$0xff]  }
   0x5   :  { %v4874_v12 = vld [vmem:[%s7409_s1 + $0x64] ss:$16 sps:$4 sm:$0xff]   ;;  %v4876_v13 = vld [vmem:[%s7409_s1 + $0x6c] ss:$16 sps:$4 sm:$0xff]   ;;  %v4878_v14 = vld [vmem:[%s7409_s1 + $0x60] ss:$16 sps:$4 sm:$0xff]  }
   0x6   :  { %v4879_v15 = vld [vmem:[%s7409_s1 + $0x68] ss:$16 sps:$4 sm:$0xff]   ;;  %v4880_v16 = vld [vmem:[%s7409_s1 + $0x84] ss:$16 sps:$4 sm:$0xff]   ;;  %v4882_v17 = vld [vmem:[%s7409_s1 + $0x8c] ss:$16 sps:$4 sm:$0xff]  }
   0x7   :  { %3182 = vmatpush1.bf16.msra.mxu0 %v4866_v6  ;;  %3510 = vmatpush1.bf16.msra.mxu1 %v4867_v7  ;;  %v4884_v18 = vld [vmem:[%s7409_s1 + $0x80] ss:$16 sps:$4 sm:$0xff]   ;;  %v4885_v19 = vld [vmem:[%s7409_s1 + $0x88] ss:$16 sps:$4 sm:$0xff]   ;;  %v4886_v20 = vld [vmem:[%s7409_s1 + $0xa4] ss:$16 sps:$4 sm:$0xff]  }
   0x8   :  { %3183 = vmatprep.subr.bf16.mxu0 %v4868_v8  ;;  %3511 = vmatprep.subr.bf16.mxu1 %v4870_v9  ;;  %v4888_v21 = vld [vmem:[%s7409_s1 + $0xac] ss:$16 sps:$4 sm:$0xff]   ;;  %v4890_v22 = vld [vmem:[%s7409_s1 + $0xa0] ss:$16 sps:$4 sm:$0xff]   ;;  %v4891_v23 = vld [vmem:[%s7409_s1 + $0xa8] ss:$16 sps:$4 sm:$0xff]  }
   0x9   :  { %v4892_v24 = vld [vmem:[%s7409_s1 + $0xc4] ss:$16 sps:$4 sm:$0xff]   ;;  %v4894_v25 = vld [vmem:[%s7409_s1 + $0xcc] ss:$16 sps:$4 sm:$0xff]   ;;  %v4896_v26 = vld [vmem:[%s7409_s1 + $0xc0] ss:$16 sps:$4 sm:$0xff]  }
   0xa   :  { %v4897_v27 = vld [vmem:[%s7409_s1 + $0xc8] ss:$16 sps:$4 sm:$0xff]   ;;  %v4898_v28 = vld [vmem:[%s7409_s1 + $0xe4] ss:$16 sps:$4 sm:$0xff]   ;;  %v4900_v29 = vld [vmem:[%s7409_s1 + $0xec] ss:$16 sps:$4 sm:$0xff]  }
   0xb   :  { %3184 = vmatpush1.bf16.msra.mxu0 %v4872_v10  ;;  %3512 = vmatpush1.bf16.msra.mxu1 %v4873_v11  ;;  %v4902_v30 = vld [vmem:[%s7409_s1 + $0xe0] ss:$16 sps:$4 sm:$0xff]   ;;  %v4903_v31 = vld [vmem:[%s7409_s1 + $0xe8] ss:$16 sps:$4 sm:$0xff]   ;;  %v4904_v32 = vld [vmem:[%s7409_s1 + $0x104] ss:$16 sps:$4 sm:$0xff]  }
   0xc   :  { %3185 = vmatprep.subr.bf16.mxu0 %v4874_v12  ;;  %3513 = vmatprep.subr.bf16.mxu1 %v4876_v13  ;;  %v4906_v33 = vld [vmem:[%s7409_s1 + $0x10c] ss:$16 sps:$4 sm:$0xff]   ;;  %v4908_v34 = vld [vmem:[%s7409_s1 + $0x100] ss:$16 sps:$4 sm:$0xff]   ;;  %v4909_v35 = vld [vmem:[%s7409_s1 + $0x108] ss:$16 sps:$4 sm:$0xff]  }
   0xd   :  { %v4910_v36 = vld [vmem:[%s7409_s1 + $0x124] ss:$16 sps:$4 sm:$0xff]   ;;  %v4912_v37 = vld [vmem:[%s7409_s1 + $0x12c] ss:$16 sps:$4 sm:$0xff]   ;;  %v4914_v38 = vld [vmem:[%s7409_s1 + $0x120] ss:$16 sps:$4 sm:$0xff]  }
   0xe   :  { %v4915_v39 = vld [vmem:[%s7409_s1 + $0x128] ss:$16 sps:$4 sm:$0xff]   ;;  %v4916_v40 = vld [vmem:[%s7409_s1 + $0x144] ss:$16 sps:$4 sm:$0xff]   ;;  %v4918_v41 = vld [vmem:[%s7409_s1 + $0x14c] ss:$16 sps:$4 sm:$0xff]  }
   0xf   :  { %3186 = vmatpush1.bf16.msra.mxu0 %v4878_v14  ;;  %3514 = vmatpush1.bf16.msra.mxu1 %v4879_v15  ;;  %v4920_v42 = vld [vmem:[%s7409_s1 + $0x140] ss:$16 sps:$4 sm:$0xff]   ;;  %v4921_v43 = vld [vmem:[%s7409_s1 + $0x148] ss:$16 sps:$4 sm:$0xff]   ;;  %v4922_v44 = vld [vmem:[%s7409_s1 + $0x164] ss:$16 sps:$4 sm:$0xff]  }
  0x10   :  { %3187 = vmatprep.subr.bf16.mxu0 %v4880_v16  ;;  %3515 = vmatprep.subr.bf16.mxu1 %v4882_v17  ;;  %v4924_v45 = vld [vmem:[%s7409_s1 + $0x16c] ss:$16 sps:$4 sm:$0xff]   ;;  %v21_v46 = vld [vmem:[%s7410_s0] sm:$0xff]  ;;  %v4927_v49 = vld [vmem:[%s7409_s1 + $0x168] ss:$16 sps:$4 sm:$0xff]  }
  0x11   :  { %v4926_v47 = vld [vmem:[%s7409_s1 + $0x160] ss:$16 sps:$4 sm:$0xff]   ;;  %v4192_v48 = vcombine.high %v21_v46, %v21_v46  ;;  %v4928_v50 = vld [vmem:[%s7409_s1 + $0x184] ss:$16 sps:$4 sm:$0xff]   ;;  %v4930_v51 = vld [vmem:[%s7409_s1 + $0x18c] ss:$16 sps:$4 sm:$0xff]   ;;  %v4191_v4 = vcombine.low %v21_v46, %v21_v46 }
  0x12   :  { %v4932_v52 = vld [vmem:[%s7409_s1 + $0x180] ss:$16 sps:$4 sm:$0xff]   ;;  %v4933_v53 = vld [vmem:[%s7409_s1 + $0x188] ss:$16 sps:$4 sm:$0xff]   ;;  %v4934_v54 = vld [vmem:[%s7409_s1 + $0x1a4] ss:$16 sps:$4 sm:$0xff]  }
  0x13   :  { %3188 = vmatpush1.bf16.msra.mxu0 %v4884_v18  ;;  %3516 = vmatpush1.bf16.msra.mxu1 %v4885_v19  ;;  %v4936_v55 = vld [vmem:[%s7409_s1 + $0x1ac] ss:$16 sps:$4 sm:$0xff]   ;;  %v4938_v56 = vld [vmem:[%s7409_s1 + $0x1a0] ss:$16 sps:$4 sm:$0xff]   ;;  %v4939_v57 = vld [vmem:[%s7409_s1 + $0x1a8] ss:$16 sps:$4 sm:$0xff]  }
  0x14   :  { %3189 = vmatprep.subr.bf16.mxu0 %v4886_v20  ;;  %3517 = vmatprep.subr.bf16.mxu1 %v4888_v21  ;;  %v4940_v58 = vld [vmem:[%s7409_s1 + $0x1c4] ss:$16 sps:$4 sm:$0xff]   ;;  %v4942_v59 = vld [vmem:[%s7409_s1 + $0x1cc] ss:$16 sps:$4 sm:$0xff]   ;;  %v4944_v60 = vld [vmem:[%s7409_s1 + $0x1c0] ss:$16 sps:$4 sm:$0xff]  }
  0x15   :  { %3211 = vmatprep.mubr.bf16.mxu0 %v4192_v48  ;;  %3539 = vmatprep.mubr.bf16.mxu1 %v4192_v48  ;;  %v4945_v61 = vld [vmem:[%s7409_s1 + $0x1c8] ss:$16 sps:$4 sm:$0xff]   ;;  %v4946_v62 = vld [vmem:[%s7409_s1 + $0x1e4] ss:$16 sps:$4 sm:$0xff]   ;;  %v4948_v63 = vld [vmem:[%s7409_s1 + $0x1ec] ss:$16 sps:$4 sm:$0xff]  }
  0x16   :  { %v4950_v0 = vld [vmem:[%s7409_s1 + $0x1e0] ss:$16 sps:$4 sm:$0xff]   ;;  %v4951_v1 = vld [vmem:[%s7409_s1 + $0x1e8] ss:$16 sps:$4 sm:$0xff]   ;;  %v4956_v2 = vld [vmem:[%s7409_s1 + $0x204] ss:$16 sps:$4 sm:$0xff]  }
  0x17   :  { %3190 = vmatpush1.bf16.msra.mxu0 %v4890_v22  ;;  %3518 = vmatpush1.bf16.msra.mxu1 %v4891_v23  ;;  %v4959_v3 = vld [vmem:[%s7409_s1 + $0x20c] ss:$16 sps:$4 sm:$0xff]   ;;  %v4954_v5 = vld [vmem:[%s7409_s1 + $0x200] ss:$16 sps:$4 sm:$0xff]   ;;  %v4957_v6 = vld [vmem:[%s7409_s1 + $0x208] ss:$16 sps:$4 sm:$0xff]  }
  0x18   :  { %3191 = vmatprep.subr.bf16.mxu0 %v4892_v24  ;;  %3519 = vmatprep.subr.bf16.mxu1 %v4894_v25  ;;  %v4962_v7 = vld [vmem:[%s7409_s1 + $0x224] ss:$16 sps:$4 sm:$0xff]   ;;  %v4965_v8 = vld [vmem:[%s7409_s1 + $0x22c] ss:$16 sps:$4 sm:$0xff]   ;;  %v4960_v9 = vld [vmem:[%s7409_s1 + $0x220] ss:$16 sps:$4 sm:$0xff]  }
  0x19   :  { %v4963_v10 = vld [vmem:[%s7409_s1 + $0x228] ss:$16 sps:$4 sm:$0xff]   ;;  %v4968_v11 = vld [vmem:[%s7409_s1 + $0x244] ss:$16 sps:$4 sm:$0xff]   ;;  %v4971_v12 = vld [vmem:[%s7409_s1 + $0x24c] ss:$16 sps:$4 sm:$0xff]  }
  0x1a   :  { %v4966_v13 = vld [vmem:[%s7409_s1 + $0x240] ss:$16 sps:$4 sm:$0xff]   ;;  %v4969_v14 = vld [vmem:[%s7409_s1 + $0x248] ss:$16 sps:$4 sm:$0xff]   ;;  %v4974_v15 = vld [vmem:[%s7409_s1 + $0x264] ss:$16 sps:$4 sm:$0xff]  }
  0x1b   :  { %3192 = vmatpush1.bf16.msra.mxu0 %v4896_v26  ;;  %3520 = vmatpush1.bf16.msra.mxu1 %v4897_v27  ;;  %v4977_v16 = vld [vmem:[%s7409_s1 + $0x26c] ss:$16 sps:$4 sm:$0xff]   ;;  %v4972_v17 = vld [vmem:[%s7409_s1 + $0x260] ss:$16 sps:$4 sm:$0xff]   ;;  %v4975_v18 = vld [vmem:[%s7409_s1 + $0x268] ss:$16 sps:$4 sm:$0xff]  }
  0x1c   :  { %3193 = vmatprep.subr.bf16.mxu0 %v4898_v28  ;;  %3521 = vmatprep.subr.bf16.mxu1 %v4900_v29  ;;  %v4980_v19 = vld [vmem:[%s7409_s1 + $0x284] ss:$16 sps:$4 sm:$0xff]   ;;  %v4983_v20 = vld [vmem:[%s7409_s1 + $0x28c] ss:$16 sps:$4 sm:$0xff]   ;;  %v4978_v21 = vld [vmem:[%s7409_s1 + $0x280] ss:$16 sps:$4 sm:$0xff]  }
  0x1d   :  { %v4981_v22 = vld [vmem:[%s7409_s1 + $0x288] ss:$16 sps:$4 sm:$0xff]   ;;  %v4986_v23 = vld [vmem:[%s7409_s1 + $0x2a4] ss:$16 sps:$4 sm:$0xff]   ;;  %v4989_v24 = vld [vmem:[%s7409_s1 + $0x2ac] ss:$16 sps:$4 sm:$0xff]  }
  0x1e   :  { %v4984_v25 = vld [vmem:[%s7409_s1 + $0x2a0] ss:$16 sps:$4 sm:$0xff]   ;;  %v4987_v26 = vld [vmem:[%s7409_s1 + $0x2a8] ss:$16 sps:$4 sm:$0xff]   ;;  %v4992_v27 = vld [vmem:[%s7409_s1 + $0x2c4] ss:$16 sps:$4 sm:$0xff]  }
  0x1f   :  { %3194 = vmatpush1.bf16.msra.mxu0 %v4902_v30  ;;  %3522 = vmatpush1.bf16.msra.mxu1 %v4903_v31  ;;  %v4995_v28 = vld [vmem:[%s7409_s1 + $0x2cc] ss:$16 sps:$4 sm:$0xff]   ;;  %v4990_v31 = vld [vmem:[%s7409_s1 + $0x2c0] ss:$16 sps:$4 sm:$0xff]   ;;  %v5017_v48 = vld [vmem:[%s7409_s1 + $0x348] ss:$16 sps:$4 sm:$0xff]  }
  0x20   :  { %3195 = vmatprep.subr.bf16.mxu0 %v4904_v32  ;;  %3523 = vmatprep.subr.bf16.mxu1 %v4906_v33  ;;  %v5978_v29 = vld [vmem:[%s7410_s0 + $0x8] sm:$0xff]  ;;  %v4998_v33 = vld [vmem:[%s7409_s1 + $0x2e4] ss:$16 sps:$4 sm:$0xff]  }
  0x21   :  { %v4194_v30 = vcombine.high %v5978_v29, %v5978_v29  ;;  %v4993_v32 = vld [vmem:[%s7409_s1 + $0x2c8] ss:$16 sps:$4 sm:$0xff]   ;;  %v5019_v46 = vld [vmem:[%s7409_s1 + $0x34c] ss:$16 sps:$4 sm:$0xff]  }
  0x23   :  { %3196 = vmatpush1.bf16.msra.mxu0 %v4908_v34  ;;  %3524 = vmatpush1.bf16.msra.mxu1 %v4909_v35  ;;  %v5001_v34 = vld [vmem:[%s7409_s1 + $0x2ec] ss:$16 sps:$4 sm:$0xff]   ;;  %v4996_v35 = vld [vmem:[%s7409_s1 + $0x2e0] ss:$16 sps:$4 sm:$0xff]  }
  0x24   :  { %3197 = vmatprep.subr.bf16.mxu0 %v4910_v36  ;;  %3525 = vmatprep.subr.bf16.mxu1 %v4912_v37  ;;  %v4999_v36 = vld [vmem:[%s7409_s1 + $0x2e8] ss:$16 sps:$4 sm:$0xff]   ;;  %v5004_v37 = vld [vmem:[%s7409_s1 + $0x304] ss:$16 sps:$4 sm:$0xff]  }
  0x27   :  { %3198 = vmatpush1.bf16.msra.mxu0 %v4914_v38  ;;  %3526 = vmatpush1.bf16.msra.mxu1 %v4915_v39  ;;  %v5007_v38 = vld [vmem:[%s7409_s1 + $0x30c] ss:$16 sps:$4 sm:$0xff]   ;;  %v5002_v39 = vld [vmem:[%s7409_s1 + $0x300] ss:$16 sps:$4 sm:$0xff]  }
  0x28   :  { %3199 = vmatprep.subr.bf16.mxu0 %v4916_v40  ;;  %3527 = vmatprep.subr.bf16.mxu1 %v4918_v41  ;;  %v5005_v40 = vld [vmem:[%s7409_s1 + $0x308] ss:$16 sps:$4 sm:$0xff]   ;;  %v5010_v41 = vld [vmem:[%s7409_s1 + $0x324] ss:$16 sps:$4 sm:$0xff]  }
  0x2b   :  { %3200 = vmatpush1.bf16.msra.mxu0 %v4920_v42  ;;  %3528 = vmatpush1.bf16.msra.mxu1 %v4921_v43  ;;  %v5013_v42 = vld [vmem:[%s7409_s1 + $0x32c] ss:$16 sps:$4 sm:$0xff]   ;;  %v5008_v43 = vld [vmem:[%s7409_s1 + $0x320] ss:$16 sps:$4 sm:$0xff]  }
  0x2c   :  { %3201 = vmatprep.subr.bf16.mxu0 %v4922_v44  ;;  %3529 = vmatprep.subr.bf16.mxu1 %v4924_v45  ;;  %v5011_v44 = vld [vmem:[%s7409_s1 + $0x328] ss:$16 sps:$4 sm:$0xff]   ;;  %v5016_v45 = vld [vmem:[%s7409_s1 + $0x344] ss:$16 sps:$4 sm:$0xff]  }
  0x2f   :  { %3202 = vmatpush1.bf16.msra.mxu0 %v4926_v47  ;;  %3530 = vmatpush1.bf16.msra.mxu1 %v4927_v49  ;;  %v5014_v47 = vld [vmem:[%s7409_s1 + $0x340] ss:$16 sps:$4 sm:$0xff]   ;;  %v5022_v49 = vld [vmem:[%s7409_s1 + $0x364] ss:$16 sps:$4 sm:$0xff]  }
  0x30   :  { %3203 = vmatprep.subr.bf16.mxu0 %v4928_v50  ;;  %3531 = vmatprep.subr.bf16.mxu1 %v4930_v51  ;;  %v5025_v50 = vld [vmem:[%s7409_s1 + $0x36c] ss:$16 sps:$4 sm:$0xff]   ;;  %v5020_v51 = vld [vmem:[%s7409_s1 + $0x360] ss:$16 sps:$4 sm:$0xff]  }
  0x33   :  { %3204 = vmatpush1.bf16.msra.mxu0 %v4932_v52  ;;  %3532 = vmatpush1.bf16.msra.mxu1 %v4933_v53  ;;  %v5023_v52 = vld [vmem:[%s7409_s1 + $0x368] ss:$16 sps:$4 sm:$0xff]   ;;  %v5028_v53 = vld [vmem:[%s7409_s1 + $0x384] ss:$16 sps:$4 sm:$0xff]  }
  0x34   :  { %3205 = vmatprep.subr.bf16.mxu0 %v4934_v54  ;;  %3533 = vmatprep.subr.bf16.mxu1 %v4936_v55  ;;  %v5031_v54 = vld [vmem:[%s7409_s1 + $0x38c] ss:$16 sps:$4 sm:$0xff]   ;;  %v5026_v55 = vld [vmem:[%s7409_s1 + $0x380] ss:$16 sps:$4 sm:$0xff]  }
  0x37   :  { %3206 = vmatpush1.bf16.msra.mxu0 %v4938_v56  ;;  %3534 = vmatpush1.bf16.msra.mxu1 %v4939_v57  ;;  %v5029_v56 = vld [vmem:[%s7409_s1 + $0x388] ss:$16 sps:$4 sm:$0xff]   ;;  %v5034_v57 = vld [vmem:[%s7409_s1 + $0x3a4] ss:$16 sps:$4 sm:$0xff]  }
  0x38   :  { %3207 = vmatprep.subr.bf16.mxu0 %v4940_v58  ;;  %3535 = vmatprep.subr.bf16.mxu1 %v4942_v59  ;;  %v5037_v58 = vld [vmem:[%s7409_s1 + $0x3ac] ss:$16 sps:$4 sm:$0xff]   ;;  %v5032_v59 = vld [vmem:[%s7409_s1 + $0x3a0] ss:$16 sps:$4 sm:$0xff]  }
  0x3b   :  { %3208 = vmatpush1.bf16.msra.mxu0 %v4944_v60  ;;  %3536 = vmatpush1.bf16.msra.mxu1 %v4945_v61  ;;  %v5035_v60 = vld [vmem:[%s7409_s1 + $0x3a8] ss:$16 sps:$4 sm:$0xff]   ;;  %v5040_v61 = vld [vmem:[%s7409_s1 + $0x3c4] ss:$16 sps:$4 sm:$0xff]  }
  0x3c   :  { %3209 = vmatprep.subr.bf16.mxu0 %v4946_v62  ;;  %3537 = vmatprep.subr.bf16.mxu1 %v4948_v63  ;;  %v5043_v62 = vld [vmem:[%s7409_s1 + $0x3cc] ss:$16 sps:$4 sm:$0xff]   ;;  %v5038_v63 = vld [vmem:[%s7409_s1 + $0x3c0] ss:$16 sps:$4 sm:$0xff]  }
  0x3f   :  { %3210 = vmatpush1.bf16.msra.mxu0 %v4950_v0  ;;  %3538 = vmatpush1.bf16.msra.mxu1 %v4951_v1  ;;  %v5041_v0 = vld [vmem:[%s7409_s1 + $0x3c8] ss:$16 sps:$4 sm:$0xff]   ;;  %v5046_v1 = vld [vmem:[%s7409_s1 + $0x3e4] ss:$16 sps:$4 sm:$0xff]  }
  0x40   :  { %3220 = vmatprep.subr.bf16.mxu0 %v4956_v2  ;;  %3548 = vmatprep.subr.bf16.mxu1 %v4959_v3  ;;  %v5049_v2 = vld [vmem:[%s7409_s1 + $0x3ec] ss:$16 sps:$4 sm:$0xff]   ;;  %v5044_v3 = vld [vmem:[%s7409_s1 + $0x3e0] ss:$16 sps:$4 sm:$0xff]  }
  0x42   :  { %3212 = vmatmul.mubr.bf16.vlgmr.msra.gmra.mrb[0].mxu0 %v4191_v4  ;;  %3540 = vmatmul.mubr.bf16.vlgmr.msra.gmra.mrb[0].mxu1 %v4191_v4  ;;  %v5047_v4 = vld [vmem:[%s7409_s1 + $0x3e8] ss:$16 sps:$4 sm:$0xff]  }
  0x43   :  { %3221 = vmatpush1.bf16.msra.mxu0 %v4954_v5  ;;  %3549 = vmatpush1.bf16.msra.mxu1 %v4957_v6  ;;  %v5054_v5 = vld [vmem:[%s7409_s1 + $0x404] ss:$16 sps:$4 sm:$0xff]   ;;  %v5057_v6 = vld [vmem:[%s7409_s1 + $0x40c] ss:$16 sps:$4 sm:$0xff]  }
  0x44   :  { %3222 = vmatprep.subr.bf16.mxu0 %v4962_v7  ;;  %3550 = vmatprep.subr.bf16.mxu1 %v4965_v8  ;;  %v4193_v7 = vcombine.low %v5978_v29, %v5978_v29  ;;  %v5052_v8 = vld [vmem:[%s7409_s1 + $0x400] ss:$16 sps:$4 sm:$0xff]   ;;  %v5087_v29 = vld [vmem:[%s7409_s1 + $0x4ac] ss:$16 sps:$4 sm:$0xff]  }
  0x45   :  { %3252 = vmatprep.mubr.bf16.mxu0 %v4194_v30  ;;  %3580 = vmatprep.mubr.bf16.mxu1 %v4194_v30  ;;  %v5082_v30 = vld [vmem:[%s7409_s1 + $0x4a0] ss:$16 sps:$4 sm:$0xff]  }
  0x47   :  { %3223 = vmatpush1.bf16.msra.mxu0 %v4960_v9  ;;  %3551 = vmatpush1.bf16.msra.mxu1 %v4963_v10  ;;  %v5055_v9 = vld [vmem:[%s7409_s1 + $0x408] ss:$16 sps:$4 sm:$0xff]   ;;  %v5060_v10 = vld [vmem:[%s7409_s1 + $0x424] ss:$16 sps:$4 sm:$0xff]  }
  0x48   :  { %3224 = vmatprep.subr.bf16.mxu0 %v4968_v11  ;;  %3552 = vmatprep.subr.bf16.mxu1 %v4971_v12  ;;  %v6116_v11 = vld [vmem:[%s7410_s0 + $0x10] sm:$0xff]  ;;  %v5063_v12 = vld [vmem:[%s7409_s1 + $0x42c] ss:$16 sps:$4 sm:$0xff]  }
  0x4b   :  { %3225 = vmatpush1.bf16.msra.mxu0 %v4966_v13  ;;  %3553 = vmatpush1.bf16.msra.mxu1 %v4969_v14  ;;  %v4196_v13 = vcombine.high %v6116_v11, %v6116_v11  ;;  %v5058_v14 = vld [vmem:[%s7409_s1 + $0x420] ss:$16 sps:$4 sm:$0xff]  }
  0x4c   :  { %3226 = vmatprep.subr.bf16.mxu0 %v4974_v15  ;;  %3554 = vmatprep.subr.bf16.mxu1 %v4977_v16  ;;  %v5061_v15 = vld [vmem:[%s7409_s1 + $0x428] ss:$16 sps:$4 sm:$0xff]   ;;  %v5066_v16 = vld [vmem:[%s7409_s1 + $0x444] ss:$16 sps:$4 sm:$0xff]  }
  0x4f   :  { %3227 = vmatpush1.bf16.msra.mxu0 %v4972_v17  ;;  %3555 = vmatpush1.bf16.msra.mxu1 %v4975_v18  ;;  %v5069_v17 = vld [vmem:[%s7409_s1 + $0x44c] ss:$16 sps:$4 sm:$0xff]   ;;  %v5064_v18 = vld [vmem:[%s7409_s1 + $0x440] ss:$16 sps:$4 sm:$0xff]  }
  0x50   :  { %3228 = vmatprep.subr.bf16.mxu0 %v4980_v19  ;;  %3556 = vmatprep.subr.bf16.mxu1 %v4983_v20  ;;  %v5067_v19 = vld [vmem:[%s7409_s1 + $0x448] ss:$16 sps:$4 sm:$0xff]   ;;  %v5072_v20 = vld [vmem:[%s7409_s1 + $0x464] ss:$16 sps:$4 sm:$0xff]  }
  0x53   :  { %3229 = vmatpush1.bf16.msra.mxu0 %v4978_v21  ;;  %3557 = vmatpush1.bf16.msra.mxu1 %v4981_v22  ;;  %v5075_v21 = vld [vmem:[%s7409_s1 + $0x46c] ss:$16 sps:$4 sm:$0xff]   ;;  %v5070_v22 = vld [vmem:[%s7409_s1 + $0x460] ss:$16 sps:$4 sm:$0xff]  }
  0x54   :  { %3230 = vmatprep.subr.bf16.mxu0 %v4986_v23  ;;  %3558 = vmatprep.subr.bf16.mxu1 %v4989_v24  ;;  %v5073_v23 = vld [vmem:[%s7409_s1 + $0x468] ss:$16 sps:$4 sm:$0xff]   ;;  %v5078_v24 = vld [vmem:[%s7409_s1 + $0x484] ss:$16 sps:$4 sm:$0xff]  }
  0x57   :  { %3231 = vmatpush1.bf16.msra.mxu0 %v4984_v25  ;;  %3559 = vmatpush1.bf16.msra.mxu1 %v4987_v26  ;;  %v5081_v25 = vld [vmem:[%s7409_s1 + $0x48c] ss:$16 sps:$4 sm:$0xff]   ;;  %v5076_v26 = vld [vmem:[%s7409_s1 + $0x480] ss:$16 sps:$4 sm:$0xff]  }
  0x58   :  { %3232 = vmatprep.subr.bf16.mxu0 %v4992_v27  ;;  %3560 = vmatprep.subr.bf16.mxu1 %v4995_v28  ;;  %v5079_v27 = vld [vmem:[%s7409_s1 + $0x488] ss:$16 sps:$4 sm:$0xff]   ;;  %v5084_v28 = vld [vmem:[%s7409_s1 + $0x4a4] ss:$16 sps:$4 sm:$0xff]  }
  0x5b   :  { %3233 = vmatpush1.bf16.msra.mxu0 %v4990_v31  ;;  %3561 = vmatpush1.bf16.msra.mxu1 %v4993_v32  ;;  %v5085_v31 = vld [vmem:[%s7409_s1 + $0x4a8] ss:$16 sps:$4 sm:$0xff]   ;;  %v5090_v32 = vld [vmem:[%s7409_s1 + $0x4c4] ss:$16 sps:$4 sm:$0xff]  }
  0x5c   :  { %3234 = vmatprep.subr.bf16.mxu0 %v4998_v33  ;;  %3562 = vmatprep.subr.bf16.mxu1 %v5001_v34  ;;  %v5093_v33 = vld [vmem:[%s7409_s1 + $0x4cc] ss:$16 sps:$4 sm:$0xff]   ;;  %v5088_v34 = vld [vmem:[%s7409_s1 + $0x4c0] ss:$16 sps:$4 sm:$0xff]  }
  0x5f   :  { %3235 = vmatpush1.bf16.msra.mxu0 %v4996_v35  ;;  %3563 = vmatpush1.bf16.msra.mxu1 %v4999_v36  ;;  %v5091_v35 = vld [vmem:[%s7409_s1 + $0x4c8] ss:$16 sps:$4 sm:$0xff]   ;;  %v5096_v36 = vld [vmem:[%s7409_s1 + $0x4e4] ss:$16 sps:$4 sm:$0xff]  }
  0x60   :  { %3236 = vmatprep.subr.bf16.mxu0 %v5004_v37  ;;  %3564 = vmatprep.subr.bf16.mxu1 %v5007_v38  ;;  %v5099_v37 = vld [vmem:[%s7409_s1 + $0x4ec] ss:$16 sps:$4 sm:$0xff]   ;;  %v5094_v38 = vld [vmem:[%s7409_s1 + $0x4e0] ss:$16 sps:$4 sm:$0xff]  }
  0x63   :  { %3237 = vmatpush1.bf16.msra.mxu0 %v5002_v39  ;;  %3565 = vmatpush1.bf16.msra.mxu1 %v5005_v40  ;;  %v5097_v39 = vld [vmem:[%s7409_s1 + $0x4e8] ss:$16 sps:$4 sm:$0xff]   ;;  %v5102_v40 = vld [vmem:[%s7409_s1 + $0x504] ss:$16 sps:$4 sm:$0xff]  }
  0x64   :  { %3238 = vmatprep.subr.bf16.mxu0 %v5010_v41  ;;  %3566 = vmatprep.subr.bf16.mxu1 %v5013_v42  ;;  %v5105_v41 = vld [vmem:[%s7409_s1 + $0x50c] ss:$16 sps:$4 sm:$0xff]   ;;  %v5100_v42 = vld [vmem:[%s7409_s1 + $0x500] ss:$16 sps:$4 sm:$0xff]  }
  0x67   :  { %3239 = vmatpush1.bf16.msra.mxu0 %v5008_v43  ;;  %3567 = vmatpush1.bf16.msra.mxu1 %v5011_v44  ;;  %v5103_v43 = vld [vmem:[%s7409_s1 + $0x508] ss:$16 sps:$4 sm:$0xff]   ;;  %v5108_v44 = vld [vmem:[%s7409_s1 + $0x524] ss:$16 sps:$4 sm:$0xff]  }
  0x68   :  { %3240 = vmatprep.subr.bf16.mxu0 %v5016_v45  ;;  %3568 = vmatprep.subr.bf16.mxu1 %v5019_v46  ;;  %v5111_v45 = vld [vmem:[%s7409_s1 + $0x52c] ss:$16 sps:$4 sm:$0xff]   ;;  %v5106_v46 = vld [vmem:[%s7409_s1 + $0x520] ss:$16 sps:$4 sm:$0xff]  }
  0x6b   :  { %3241 = vmatpush1.bf16.msra.mxu0 %v5014_v47  ;;  %3569 = vmatpush1.bf16.msra.mxu1 %v5017_v48  ;;  %v5109_v47 = vld [vmem:[%s7409_s1 + $0x528] ss:$16 sps:$4 sm:$0xff]   ;;  %v5114_v48 = vld [vmem:[%s7409_s1 + $0x544] ss:$16 sps:$4 sm:$0xff]  }
  0x6c   :  { %3242 = vmatprep.subr.bf16.mxu0 %v5022_v49  ;;  %3570 = vmatprep.subr.bf16.mxu1 %v5025_v50  ;;  %v5117_v49 = vld [vmem:[%s7409_s1 + $0x54c] ss:$16 sps:$4 sm:$0xff]   ;;  %v5112_v50 = vld [vmem:[%s7409_s1 + $0x540] ss:$16 sps:$4 sm:$0xff]  }
  0x6f   :  { %3243 = vmatpush1.bf16.msra.mxu0 %v5020_v51  ;;  %3571 = vmatpush1.bf16.msra.mxu1 %v5023_v52  ;;  %v5115_v51 = vld [vmem:[%s7409_s1 + $0x548] ss:$16 sps:$4 sm:$0xff]   ;;  %v5120_v52 = vld [vmem:[%s7409_s1 + $0x564] ss:$16 sps:$4 sm:$0xff]  }
  0x70   :  { %3244 = vmatprep.subr.bf16.mxu0 %v5028_v53  ;;  %3572 = vmatprep.subr.bf16.mxu1 %v5031_v54  ;;  %v5123_v53 = vld [vmem:[%s7409_s1 + $0x56c] ss:$16 sps:$4 sm:$0xff]   ;;  %v5118_v54 = vld [vmem:[%s7409_s1 + $0x560] ss:$16 sps:$4 sm:$0xff]  }
  0x73   :  { %3245 = vmatpush1.bf16.msra.mxu0 %v5026_v55  ;;  %3573 = vmatpush1.bf16.msra.mxu1 %v5029_v56  ;;  %v5121_v55 = vld [vmem:[%s7409_s1 + $0x568] ss:$16 sps:$4 sm:$0xff]   ;;  %v5126_v56 = vld [vmem:[%s7409_s1 + $0x584] ss:$16 sps:$4 sm:$0xff]  }
  0x74   :  { %3246 = vmatprep.subr.bf16.mxu0 %v5034_v57  ;;  %3574 = vmatprep.subr.bf16.mxu1 %v5037_v58  ;;  %v5129_v57 = vld [vmem:[%s7409_s1 + $0x58c] ss:$16 sps:$4 sm:$0xff]   ;;  %v5124_v58 = vld [vmem:[%s7409_s1 + $0x580] ss:$16 sps:$4 sm:$0xff]  }
  0x77   :  { %3247 = vmatpush1.bf16.msra.mxu0 %v5032_v59  ;;  %3575 = vmatpush1.bf16.msra.mxu1 %v5035_v60  ;;  %v5127_v59 = vld [vmem:[%s7409_s1 + $0x588] ss:$16 sps:$4 sm:$0xff]   ;;  %v5132_v60 = vld [vmem:[%s7409_s1 + $0x5a4] ss:$16 sps:$4 sm:$0xff]  }
  0x78   :  { %3248 = vmatprep.subr.bf16.mxu0 %v5040_v61  ;;  %3576 = vmatprep.subr.bf16.mxu1 %v5043_v62  ;;  %v5135_v61 = vld [vmem:[%s7409_s1 + $0x5ac] ss:$16 sps:$4 sm:$0xff]   ;;  %v5130_v62 = vld [vmem:[%s7409_s1 + $0x5a0] ss:$16 sps:$4 sm:$0xff]  }
  0x7b   :  { %3249 = vmatpush1.bf16.msra.mxu0 %v5038_v63  ;;  %3577 = vmatpush1.bf16.msra.mxu1 %v5041_v0  ;;  %v5133_v63 = vld [vmem:[%s7409_s1 + $0x5a8] ss:$16 sps:$4 sm:$0xff]   ;;  %v5138_v0 = vld [vmem:[%s7409_s1 + $0x5c4] ss:$16 sps:$4 sm:$0xff]  }
  0x7c   :  { %3250 = vmatprep.subr.bf16.mxu0 %v5046_v1  ;;  %3578 = vmatprep.subr.bf16.mxu1 %v5049_v2  ;;  %v5141_v1 = vld [vmem:[%s7409_s1 + $0x5cc] ss:$16 sps:$4 sm:$0xff]   ;;  %v5136_v2 = vld [vmem:[%s7409_s1 + $0x5c0] ss:$16 sps:$4 sm:$0xff]  }
  0x7f   :  { %3251 = vmatpush1.bf16.msra.mxu0 %v5044_v3  ;;  %3579 = vmatpush1.bf16.msra.mxu1 %v5047_v4  ;;  %v5139_v3 = vld [vmem:[%s7409_s1 + $0x5c8] ss:$16 sps:$4 sm:$0xff]   ;;  %v5144_v4 = vld [vmem:[%s7409_s1 + $0x5e4] ss:$16 sps:$4 sm:$0xff]  }
  0x80   :  { %3261 = vmatprep.subr.bf16.mxu0 %v5054_v5  ;;  %3589 = vmatprep.subr.bf16.mxu1 %v5057_v6  ;;  %v5147_v5 = vld [vmem:[%s7409_s1 + $0x5ec] ss:$16 sps:$4 sm:$0xff]   ;;  %v5142_v6 = vld [vmem:[%s7409_s1 + $0x5e0] ss:$16 sps:$4 sm:$0xff]  }
  0x82   :  { %3253 = vmatmul.mubr.bf16.vlgmr.msra.gmra.mrb[0].mxu0 %v4193_v7  ;;  %3581 = vmatmul.mubr.bf16.vlgmr.msra.gmra.mrb[0].mxu1 %v4193_v7  ;;  %v5145_v7 = vld [vmem:[%s7409_s1 + $0x5e8] ss:$16 sps:$4 sm:$0xff]  }
  0x83   :  { %3262 = vmatpush1.bf16.msra.mxu0 %v5052_v8  ;;  %3590 = vmatpush1.bf16.msra.mxu1 %v5055_v9  ;;  %v5152_v8 = vld [vmem:[%s7409_s1 + $0x604] ss:$16 sps:$4 sm:$0xff]   ;;  %v5155_v9 = vld [vmem:[%s7409_s1 + $0x60c] ss:$16 sps:$4 sm:$0xff]  }
  0x84   :  { %3263 = vmatprep.subr.bf16.mxu0 %v5060_v10  ;;  %3591 = vmatprep.subr.bf16.mxu1 %v5063_v12  ;;  %v5150_v10 = vld [vmem:[%s7409_s1 + $0x600] ss:$16 sps:$4 sm:$0xff]   ;;  %v4195_v12 = vcombine.low %v6116_v11, %v6116_v11  ;;  %v5161_v11 = vld [vmem:[%s7409_s1 + $0x62c] ss:$16 sps:$4 sm:$0xff]  }
  0x85   :  { %3293 = vmatprep.mubr.bf16.mxu0 %v4196_v13  ;;  %3621 = vmatprep.mubr.bf16.mxu1 %v4196_v13  ;;  %v5153_v13 = vld [vmem:[%s7409_s1 + $0x608] ss:$16 sps:$4 sm:$0xff]  }
  0x87   :  { %3264 = vmatpush1.bf16.msra.mxu0 %v5058_v14  ;;  %3592 = vmatpush1.bf16.msra.mxu1 %v5061_v15  ;;  %v6314_v14 = vld [vmem:[%s7410_s0 + $0x18] sm:$0xff]  ;;  %v5158_v15 = vld [vmem:[%s7409_s1 + $0x624] ss:$16 sps:$4 sm:$0xff]  }
  0x88   :  { %3265 = vmatprep.subr.bf16.mxu0 %v5066_v16  ;;  %3593 = vmatprep.subr.bf16.mxu1 %v5069_v17  ;;  %v4198_v16 = vcombine.high %v6314_v14, %v6314_v14  ;;  %v5156_v17 = vld [vmem:[%s7409_s1 + $0x620] ss:$16 sps:$4 sm:$0xff]  }
  0x8b   :  { %3266 = vmatpush1.bf16.msra.mxu0 %v5064_v18  ;;  %3594 = vmatpush1.bf16.msra.mxu1 %v5067_v19  ;;  %v5159_v18 = vld [vmem:[%s7409_s1 + $0x628] ss:$16 sps:$4 sm:$0xff]   ;;  %v5164_v19 = vld [vmem:[%s7409_s1 + $0x644] ss:$16 sps:$4 sm:$0xff]  }
  0x8c   :  { %3267 = vmatprep.subr.bf16.mxu0 %v5072_v20  ;;  %3595 = vmatprep.subr.bf16.mxu1 %v5075_v21  ;;  %v5167_v20 = vld [vmem:[%s7409_s1 + $0x64c] ss:$16 sps:$4 sm:$0xff]   ;;  %v5162_v21 = vld [vmem:[%s7409_s1 + $0x640] ss:$16 sps:$4 sm:$0xff]  }
  0x8f   :  { %3268 = vmatpush1.bf16.msra.mxu0 %v5070_v22  ;;  %3596 = vmatpush1.bf16.msra.mxu1 %v5073_v23  ;;  %v5165_v22 = vld [vmem:[%s7409_s1 + $0x648] ss:$16 sps:$4 sm:$0xff]   ;;  %v5170_v23 = vld [vmem:[%s7409_s1 + $0x664] ss:$16 sps:$4 sm:$0xff]  }
  0x90   :  { %3269 = vmatprep.subr.bf16.mxu0 %v5078_v24  ;;  %3597 = vmatprep.subr.bf16.mxu1 %v5081_v25  ;;  %v5173_v24 = vld [vmem:[%s7409_s1 + $0x66c] ss:$16 sps:$4 sm:$0xff]   ;;  %v5168_v25 = vld [vmem:[%s7409_s1 + $0x660] ss:$16 sps:$4 sm:$0xff]  }
  0x93   :  { %3270 = vmatpush1.bf16.msra.mxu0 %v5076_v26  ;;  %3598 = vmatpush1.bf16.msra.mxu1 %v5079_v27  ;;  %v5171_v26 = vld [vmem:[%s7409_s1 + $0x668] ss:$16 sps:$4 sm:$0xff]   ;;  %v5176_v27 = vld [vmem:[%s7409_s1 + $0x684] ss:$16 sps:$4 sm:$0xff]  }
  0x94   :  { %3271 = vmatprep.subr.bf16.mxu0 %v5084_v28  ;;  %3599 = vmatprep.subr.bf16.mxu1 %v5087_v29  ;;  %v5179_v28 = vld [vmem:[%s7409_s1 + $0x68c] ss:$16 sps:$4 sm:$0xff]   ;;  %v5174_v29 = vld [vmem:[%s7409_s1 + $0x680] ss:$16 sps:$4 sm:$0xff]  }
  0x97   :  { %3272 = vmatpush1.bf16.msra.mxu0 %v5082_v30  ;;  %3600 = vmatpush1.bf16.msra.mxu1 %v5085_v31  ;;  %v5177_v30 = vld [vmem:[%s7409_s1 + $0x688] ss:$16 sps:$4 sm:$0xff]   ;;  %v5182_v31 = vld [vmem:[%s7409_s1 + $0x6a4] ss:$16 sps:$4 sm:$0xff]  }
  0x98   :  { %3273 = vmatprep.subr.bf16.mxu0 %v5090_v32  ;;  %3601 = vmatprep.subr.bf16.mxu1 %v5093_v33  ;;  %v5185_v32 = vld [vmem:[%s7409_s1 + $0x6ac] ss:$16 sps:$4 sm:$0xff]   ;;  %v5180_v33 = vld [vmem:[%s7409_s1 + $0x6a0] ss:$16 sps:$4 sm:$0xff]  }
  0x9b   :  { %3274 = vmatpush1.bf16.msra.mxu0 %v5088_v34  ;;  %3602 = vmatpush1.bf16.msra.mxu1 %v5091_v35  ;;  %v5183_v34 = vld [vmem:[%s7409_s1 + $0x6a8] ss:$16 sps:$4 sm:$0xff]   ;;  %v5188_v35 = vld [vmem:[%s7409_s1 + $0x6c4] ss:$16 sps:$4 sm:$0xff]  }
  0x9c   :  { %3275 = vmatprep.subr.bf16.mxu0 %v5096_v36  ;;  %3603 = vmatprep.subr.bf16.mxu1 %v5099_v37  ;;  %v5191_v36 = vld [vmem:[%s7409_s1 + $0x6cc] ss:$16 sps:$4 sm:$0xff]   ;;  %v5186_v37 = vld [vmem:[%s7409_s1 + $0x6c0] ss:$16 sps:$4 sm:$0xff]  }
  0x9f   :  { %3276 = vmatpush1.bf16.msra.mxu0 %v5094_v38  ;;  %3604 = vmatpush1.bf16.msra.mxu1 %v5097_v39  ;;  %v5189_v38 = vld [vmem:[%s7409_s1 + $0x6c8] ss:$16 sps:$4 sm:$0xff]   ;;  %v5194_v39 = vld [vmem:[%s7409_s1 + $0x6e4] ss:$16 sps:$4 sm:$0xff]  }
  0xa0   :  { %3277 = vmatprep.subr.bf16.mxu0 %v5102_v40  ;;  %3605 = vmatprep.subr.bf16.mxu1 %v5105_v41  ;;  %v5197_v40 = vld [vmem:[%s7409_s1 + $0x6ec] ss:$16 sps:$4 sm:$0xff]   ;;  %v5192_v41 = vld [vmem:[%s7409_s1 + $0x6e0] ss:$16 sps:$4 sm:$0xff]  }
  0xa3   :  { %3278 = vmatpush1.bf16.msra.mxu0 %v5100_v42  ;;  %3606 = vmatpush1.bf16.msra.mxu1 %v5103_v43  ;;  %v5195_v42 = vld [vmem:[%s7409_s1 + $0x6e8] ss:$16 sps:$4 sm:$0xff]   ;;  %v5200_v43 = vld [vmem:[%s7409_s1 + $0x704] ss:$16 sps:$4 sm:$0xff]  }
  0xa4   :  { %3279 = vmatprep.subr.bf16.mxu0 %v5108_v44  ;;  %3607 = vmatprep.subr.bf16.mxu1 %v5111_v45  ;;  %v5203_v44 = vld [vmem:[%s7409_s1 + $0x70c] ss:$16 sps:$4 sm:$0xff]   ;;  %v5198_v45 = vld [vmem:[%s7409_s1 + $0x700] ss:$16 sps:$4 sm:$0xff]  }
  0xa7   :  { %3280 = vmatpush1.bf16.msra.mxu0 %v5106_v46  ;;  %3608 = vmatpush1.bf16.msra.mxu1 %v5109_v47  ;;  %v5201_v46 = vld [vmem:[%s7409_s1 + $0x708] ss:$16 sps:$4 sm:$0xff]   ;;  %v5206_v47 = vld [vmem:[%s7409_s1 + $0x724] ss:$16 sps:$4 sm:$0xff]  }
  0xa8   :  { %3281 = vmatprep.subr.bf16.mxu0 %v5114_v48  ;;  %3609 = vmatprep.subr.bf16.mxu1 %v5117_v49  ;;  %v5209_v48 = vld [vmem:[%s7409_s1 + $0x72c] ss:$16 sps:$4 sm:$0xff]   ;;  %v5204_v49 = vld [vmem:[%s7409_s1 + $0x720] ss:$16 sps:$4 sm:$0xff]  }
  0xab   :  { %3282 = vmatpush1.bf16.msra.mxu0 %v5112_v50  ;;  %3610 = vmatpush1.bf16.msra.mxu1 %v5115_v51  ;;  %v5207_v50 = vld [vmem:[%s7409_s1 + $0x728] ss:$16 sps:$4 sm:$0xff]   ;;  %v5212_v51 = vld [vmem:[%s7409_s1 + $0x744] ss:$16 sps:$4 sm:$0xff]  }
  0xac   :  { %3283 = vmatprep.subr.bf16.mxu0 %v5120_v52  ;;  %3611 = vmatprep.subr.bf16.mxu1 %v5123_v53  ;;  %v5215_v52 = vld [vmem:[%s7409_s1 + $0x74c] ss:$16 sps:$4 sm:$0xff]   ;;  %v5210_v53 = vld [vmem:[%s7409_s1 + $0x740] ss:$16 sps:$4 sm:$0xff]  }
  0xaf   :  { %3284 = vmatpush1.bf16.msra.mxu0 %v5118_v54  ;;  %3612 = vmatpush1.bf16.msra.mxu1 %v5121_v55  ;;  %v5213_v54 = vld [vmem:[%s7409_s1 + $0x748] ss:$16 sps:$4 sm:$0xff]   ;;  %v5218_v55 = vld [vmem:[%s7409_s1 + $0x764] ss:$16 sps:$4 sm:$0xff]  }
  0xb0   :  { %3285 = vmatprep.subr.bf16.mxu0 %v5126_v56  ;;  %3613 = vmatprep.subr.bf16.mxu1 %v5129_v57  ;;  %v5221_v56 = vld [vmem:[%s7409_s1 + $0x76c] ss:$16 sps:$4 sm:$0xff]   ;;  %v5216_v57 = vld [vmem:[%s7409_s1 + $0x760] ss:$16 sps:$4 sm:$0xff]  }
  0xb3   :  { %3286 = vmatpush1.bf16.msra.mxu0 %v5124_v58  ;;  %3614 = vmatpush1.bf16.msra.mxu1 %v5127_v59  ;;  %v5219_v58 = vld [vmem:[%s7409_s1 + $0x768] ss:$16 sps:$4 sm:$0xff]   ;;  %v5224_v59 = vld [vmem:[%s7409_s1 + $0x784] ss:$16 sps:$4 sm:$0xff]  }
  0xb4   :  { %3287 = vmatprep.subr.bf16.mxu0 %v5132_v60  ;;  %3615 = vmatprep.subr.bf16.mxu1 %v5135_v61  ;;  %v5227_v60 = vld [vmem:[%s7409_s1 + $0x78c] ss:$16 sps:$4 sm:$0xff]   ;;  %v5222_v61 = vld [vmem:[%s7409_s1 + $0x780] ss:$16 sps:$4 sm:$0xff]  }
  0xb7   :  { %3288 = vmatpush1.bf16.msra.mxu0 %v5130_v62  ;;  %3616 = vmatpush1.bf16.msra.mxu1 %v5133_v63  ;;  %v5225_v62 = vld [vmem:[%s7409_s1 + $0x788] ss:$16 sps:$4 sm:$0xff]   ;;  %v5230_v63 = vld [vmem:[%s7409_s1 + $0x7a4] ss:$16 sps:$4 sm:$0xff]  }
  0xb8   :  { %3289 = vmatprep.subr.bf16.mxu0 %v5138_v0  ;;  %3617 = vmatprep.subr.bf16.mxu1 %v5141_v1  ;;  %v5233_v0 = vld [vmem:[%s7409_s1 + $0x7ac] ss:$16 sps:$4 sm:$0xff]   ;;  %v5228_v1 = vld [vmem:[%s7409_s1 + $0x7a0] ss:$16 sps:$4 sm:$0xff]  }
  0xbb   :  { %3290 = vmatpush1.bf16.msra.mxu0 %v5136_v2  ;;  %3618 = vmatpush1.bf16.msra.mxu1 %v5139_v3  ;;  %v5231_v2 = vld [vmem:[%s7409_s1 + $0x7a8] ss:$16 sps:$4 sm:$0xff]   ;;  %v5236_v3 = vld [vmem:[%s7409_s1 + $0x7c4] ss:$16 sps:$4 sm:$0xff]  }
  0xbc   :  { %3291 = vmatprep.subr.bf16.mxu0 %v5144_v4  ;;  %3619 = vmatprep.subr.bf16.mxu1 %v5147_v5  ;;  %v5239_v4 = vld [vmem:[%s7409_s1 + $0x7cc] ss:$16 sps:$4 sm:$0xff]   ;;  %v5234_v5 = vld [vmem:[%s7409_s1 + $0x7c0] ss:$16 sps:$4 sm:$0xff]  }
  0xbf   :  { %3292 = vmatpush1.bf16.msra.mxu0 %v5142_v6  ;;  %3620 = vmatpush1.bf16.msra.mxu1 %v5145_v7  ;;  %v5237_v6 = vld [vmem:[%s7409_s1 + $0x7c8] ss:$16 sps:$4 sm:$0xff]   ;;  %v5242_v7 = vld [vmem:[%s7409_s1 + $0x7e4] ss:$16 sps:$4 sm:$0xff]  }
  0xc0   :  { %3302 = vmatprep.subr.bf16.mxu0 %v5152_v8  ;;  %3630 = vmatprep.subr.bf16.mxu1 %v5155_v9  ;;  %v5245_v8 = vld [vmem:[%s7409_s1 + $0x7ec] ss:$16 sps:$4 sm:$0xff]   ;;  %v5240_v9 = vld [vmem:[%s7409_s1 + $0x7e0] ss:$16 sps:$4 sm:$0xff]  }
  0xc2   :  { %3294 = vmatmul.mubr.bf16.vlgmr.msra.gmra.mrb[0].mxu0 %v4195_v12  ;;  %3622 = vmatmul.mubr.bf16.vlgmr.msra.gmra.mrb[0].mxu1 %v4195_v12  ;;  %v5250_v12 = vld [vmem:[%s7409_s1 + $0x804] ss:$16 sps:$4 sm:$0xff]  }
  0xc3   :  { %3303 = vmatpush1.bf16.msra.mxu0 %v5150_v10  ;;  %3631 = vmatpush1.bf16.msra.mxu1 %v5153_v13  ;;  %v5243_v10 = vld [vmem:[%s7409_s1 + $0x7e8] ss:$16 sps:$4 sm:$0xff]   ;;  %v5253_v13 = vld [vmem:[%s7409_s1 + $0x80c] ss:$16 sps:$4 sm:$0xff]  }
  0xc4   :  { %3304 = vmatprep.subr.bf16.mxu0 %v5158_v15  ;;  %3632 = vmatprep.subr.bf16.mxu1 %v5161_v11  ;;  %v5248_v15 = vld [vmem:[%s7409_s1 + $0x800] ss:$16 sps:$4 sm:$0xff]   ;;  %v4197_v11 = vcombine.low %v6314_v14, %v6314_v14  ;;  %v5259_v14 = vld [vmem:[%s7409_s1 + $0x82c] ss:$16 sps:$4 sm:$0xff]  }
  0xc5   :  { %3334 = vmatprep.mubr.bf16.mxu0 %v4198_v16  ;;  %3662 = vmatprep.mubr.bf16.mxu1 %v4198_v16  ;;  %v6512_v16 = vld [vmem:[%s7410_s0 + $0x20] sm:$0xff] }
  0xc7   :  { %3305 = vmatpush1.bf16.msra.mxu0 %v5156_v17  ;;  %3633 = vmatpush1.bf16.msra.mxu1 %v5159_v18  ;;  %v5251_v17 = vld [vmem:[%s7409_s1 + $0x808] ss:$16 sps:$4 sm:$0xff]   ;;  %v5256_v18 = vld [vmem:[%s7409_s1 + $0x824] ss:$16 sps:$4 sm:$0xff]  }
  0xc8   :  { %3306 = vmatprep.subr.bf16.mxu0 %v5164_v19  ;;  %3634 = vmatprep.subr.bf16.mxu1 %v5167_v20  ;;  %v4200_v19 = vcombine.high %v6512_v16, %v6512_v16  ;;  %v5254_v20 = vld [vmem:[%s7409_s1 + $0x820] ss:$16 sps:$4 sm:$0xff]  }
  0xcb   :  { %3307 = vmatpush1.bf16.msra.mxu0 %v5162_v21  ;;  %3635 = vmatpush1.bf16.msra.mxu1 %v5165_v22  ;;  %v5257_v21 = vld [vmem:[%s7409_s1 + $0x828] ss:$16 sps:$4 sm:$0xff]   ;;  %v5262_v22 = vld [vmem:[%s7409_s1 + $0x844] ss:$16 sps:$4 sm:$0xff]  }
  0xcc   :  { %3308 = vmatprep.subr.bf16.mxu0 %v5170_v23  ;;  %3636 = vmatprep.subr.bf16.mxu1 %v5173_v24  ;;  %v5265_v23 = vld [vmem:[%s7409_s1 + $0x84c] ss:$16 sps:$4 sm:$0xff]   ;;  %v5260_v24 = vld [vmem:[%s7409_s1 + $0x840] ss:$16 sps:$4 sm:$0xff]  }
  0xcf   :  { %3309 = vmatpush1.bf16.msra.mxu0 %v5168_v25  ;;  %3637 = vmatpush1.bf16.msra.mxu1 %v5171_v26  ;;  %v5263_v25 = vld [vmem:[%s7409_s1 + $0x848] ss:$16 sps:$4 sm:$0xff]   ;;  %v5268_v26 = vld [vmem:[%s7409_s1 + $0x864] ss:$16 sps:$4 sm:$0xff]  }
  0xd0   :  { %3310 = vmatprep.subr.bf16.mxu0 %v5176_v27  ;;  %3638 = vmatprep.subr.bf16.mxu1 %v5179_v28  ;;  %v5271_v27 = vld [vmem:[%s7409_s1 + $0x86c] ss:$16 sps:$4 sm:$0xff]   ;;  %v5266_v28 = vld [vmem:[%s7409_s1 + $0x860] ss:$16 sps:$4 sm:$0xff]  }
  0xd3   :  { %3311 = vmatpush1.bf16.msra.mxu0 %v5174_v29  ;;  %3639 = vmatpush1.bf16.msra.mxu1 %v5177_v30  ;;  %v5269_v29 = vld [vmem:[%s7409_s1 + $0x868] ss:$16 sps:$4 sm:$0xff]   ;;  %v5274_v30 = vld [vmem:[%s7409_s1 + $0x884] ss:$16 sps:$4 sm:$0xff]  }
  0xd4   :  { %3312 = vmatprep.subr.bf16.mxu0 %v5182_v31  ;;  %3640 = vmatprep.subr.bf16.mxu1 %v5185_v32  ;;  %v5277_v31 = vld [vmem:[%s7409_s1 + $0x88c] ss:$16 sps:$4 sm:$0xff]   ;;  %v5272_v32 = vld [vmem:[%s7409_s1 + $0x880] ss:$16 sps:$4 sm:$0xff]  }
  0xd7   :  { %3313 = vmatpush1.bf16.msra.mxu0 %v5180_v33  ;;  %3641 = vmatpush1.bf16.msra.mxu1 %v5183_v34  ;;  %v5275_v33 = vld [vmem:[%s7409_s1 + $0x888] ss:$16 sps:$4 sm:$0xff]   ;;  %v5280_v34 = vld [vmem:[%s7409_s1 + $0x8a4] ss:$16 sps:$4 sm:$0xff]  }
  0xd8   :  { %3314 = vmatprep.subr.bf16.mxu0 %v5188_v35  ;;  %3642 = vmatprep.subr.bf16.mxu1 %v5191_v36  ;;  %v5283_v35 = vld [vmem:[%s7409_s1 + $0x8ac] ss:$16 sps:$4 sm:$0xff]   ;;  %v5278_v36 = vld [vmem:[%s7409_s1 + $0x8a0] ss:$16 sps:$4 sm:$0xff]  }
  0xdb   :  { %3315 = vmatpush1.bf16.msra.mxu0 %v5186_v37  ;;  %3643 = vmatpush1.bf16.msra.mxu1 %v5189_v38  ;;  %v5281_v37 = vld [vmem:[%s7409_s1 + $0x8a8] ss:$16 sps:$4 sm:$0xff]   ;;  %v5286_v38 = vld [vmem:[%s7409_s1 + $0x8c4] ss:$16 sps:$4 sm:$0xff]  }
  0xdc   :  { %3316 = vmatprep.subr.bf16.mxu0 %v5194_v39  ;;  %3644 = vmatprep.subr.bf16.mxu1 %v5197_v40  ;;  %v5289_v39 = vld [vmem:[%s7409_s1 + $0x8cc] ss:$16 sps:$4 sm:$0xff]   ;;  %v5284_v40 = vld [vmem:[%s7409_s1 + $0x8c0] ss:$16 sps:$4 sm:$0xff]  }
  0xdf   :  { %3317 = vmatpush1.bf16.msra.mxu0 %v5192_v41  ;;  %3645 = vmatpush1.bf16.msra.mxu1 %v5195_v42  ;;  %v5287_v41 = vld [vmem:[%s7409_s1 + $0x8c8] ss:$16 sps:$4 sm:$0xff]   ;;  %v5292_v42 = vld [vmem:[%s7409_s1 + $0x8e4] ss:$16 sps:$4 sm:$0xff]  }
  0xe0   :  { %3318 = vmatprep.subr.bf16.mxu0 %v5200_v43  ;;  %3646 = vmatprep.subr.bf16.mxu1 %v5203_v44  ;;  %v5295_v43 = vld [vmem:[%s7409_s1 + $0x8ec] ss:$16 sps:$4 sm:$0xff]   ;;  %v5290_v44 = vld [vmem:[%s7409_s1 + $0x8e0] ss:$16 sps:$4 sm:$0xff]  }
  0xe3   :  { %3319 = vmatpush1.bf16.msra.mxu0 %v5198_v45  ;;  %3647 = vmatpush1.bf16.msra.mxu1 %v5201_v46  ;;  %v5293_v45 = vld [vmem:[%s7409_s1 + $0x8e8] ss:$16 sps:$4 sm:$0xff]   ;;  %v5298_v46 = vld [vmem:[%s7409_s1 + $0x904] ss:$16 sps:$4 sm:$0xff]  }
  0xe4   :  { %3320 = vmatprep.subr.bf16.mxu0 %v5206_v47  ;;  %3648 = vmatprep.subr.bf16.mxu1 %v5209_v48  ;;  %v5301_v47 = vld [vmem:[%s7409_s1 + $0x90c] ss:$16 sps:$4 sm:$0xff]   ;;  %v5296_v48 = vld [vmem:[%s7409_s1 + $0x900] ss:$16 sps:$4 sm:$0xff]  }
  0xe7   :  { %3321 = vmatpush1.bf16.msra.mxu0 %v5204_v49  ;;  %3649 = vmatpush1.bf16.msra.mxu1 %v5207_v50  ;;  %v5299_v49 = vld [vmem:[%s7409_s1 + $0x908] ss:$16 sps:$4 sm:$0xff]   ;;  %v5304_v50 = vld [vmem:[%s7409_s1 + $0x924] ss:$16 sps:$4 sm:$0xff]  }
  0xe8   :  { %3322 = vmatprep.subr.bf16.mxu0 %v5212_v51  ;;  %3650 = vmatprep.subr.bf16.mxu1 %v5215_v52  ;;  %v5307_v51 = vld [vmem:[%s7409_s1 + $0x92c] ss:$16 sps:$4 sm:$0xff]   ;;  %v5302_v52 = vld [vmem:[%s7409_s1 + $0x920] ss:$16 sps:$4 sm:$0xff]  }
  0xeb   :  { %3323 = vmatpush1.bf16.msra.mxu0 %v5210_v53  ;;  %3651 = vmatpush1.bf16.msra.mxu1 %v5213_v54  ;;  %v5305_v53 = vld [vmem:[%s7409_s1 + $0x928] ss:$16 sps:$4 sm:$0xff]   ;;  %v5310_v54 = vld [vmem:[%s7409_s1 + $0x944] ss:$16 sps:$4 sm:$0xff]  }
  0xec   :  { %3324 = vmatprep.subr.bf16.mxu0 %v5218_v55  ;;  %3652 = vmatprep.subr.bf16.mxu1 %v5221_v56  ;;  %v5313_v55 = vld [vmem:[%s7409_s1 + $0x94c] ss:$16 sps:$4 sm:$0xff]   ;;  %v5308_v56 = vld [vmem:[%s7409_s1 + $0x940] ss:$16 sps:$4 sm:$0xff]  }
  0xef   :  { %3325 = vmatpush1.bf16.msra.mxu0 %v5216_v57  ;;  %3653 = vmatpush1.bf16.msra.mxu1 %v5219_v58  ;;  %v5311_v57 = vld [vmem:[%s7409_s1 + $0x948] ss:$16 sps:$4 sm:$0xff]   ;;  %v5316_v58 = vld [vmem:[%s7409_s1 + $0x964] ss:$16 sps:$4 sm:$0xff]  }
  0xf0   :  { %3326 = vmatprep.subr.bf16.mxu0 %v5224_v59  ;;  %3654 = vmatprep.subr.bf16.mxu1 %v5227_v60  ;;  %v5319_v59 = vld [vmem:[%s7409_s1 + $0x96c] ss:$16 sps:$4 sm:$0xff]   ;;  %v5314_v60 = vld [vmem:[%s7409_s1 + $0x960] ss:$16 sps:$4 sm:$0xff]  }
  0xf3   :  { %3327 = vmatpush1.bf16.msra.mxu0 %v5222_v61  ;;  %3655 = vmatpush1.bf16.msra.mxu1 %v5225_v62  ;;  %v5317_v61 = vld [vmem:[%s7409_s1 + $0x968] ss:$16 sps:$4 sm:$0xff]   ;;  %v5322_v62 = vld [vmem:[%s7409_s1 + $0x984] ss:$16 sps:$4 sm:$0xff]  }
  0xf4   :  { %3328 = vmatprep.subr.bf16.mxu0 %v5230_v63  ;;  %3656 = vmatprep.subr.bf16.mxu1 %v5233_v0  ;;  %v5325_v63 = vld [vmem:[%s7409_s1 + $0x98c] ss:$16 sps:$4 sm:$0xff]   ;;  %v5320_v0 = vld [vmem:[%s7409_s1 + $0x980] ss:$16 sps:$4 sm:$0xff]  }
  0xf7   :  { %3329 = vmatpush1.bf16.msra.mxu0 %v5228_v1  ;;  %3657 = vmatpush1.bf16.msra.mxu1 %v5231_v2  ;;  %v5323_v1 = vld [vmem:[%s7409_s1 + $0x988] ss:$16 sps:$4 sm:$0xff]   ;;  %v5328_v2 = vld [vmem:[%s7409_s1 + $0x9a4] ss:$16 sps:$4 sm:$0xff]  }
  0xf8   :  { %3330 = vmatprep.subr.bf16.mxu0 %v5236_v3  ;;  %3658 = vmatprep.subr.bf16.mxu1 %v5239_v4  ;;  %v5331_v3 = vld [vmem:[%s7409_s1 + $0x9ac] ss:$16 sps:$4 sm:$0xff]   ;;  %v5326_v4 = vld [vmem:[%s7409_s1 + $0x9a0] ss:$16 sps:$4 sm:$0xff]  }
  0xfb   :  { %3331 = vmatpush1.bf16.msra.mxu0 %v5234_v5  ;;  %3659 = vmatpush1.bf16.msra.mxu1 %v5237_v6  ;;  %v5329_v5 = vld [vmem:[%s7409_s1 + $0x9a8] ss:$16 sps:$4 sm:$0xff]   ;;  %v5334_v6 = vld [vmem:[%s7409_s1 + $0x9c4] ss:$16 sps:$4 sm:$0xff]  }
  0xfc   :  { %3332 = vmatprep.subr.bf16.mxu0 %v5242_v7  ;;  %3660 = vmatprep.subr.bf16.mxu1 %v5245_v8  ;;  %v5337_v7 = vld [vmem:[%s7409_s1 + $0x9cc] ss:$16 sps:$4 sm:$0xff]   ;;  %v5332_v8 = vld [vmem:[%s7409_s1 + $0x9c0] ss:$16 sps:$4 sm:$0xff]  }
  0xff   :  { %3333 = vmatpush1.bf16.msra.mxu0 %v5240_v9  ;;  %3661 = vmatpush1.bf16.msra.mxu1 %v5243_v10  ;;  %v5335_v9 = vld [vmem:[%s7409_s1 + $0x9c8] ss:$16 sps:$4 sm:$0xff]   ;;  %v5340_v10 = vld [vmem:[%s7409_s1 + $0x9e4] ss:$16 sps:$4 sm:$0xff]  }
 0x100   :  { %3343 = vmatprep.subr.bf16.mxu0 %v5250_v12  ;;  %3671 = vmatprep.subr.bf16.mxu1 %v5253_v13  ;;  %v5343_v12 = vld [vmem:[%s7409_s1 + $0x9ec] ss:$16 sps:$4 sm:$0xff]   ;;  %v5338_v13 = vld [vmem:[%s7409_s1 + $0x9e0] ss:$16 sps:$4 sm:$0xff]  }
 0x102   :  { %3335 = vmatmul.mubr.bf16.vlgmr.msra.gmra.mrb[0].mxu0 %v4197_v11  ;;  %3663 = vmatmul.mubr.bf16.vlgmr.msra.gmra.mrb[0].mxu1 %v4197_v11  ;;  %v5348_v11 = vld [vmem:[%s7409_s1 + $0xa04] ss:$16 sps:$4 sm:$0xff]  }
 0x103   :  { %3344 = vmatpush1.bf16.msra.mxu0 %v5248_v15  ;;  %3672 = vmatpush1.bf16.msra.mxu1 %v5251_v17  ;;  %v5341_v15 = vld [vmem:[%s7409_s1 + $0x9e8] ss:$16 sps:$4 sm:$0xff]   ;;  %v5351_v17 = vld [vmem:[%s7409_s1 + $0xa0c] ss:$16 sps:$4 sm:$0xff]  }
 0x104   :  { %3345 = vmatprep.subr.bf16.mxu0 %v5256_v18  ;;  %3673 = vmatprep.subr.bf16.mxu1 %v5259_v14  ;;  %v6708_v18 = vld [vmem:[%s7410_s0 + $0x28] sm:$0xff]  ;;  %v4199_v14 = vcombine.low %v6512_v16, %v6512_v16 }
 0x105   :  { %3375 = vmatprep.mubr.bf16.mxu0 %v4200_v19  ;;  %3703 = vmatprep.mubr.bf16.mxu1 %v4200_v19  ;;  %v5346_v19 = vld [vmem:[%s7409_s1 + $0xa00] ss:$16 sps:$4 sm:$0xff]   ;;  %v5357_v16 = vld [vmem:[%s7409_s1 + $0xa2c] ss:$16 sps:$4 sm:$0xff]  }
 0x107   :  { %3346 = vmatpush1.bf16.msra.mxu0 %v5254_v20  ;;  %3674 = vmatpush1.bf16.msra.mxu1 %v5257_v21  ;;  %v5349_v20 = vld [vmem:[%s7409_s1 + $0xa08] ss:$16 sps:$4 sm:$0xff]   ;;  %v5354_v21 = vld [vmem:[%s7409_s1 + $0xa24] ss:$16 sps:$4 sm:$0xff]  }
 0x108   :  { %3347 = vmatprep.subr.bf16.mxu0 %v5262_v22  ;;  %3675 = vmatprep.subr.bf16.mxu1 %v5265_v23  ;;  %v4202_v22 = vcombine.high %v6708_v18, %v6708_v18  ;;  %v5352_v23 = vld [vmem:[%s7409_s1 + $0xa20] ss:$16 sps:$4 sm:$0xff]  }
 0x10b   :  { %3348 = vmatpush1.bf16.msra.mxu0 %v5260_v24  ;;  %3676 = vmatpush1.bf16.msra.mxu1 %v5263_v25  ;;  %v5355_v24 = vld [vmem:[%s7409_s1 + $0xa28] ss:$16 sps:$4 sm:$0xff]   ;;  %v5360_v25 = vld [vmem:[%s7409_s1 + $0xa44] ss:$16 sps:$4 sm:$0xff]  }
 0x10c   :  { %3349 = vmatprep.subr.bf16.mxu0 %v5268_v26  ;;  %3677 = vmatprep.subr.bf16.mxu1 %v5271_v27  ;;  %v5363_v26 = vld [vmem:[%s7409_s1 + $0xa4c] ss:$16 sps:$4 sm:$0xff]   ;;  %v5358_v27 = vld [vmem:[%s7409_s1 + $0xa40] ss:$16 sps:$4 sm:$0xff]  }
 0x10f   :  { %3350 = vmatpush1.bf16.msra.mxu0 %v5266_v28  ;;  %3678 = vmatpush1.bf16.msra.mxu1 %v5269_v29  ;;  %v5361_v28 = vld [vmem:[%s7409_s1 + $0xa48] ss:$16 sps:$4 sm:$0xff]   ;;  %v5366_v29 = vld [vmem:[%s7409_s1 + $0xa64] ss:$16 sps:$4 sm:$0xff]  }
 0x110   :  { %3351 = vmatprep.subr.bf16.mxu0 %v5274_v30  ;;  %3679 = vmatprep.subr.bf16.mxu1 %v5277_v31  ;;  %v5369_v30 = vld [vmem:[%s7409_s1 + $0xa6c] ss:$16 sps:$4 sm:$0xff]   ;;  %v5364_v31 = vld [vmem:[%s7409_s1 + $0xa60] ss:$16 sps:$4 sm:$0xff]  }
 0x113   :  { %3352 = vmatpush1.bf16.msra.mxu0 %v5272_v32  ;;  %3680 = vmatpush1.bf16.msra.mxu1 %v5275_v33  ;;  %v5367_v32 = vld [vmem:[%s7409_s1 + $0xa68] ss:$16 sps:$4 sm:$0xff]   ;;  %v5372_v33 = vld [vmem:[%s7409_s1 + $0xa84] ss:$16 sps:$4 sm:$0xff]  }
 0x114   :  { %3353 = vmatprep.subr.bf16.mxu0 %v5280_v34  ;;  %3681 = vmatprep.subr.bf16.mxu1 %v5283_v35  ;;  %v5375_v34 = vld [vmem:[%s7409_s1 + $0xa8c] ss:$16 sps:$4 sm:$0xff]   ;;  %v5370_v35 = vld [vmem:[%s7409_s1 + $0xa80] ss:$16 sps:$4 sm:$0xff]  }
 0x117   :  { %3354 = vmatpush1.bf16.msra.mxu0 %v5278_v36  ;;  %3682 = vmatpush1.bf16.msra.mxu1 %v5281_v37  ;;  %v5373_v36 = vld [vmem:[%s7409_s1 + $0xa88] ss:$16 sps:$4 sm:$0xff]   ;;  %v5378_v37 = vld [vmem:[%s7409_s1 + $0xaa4] ss:$16 sps:$4 sm:$0xff]  }
 0x118   :  { %3355 = vmatprep.subr.bf16.mxu0 %v5286_v38  ;;  %3683 = vmatprep.subr.bf16.mxu1 %v5289_v39  ;;  %v5381_v38 = vld [vmem:[%s7409_s1 + $0xaac] ss:$16 sps:$4 sm:$0xff]   ;;  %v5376_v39 = vld [vmem:[%s7409_s1 + $0xaa0] ss:$16 sps:$4 sm:$0xff]  }
 0x11b   :  { %3356 = vmatpush1.bf16.msra.mxu0 %v5284_v40  ;;  %3684 = vmatpush1.bf16.msra.mxu1 %v5287_v41  ;;  %v5379_v40 = vld [vmem:[%s7409_s1 + $0xaa8] ss:$16 sps:$4 sm:$0xff]   ;;  %v5384_v41 = vld [vmem:[%s7409_s1 + $0xac4] ss:$16 sps:$4 sm:$0xff]  }
 0x11c   :  { %3357 = vmatprep.subr.bf16.mxu0 %v5292_v42  ;;  %3685 = vmatprep.subr.bf16.mxu1 %v5295_v43  ;;  %v5387_v42 = vld [vmem:[%s7409_s1 + $0xacc] ss:$16 sps:$4 sm:$0xff]   ;;  %v5382_v43 = vld [vmem:[%s7409_s1 + $0xac0] ss:$16 sps:$4 sm:$0xff]  }
 0x11f   :  { %3358 = vmatpush1.bf16.msra.mxu0 %v5290_v44  ;;  %3686 = vmatpush1.bf16.msra.mxu1 %v5293_v45  ;;  %v5385_v44 = vld [vmem:[%s7409_s1 + $0xac8] ss:$16 sps:$4 sm:$0xff]   ;;  %v5390_v45 = vld [vmem:[%s7409_s1 + $0xae4] ss:$16 sps:$4 sm:$0xff]  }
 0x120   :  { %3359 = vmatprep.subr.bf16.mxu0 %v5298_v46  ;;  %3687 = vmatprep.subr.bf16.mxu1 %v5301_v47  ;;  %v5393_v46 = vld [vmem:[%s7409_s1 + $0xaec] ss:$16 sps:$4 sm:$0xff]   ;;  %v5388_v47 = vld [vmem:[%s7409_s1 + $0xae0] ss:$16 sps:$4 sm:$0xff]  }
 0x123   :  { %3360 = vmatpush1.bf16.msra.mxu0 %v5296_v48  ;;  %3688 = vmatpush1.bf16.msra.mxu1 %v5299_v49  ;;  %v5391_v48 = vld [vmem:[%s7409_s1 + $0xae8] ss:$16 sps:$4 sm:$0xff]   ;;  %v5396_v49 = vld [vmem:[%s7409_s1 + $0xb04] ss:$16 sps:$4 sm:$0xff]  }
 0x124   :  { %3361 = vmatprep.subr.bf16.mxu0 %v5304_v50  ;;  %3689 = vmatprep.subr.bf16.mxu1 %v5307_v51  ;;  %v5399_v50 = vld [vmem:[%s7409_s1 + $0xb0c] ss:$16 sps:$4 sm:$0xff]   ;;  %v5394_v51 = vld [vmem:[%s7409_s1 + $0xb00] ss:$16 sps:$4 sm:$0xff]  }
 0x127   :  { %3362 = vmatpush1.bf16.msra.mxu0 %v5302_v52  ;;  %3690 = vmatpush1.bf16.msra.mxu1 %v5305_v53  ;;  %v5397_v52 = vld [vmem:[%s7409_s1 + $0xb08] ss:$16 sps:$4 sm:$0xff]   ;;  %v5402_v53 = vld [vmem:[%s7409_s1 + $0xb24] ss:$16 sps:$4 sm:$0xff]  }
 0x128   :  { %3363 = vmatprep.subr.bf16.mxu0 %v5310_v54  ;;  %3691 = vmatprep.subr.bf16.mxu1 %v5313_v55  ;;  %v5405_v54 = vld [vmem:[%s7409_s1 + $0xb2c] ss:$16 sps:$4 sm:$0xff]   ;;  %v5400_v55 = vld [vmem:[%s7409_s1 + $0xb20] ss:$16 sps:$4 sm:$0xff]  }
 0x12b   :  { %3364 = vmatpush1.bf16.msra.mxu0 %v5308_v56  ;;  %3692 = vmatpush1.bf16.msra.mxu1 %v5311_v57  ;;  %v5403_v56 = vld [vmem:[%s7409_s1 + $0xb28] ss:$16 sps:$4 sm:$0xff]   ;;  %v5408_v57 = vld [vmem:[%s7409_s1 + $0xb44] ss:$16 sps:$4 sm:$0xff]  }
 0x12c   :  { %3365 = vmatprep.subr.bf16.mxu0 %v5316_v58  ;;  %3693 = vmatprep.subr.bf16.mxu1 %v5319_v59  ;;  %v5411_v58 = vld [vmem:[%s7409_s1 + $0xb4c] ss:$16 sps:$4 sm:$0xff]   ;;  %v5406_v59 = vld [vmem:[%s7409_s1 + $0xb40] ss:$16 sps:$4 sm:$0xff]  }
 0x12f   :  { %3366 = vmatpush1.bf16.msra.mxu0 %v5314_v60  ;;  %3694 = vmatpush1.bf16.msra.mxu1 %v5317_v61  ;;  %v5409_v60 = vld [vmem:[%s7409_s1 + $0xb48] ss:$16 sps:$4 sm:$0xff]   ;;  %v5414_v61 = vld [vmem:[%s7409_s1 + $0xb64] ss:$16 sps:$4 sm:$0xff]  }
 0x130   :  { %3367 = vmatprep.subr.bf16.mxu0 %v5322_v62  ;;  %3695 = vmatprep.subr.bf16.mxu1 %v5325_v63  ;;  %v5417_v62 = vld [vmem:[%s7409_s1 + $0xb6c] ss:$16 sps:$4 sm:$0xff]   ;;  %v5412_v63 = vld [vmem:[%s7409_s1 + $0xb60] ss:$16 sps:$4 sm:$0xff]  }
 0x133   :  { %3368 = vmatpush1.bf16.msra.mxu0 %v5320_v0  ;;  %3696 = vmatpush1.bf16.msra.mxu1 %v5323_v1  ;;  %v5415_v0 = vld [vmem:[%s7409_s1 + $0xb68] ss:$16 sps:$4 sm:$0xff]   ;;  %v5420_v1 = vld [vmem:[%s7409_s1 + $0xb84] ss:$16 sps:$4 sm:$0xff]  }
 0x134   :  { %3369 = vmatprep.subr.bf16.mxu0 %v5328_v2  ;;  %3697 = vmatprep.subr.bf16.mxu1 %v5331_v3  ;;  %v5423_v2 = vld [vmem:[%s7409_s1 + $0xb8c] ss:$16 sps:$4 sm:$0xff]   ;;  %v5418_v3 = vld [vmem:[%s7409_s1 + $0xb80] ss:$16 sps:$4 sm:$0xff]  }
 0x137   :  { %3370 = vmatpush1.bf16.msra.mxu0 %v5326_v4  ;;  %3698 = vmatpush1.bf16.msra.mxu1 %v5329_v5  ;;  %v5421_v4 = vld [vmem:[%s7409_s1 + $0xb88] ss:$16 sps:$4 sm:$0xff]   ;;  %v5426_v5 = vld [vmem:[%s7409_s1 + $0xba4] ss:$16 sps:$4 sm:$0xff]  }
 0x138   :  { %3371 = vmatprep.subr.bf16.mxu0 %v5334_v6  ;;  %3699 = vmatprep.subr.bf16.mxu1 %v5337_v7  ;;  %v5429_v6 = vld [vmem:[%s7409_s1 + $0xbac] ss:$16 sps:$4 sm:$0xff]   ;;  %v5424_v7 = vld [vmem:[%s7409_s1 + $0xba0] ss:$16 sps:$4 sm:$0xff]  }
 0x13b   :  { %3372 = vmatpush1.bf16.msra.mxu0 %v5332_v8  ;;  %3700 = vmatpush1.bf16.msra.mxu1 %v5335_v9  ;;  %v5427_v8 = vld [vmem:[%s7409_s1 + $0xba8] ss:$16 sps:$4 sm:$0xff]   ;;  %v5432_v9 = vld [vmem:[%s7409_s1 + $0xbc4] ss:$16 sps:$4 sm:$0xff]  }
 0x13c   :  { %3373 = vmatprep.subr.bf16.mxu0 %v5340_v10  ;;  %3701 = vmatprep.subr.bf16.mxu1 %v5343_v12  ;;  %v5435_v10 = vld [vmem:[%s7409_s1 + $0xbcc] ss:$16 sps:$4 sm:$0xff]   ;;  %v5430_v12 = vld [vmem:[%s7409_s1 + $0xbc0] ss:$16 sps:$4 sm:$0xff]  }
 0x13f   :  { %3374 = vmatpush1.bf16.msra.mxu0 %v5338_v13  ;;  %3702 = vmatpush1.bf16.msra.mxu1 %v5341_v15  ;;  %v5433_v13 = vld [vmem:[%s7409_s1 + $0xbc8] ss:$16 sps:$4 sm:$0xff]   ;;  %v5438_v15 = vld [vmem:[%s7409_s1 + $0xbe4] ss:$16 sps:$4 sm:$0xff]  }
 0x140   :  { %3384 = vmatprep.subr.bf16.mxu0 %v5348_v11  ;;  %3712 = vmatprep.subr.bf16.mxu1 %v5351_v17  ;;  %v5441_v11 = vld [vmem:[%s7409_s1 + $0xbec] ss:$16 sps:$4 sm:$0xff]   ;;  %v5436_v17 = vld [vmem:[%s7409_s1 + $0xbe0] ss:$16 sps:$4 sm:$0xff]  }
 0x142   :  { %3376 = vmatmul.mubr.bf16.vlgmr.msra.gmra.mrb[0].mxu0 %v4199_v14  ;;  %3704 = vmatmul.mubr.bf16.vlgmr.msra.gmra.mrb[0].mxu1 %v4199_v14  ;;  %v5439_v14 = vld [vmem:[%s7409_s1 + $0xbe8] ss:$16 sps:$4 sm:$0xff]  }
 0x143   :  { %3385 = vmatpush1.bf16.msra.mxu0 %v5346_v19  ;;  %3713 = vmatpush1.bf16.msra.mxu1 %v5349_v20  ;;  %v5446_v19 = vld [vmem:[%s7409_s1 + $0xc04] ss:$16 sps:$4 sm:$0xff]   ;;  %v5449_v20 = vld [vmem:[%s7409_s1 + $0xc0c] ss:$16 sps:$4 sm:$0xff]  }
 0x144   :  { %3386 = vmatprep.subr.bf16.mxu0 %v5354_v21  ;;  %3714 = vmatprep.subr.bf16.mxu1 %v5357_v16  ;;  %v4201_v21 = vcombine.low %v6708_v18, %v6708_v18  ;;  %v6911_v16 = vld [vmem:[%s7410_s0 + $0x30] sm:$0xff] }
 0x145   :  { %3416 = vmatprep.mubr.bf16.mxu0 %v4202_v22  ;;  %3744 = vmatprep.mubr.bf16.mxu1 %v4202_v22  ;;  %v5444_v22 = vld [vmem:[%s7409_s1 + $0xc00] ss:$16 sps:$4 sm:$0xff]   ;;  %v5452_v18 = vld [vmem:[%s7409_s1 + $0xc24] ss:$16 sps:$4 sm:$0xff]  }
 0x147   :  { %3387 = vmatpush1.bf16.msra.mxu0 %v5352_v23  ;;  %3715 = vmatpush1.bf16.msra.mxu1 %v5355_v24  ;;  %v5447_v23 = vld [vmem:[%s7409_s1 + $0xc08] ss:$16 sps:$4 sm:$0xff]   ;;  %v5455_v24 = vld [vmem:[%s7409_s1 + $0xc2c] ss:$16 sps:$4 sm:$0xff]  }
 0x148   :  { %3388 = vmatprep.subr.bf16.mxu0 %v5360_v25  ;;  %3716 = vmatprep.subr.bf16.mxu1 %v5363_v26  ;;  %v4204_v25 = vcombine.high %v6911_v16, %v6911_v16  ;;  %v5450_v26 = vld [vmem:[%s7409_s1 + $0xc20] ss:$16 sps:$4 sm:$0xff]  }
 0x14b   :  { %3389 = vmatpush1.bf16.msra.mxu0 %v5358_v27  ;;  %3717 = vmatpush1.bf16.msra.mxu1 %v5361_v28  ;;  %v5453_v27 = vld [vmem:[%s7409_s1 + $0xc28] ss:$16 sps:$4 sm:$0xff]   ;;  %v5458_v28 = vld [vmem:[%s7409_s1 + $0xc44] ss:$16 sps:$4 sm:$0xff]  }
 0x14c   :  { %3390 = vmatprep.subr.bf16.mxu0 %v5366_v29  ;;  %3718 = vmatprep.subr.bf16.mxu1 %v5369_v30  ;;  %v5461_v29 = vld [vmem:[%s7409_s1 + $0xc4c] ss:$16 sps:$4 sm:$0xff]   ;;  %v5456_v30 = vld [vmem:[%s7409_s1 + $0xc40] ss:$16 sps:$4 sm:$0xff]  }
 0x14f   :  { %3391 = vmatpush1.bf16.msra.mxu0 %v5364_v31  ;;  %3719 = vmatpush1.bf16.msra.mxu1 %v5367_v32  ;;  %v5459_v31 = vld [vmem:[%s7409_s1 + $0xc48] ss:$16 sps:$4 sm:$0xff]   ;;  %v5464_v32 = vld [vmem:[%s7409_s1 + $0xc64] ss:$16 sps:$4 sm:$0xff]  }
 0x150   :  { %3392 = vmatprep.subr.bf16.mxu0 %v5372_v33  ;;  %3720 = vmatprep.subr.bf16.mxu1 %v5375_v34  ;;  %v5467_v33 = vld [vmem:[%s7409_s1 + $0xc6c] ss:$16 sps:$4 sm:$0xff]   ;;  %v5462_v34 = vld [vmem:[%s7409_s1 + $0xc60] ss:$16 sps:$4 sm:$0xff]  }
 0x153   :  { %3393 = vmatpush1.bf16.msra.mxu0 %v5370_v35  ;;  %3721 = vmatpush1.bf16.msra.mxu1 %v5373_v36  ;;  %v5465_v35 = vld [vmem:[%s7409_s1 + $0xc68] ss:$16 sps:$4 sm:$0xff]   ;;  %v5470_v36 = vld [vmem:[%s7409_s1 + $0xc84] ss:$16 sps:$4 sm:$0xff]  }
 0x154   :  { %3394 = vmatprep.subr.bf16.mxu0 %v5378_v37  ;;  %3722 = vmatprep.subr.bf16.mxu1 %v5381_v38  ;;  %v5473_v37 = vld [vmem:[%s7409_s1 + $0xc8c] ss:$16 sps:$4 sm:$0xff]   ;;  %v5468_v38 = vld [vmem:[%s7409_s1 + $0xc80] ss:$16 sps:$4 sm:$0xff]  }
 0x157   :  { %3395 = vmatpush1.bf16.msra.mxu0 %v5376_v39  ;;  %3723 = vmatpush1.bf16.msra.mxu1 %v5379_v40  ;;  %v5471_v39 = vld [vmem:[%s7409_s1 + $0xc88] ss:$16 sps:$4 sm:$0xff]   ;;  %v5476_v40 = vld [vmem:[%s7409_s1 + $0xca4] ss:$16 sps:$4 sm:$0xff]  }
 0x158   :  { %3396 = vmatprep.subr.bf16.mxu0 %v5384_v41  ;;  %3724 = vmatprep.subr.bf16.mxu1 %v5387_v42  ;;  %v5479_v41 = vld [vmem:[%s7409_s1 + $0xcac] ss:$16 sps:$4 sm:$0xff]   ;;  %v5474_v42 = vld [vmem:[%s7409_s1 + $0xca0] ss:$16 sps:$4 sm:$0xff]  }
 0x15b   :  { %3397 = vmatpush1.bf16.msra.mxu0 %v5382_v43  ;;  %3725 = vmatpush1.bf16.msra.mxu1 %v5385_v44  ;;  %v5477_v43 = vld [vmem:[%s7409_s1 + $0xca8] ss:$16 sps:$4 sm:$0xff]   ;;  %v5482_v44 = vld [vmem:[%s7409_s1 + $0xcc4] ss:$16 sps:$4 sm:$0xff]  }
 0x15c   :  { %3398 = vmatprep.subr.bf16.mxu0 %v5390_v45  ;;  %3726 = vmatprep.subr.bf16.mxu1 %v5393_v46  ;;  %v5485_v45 = vld [vmem:[%s7409_s1 + $0xccc] ss:$16 sps:$4 sm:$0xff]   ;;  %v5480_v46 = vld [vmem:[%s7409_s1 + $0xcc0] ss:$16 sps:$4 sm:$0xff]  }
 0x15f   :  { %3399 = vmatpush1.bf16.msra.mxu0 %v5388_v47  ;;  %3727 = vmatpush1.bf16.msra.mxu1 %v5391_v48  ;;  %v5483_v47 = vld [vmem:[%s7409_s1 + $0xcc8] ss:$16 sps:$4 sm:$0xff]   ;;  %v5488_v48 = vld [vmem:[%s7409_s1 + $0xce4] ss:$16 sps:$4 sm:$0xff]  }
 0x160   :  { %3400 = vmatprep.subr.bf16.mxu0 %v5396_v49  ;;  %3728 = vmatprep.subr.bf16.mxu1 %v5399_v50  ;;  %v5491_v49 = vld [vmem:[%s7409_s1 + $0xcec] ss:$16 sps:$4 sm:$0xff]   ;;  %v5486_v50 = vld [vmem:[%s7409_s1 + $0xce0] ss:$16 sps:$4 sm:$0xff]  }
 0x163   :  { %3401 = vmatpush1.bf16.msra.mxu0 %v5394_v51  ;;  %3729 = vmatpush1.bf16.msra.mxu1 %v5397_v52  ;;  %v5489_v51 = vld [vmem:[%s7409_s1 + $0xce8] ss:$16 sps:$4 sm:$0xff]   ;;  %v5494_v52 = vld [vmem:[%s7409_s1 + $0xd04] ss:$16 sps:$4 sm:$0xff]  }
 0x164   :  { %3402 = vmatprep.subr.bf16.mxu0 %v5402_v53  ;;  %3730 = vmatprep.subr.bf16.mxu1 %v5405_v54  ;;  %v5497_v53 = vld [vmem:[%s7409_s1 + $0xd0c] ss:$16 sps:$4 sm:$0xff]   ;;  %v5492_v54 = vld [vmem:[%s7409_s1 + $0xd00] ss:$16 sps:$4 sm:$0xff]  }
 0x167   :  { %3403 = vmatpush1.bf16.msra.mxu0 %v5400_v55  ;;  %3731 = vmatpush1.bf16.msra.mxu1 %v5403_v56  ;;  %v5495_v55 = vld [vmem:[%s7409_s1 + $0xd08] ss:$16 sps:$4 sm:$0xff]   ;;  %v5500_v56 = vld [vmem:[%s7409_s1 + $0xd24] ss:$16 sps:$4 sm:$0xff]  }
 0x168   :  { %3404 = vmatprep.subr.bf16.mxu0 %v5408_v57  ;;  %3732 = vmatprep.subr.bf16.mxu1 %v5411_v58  ;;  %v5503_v57 = vld [vmem:[%s7409_s1 + $0xd2c] ss:$16 sps:$4 sm:$0xff]   ;;  %v5498_v58 = vld [vmem:[%s7409_s1 + $0xd20] ss:$16 sps:$4 sm:$0xff]  }
 0x16b   :  { %3405 = vmatpush1.bf16.msra.mxu0 %v5406_v59  ;;  %3733 = vmatpush1.bf16.msra.mxu1 %v5409_v60  ;;  %v5501_v59 = vld [vmem:[%s7409_s1 + $0xd28] ss:$16 sps:$4 sm:$0xff]   ;;  %v5506_v60 = vld [vmem:[%s7409_s1 + $0xd44] ss:$16 sps:$4 sm:$0xff]  }
 0x16c   :  { %3406 = vmatprep.subr.bf16.mxu0 %v5414_v61  ;;  %3734 = vmatprep.subr.bf16.mxu1 %v5417_v62  ;;  %v5509_v61 = vld [vmem:[%s7409_s1 + $0xd4c] ss:$16 sps:$4 sm:$0xff]   ;;  %v5504_v62 = vld [vmem:[%s7409_s1 + $0xd40] ss:$16 sps:$4 sm:$0xff]  }
 0x16f   :  { %3407 = vmatpush1.bf16.msra.mxu0 %v5412_v63  ;;  %3735 = vmatpush1.bf16.msra.mxu1 %v5415_v0  ;;  %v5507_v63 = vld [vmem:[%s7409_s1 + $0xd48] ss:$16 sps:$4 sm:$0xff]   ;;  %v5512_v0 = vld [vmem:[%s7409_s1 + $0xd64] ss:$16 sps:$4 sm:$0xff]  }
 0x170   :  { %3408 = vmatprep.subr.bf16.mxu0 %v5420_v1  ;;  %3736 = vmatprep.subr.bf16.mxu1 %v5423_v2  ;;  %v5515_v1 = vld [vmem:[%s7409_s1 + $0xd6c] ss:$16 sps:$4 sm:$0xff]   ;;  %v5510_v2 = vld [vmem:[%s7409_s1 + $0xd60] ss:$16 sps:$4 sm:$0xff]  }
 0x173   :  { %3409 = vmatpush1.bf16.msra.mxu0 %v5418_v3  ;;  %3737 = vmatpush1.bf16.msra.mxu1 %v5421_v4  ;;  %v5513_v3 = vld [vmem:[%s7409_s1 + $0xd68] ss:$16 sps:$4 sm:$0xff]   ;;  %v5518_v4 = vld [vmem:[%s7409_s1 + $0xd84] ss:$16 sps:$4 sm:$0xff]  }
 0x174   :  { %3410 = vmatprep.subr.bf16.mxu0 %v5426_v5  ;;  %3738 = vmatprep.subr.bf16.mxu1 %v5429_v6  ;;  %v5521_v5 = vld [vmem:[%s7409_s1 + $0xd8c] ss:$16 sps:$4 sm:$0xff]   ;;  %v5516_v6 = vld [vmem:[%s7409_s1 + $0xd80] ss:$16 sps:$4 sm:$0xff]  }
 0x177   :  { %3411 = vmatpush1.bf16.msra.mxu0 %v5424_v7  ;;  %3739 = vmatpush1.bf16.msra.mxu1 %v5427_v8  ;;  %v5519_v7 = vld [vmem:[%s7409_s1 + $0xd88] ss:$16 sps:$4 sm:$0xff]   ;;  %v5524_v8 = vld [vmem:[%s7409_s1 + $0xda4] ss:$16 sps:$4 sm:$0xff]  }
 0x178   :  { %3412 = vmatprep.subr.bf16.mxu0 %v5432_v9  ;;  %3740 = vmatprep.subr.bf16.mxu1 %v5435_v10  ;;  %v5527_v9 = vld [vmem:[%s7409_s1 + $0xdac] ss:$16 sps:$4 sm:$0xff]   ;;  %v5522_v10 = vld [vmem:[%s7409_s1 + $0xda0] ss:$16 sps:$4 sm:$0xff]  }
 0x17b   :  { %3413 = vmatpush1.bf16.msra.mxu0 %v5430_v12  ;;  %3741 = vmatpush1.bf16.msra.mxu1 %v5433_v13  ;;  %v5525_v12 = vld [vmem:[%s7409_s1 + $0xda8] ss:$16 sps:$4 sm:$0xff]   ;;  %v5530_v13 = vld [vmem:[%s7409_s1 + $0xdc4] ss:$16 sps:$4 sm:$0xff]  }
 0x17c   :  { %3414 = vmatprep.subr.bf16.mxu0 %v5438_v15  ;;  %3742 = vmatprep.subr.bf16.mxu1 %v5441_v11  ;;  %v5533_v15 = vld [vmem:[%s7409_s1 + $0xdcc] ss:$16 sps:$4 sm:$0xff]   ;;  %v5528_v11 = vld [vmem:[%s7409_s1 + $0xdc0] ss:$16 sps:$4 sm:$0xff]  }
 0x17f   :  { %3415 = vmatpush1.bf16.msra.mxu0 %v5436_v17  ;;  %3743 = vmatpush1.bf16.msra.mxu1 %v5439_v14  ;;  %v5531_v17 = vld [vmem:[%s7409_s1 + $0xdc8] ss:$16 sps:$4 sm:$0xff]   ;;  %v5536_v14 = vld [vmem:[%s7409_s1 + $0xde4] ss:$16 sps:$4 sm:$0xff]  }
 0x180   :  { %3425 = vmatprep.subr.bf16.mxu0 %v5446_v19  ;;  %3753 = vmatprep.subr.bf16.mxu1 %v5449_v20  ;;  %v5539_v19 = vld [vmem:[%s7409_s1 + $0xdec] ss:$16 sps:$4 sm:$0xff]   ;;  %v5534_v20 = vld [vmem:[%s7409_s1 + $0xde0] ss:$16 sps:$4 sm:$0xff]  }
 0x182   :  { %3417 = vmatmul.mubr.bf16.vlgmr.msra.gmra.mrb[0].mxu0 %v4201_v21  ;;  %3745 = vmatmul.mubr.bf16.vlgmr.msra.gmra.mrb[0].mxu1 %v4201_v21  ;;  %v5537_v21 = vld [vmem:[%s7409_s1 + $0xde8] ss:$16 sps:$4 sm:$0xff]  }
 0x183   :  { %3426 = vmatpush1.bf16.msra.mxu0 %v5444_v22  ;;  %3754 = vmatpush1.bf16.msra.mxu1 %v5447_v23  ;;  %v5544_v22 = vld [vmem:[%s7409_s1 + $0xe04] ss:$16 sps:$4 sm:$0xff]   ;;  %v5547_v23 = vld [vmem:[%s7409_s1 + $0xe0c] ss:$16 sps:$4 sm:$0xff]  }
 0x184   :  { %3427 = vmatprep.subr.bf16.mxu0 %v5452_v18  ;;  %3755 = vmatprep.subr.bf16.mxu1 %v5455_v24  ;;  %v4203_v18 = vcombine.low %v6911_v16, %v6911_v16  ;;  %v7112_v24 = vld [vmem:[%s7410_s0 + $0x38] sm:$0xff]  ;;  %v5550_v16 = vld [vmem:[%s7409_s1 + $0xe24] ss:$16 sps:$4 sm:$0xff]  }
 0x185   :  { %3457 = vmatprep.mubr.bf16.mxu0 %v4204_v25  ;;  %3785 = vmatprep.mubr.bf16.mxu1 %v4204_v25  ;;  %v5542_v25 = vld [vmem:[%s7409_s1 + $0xe00] ss:$16 sps:$4 sm:$0xff]  }
 0x187   :  { %3428 = vmatpush1.bf16.msra.mxu0 %v5450_v26  ;;  %3756 = vmatpush1.bf16.msra.mxu1 %v5453_v27  ;;  %v5545_v26 = vld [vmem:[%s7409_s1 + $0xe08] ss:$16 sps:$4 sm:$0xff]   ;;  %v5553_v27 = vld [vmem:[%s7409_s1 + $0xe2c] ss:$16 sps:$4 sm:$0xff]  }
 0x188   :  { %3429 = vmatprep.subr.bf16.mxu0 %v5458_v28  ;;  %3757 = vmatprep.subr.bf16.mxu1 %v5461_v29  ;;  %v4206_v28 = vcombine.high %v7112_v24, %v7112_v24  ;;  %v5548_v29 = vld [vmem:[%s7409_s1 + $0xe20] ss:$16 sps:$4 sm:$0xff]  }
 0x18b   :  { %3430 = vmatpush1.bf16.msra.mxu0 %v5456_v30  ;;  %3758 = vmatpush1.bf16.msra.mxu1 %v5459_v31  ;;  %v5551_v30 = vld [vmem:[%s7409_s1 + $0xe28] ss:$16 sps:$4 sm:$0xff]   ;;  %v5556_v31 = vld [vmem:[%s7409_s1 + $0xe44] ss:$16 sps:$4 sm:$0xff]  }
 0x18c   :  { %3431 = vmatprep.subr.bf16.mxu0 %v5464_v32  ;;  %3759 = vmatprep.subr.bf16.mxu1 %v5467_v33  ;;  %v5559_v32 = vld [vmem:[%s7409_s1 + $0xe4c] ss:$16 sps:$4 sm:$0xff]   ;;  %v5554_v33 = vld [vmem:[%s7409_s1 + $0xe40] ss:$16 sps:$4 sm:$0xff]  }
 0x18f   :  { %3432 = vmatpush1.bf16.msra.mxu0 %v5462_v34  ;;  %3760 = vmatpush1.bf16.msra.mxu1 %v5465_v35  ;;  %v5557_v34 = vld [vmem:[%s7409_s1 + $0xe48] ss:$16 sps:$4 sm:$0xff]   ;;  %v5562_v35 = vld [vmem:[%s7409_s1 + $0xe64] ss:$16 sps:$4 sm:$0xff]  }
 0x190   :  { %3433 = vmatprep.subr.bf16.mxu0 %v5470_v36  ;;  %3761 = vmatprep.subr.bf16.mxu1 %v5473_v37  ;;  %v5565_v36 = vld [vmem:[%s7409_s1 + $0xe6c] ss:$16 sps:$4 sm:$0xff]   ;;  %v5560_v37 = vld [vmem:[%s7409_s1 + $0xe60] ss:$16 sps:$4 sm:$0xff]  }
 0x193   :  { %3434 = vmatpush1.bf16.msra.mxu0 %v5468_v38  ;;  %3762 = vmatpush1.bf16.msra.mxu1 %v5471_v39  ;;  %v5563_v38 = vld [vmem:[%s7409_s1 + $0xe68] ss:$16 sps:$4 sm:$0xff]   ;;  %v5568_v39 = vld [vmem:[%s7409_s1 + $0xe84] ss:$16 sps:$4 sm:$0xff]  }
 0x194   :  { %3435 = vmatprep.subr.bf16.mxu0 %v5476_v40  ;;  %3763 = vmatprep.subr.bf16.mxu1 %v5479_v41  ;;  %v5571_v40 = vld [vmem:[%s7409_s1 + $0xe8c] ss:$16 sps:$4 sm:$0xff]   ;;  %v5566_v41 = vld [vmem:[%s7409_s1 + $0xe80] ss:$16 sps:$4 sm:$0xff]  }
 0x197   :  { %3436 = vmatpush1.bf16.msra.mxu0 %v5474_v42  ;;  %3764 = vmatpush1.bf16.msra.mxu1 %v5477_v43  ;;  %v5569_v42 = vld [vmem:[%s7409_s1 + $0xe88] ss:$16 sps:$4 sm:$0xff]   ;;  %v5574_v43 = vld [vmem:[%s7409_s1 + $0xea4] ss:$16 sps:$4 sm:$0xff]  }
 0x198   :  { %3437 = vmatprep.subr.bf16.mxu0 %v5482_v44  ;;  %3765 = vmatprep.subr.bf16.mxu1 %v5485_v45  ;;  %v5577_v44 = vld [vmem:[%s7409_s1 + $0xeac] ss:$16 sps:$4 sm:$0xff]   ;;  %v5572_v45 = vld [vmem:[%s7409_s1 + $0xea0] ss:$16 sps:$4 sm:$0xff]  }
 0x19b   :  { %3438 = vmatpush1.bf16.msra.mxu0 %v5480_v46  ;;  %3766 = vmatpush1.bf16.msra.mxu1 %v5483_v47  ;;  %v5575_v46 = vld [vmem:[%s7409_s1 + $0xea8] ss:$16 sps:$4 sm:$0xff]   ;;  %v5580_v47 = vld [vmem:[%s7409_s1 + $0xec4] ss:$16 sps:$4 sm:$0xff]  }
 0x19c   :  { %3439 = vmatprep.subr.bf16.mxu0 %v5488_v48  ;;  %3767 = vmatprep.subr.bf16.mxu1 %v5491_v49  ;;  %v5583_v48 = vld [vmem:[%s7409_s1 + $0xecc] ss:$16 sps:$4 sm:$0xff]   ;;  %v5578_v49 = vld [vmem:[%s7409_s1 + $0xec0] ss:$16 sps:$4 sm:$0xff]  }
 0x19f   :  { %3440 = vmatpush1.bf16.msra.mxu0 %v5486_v50  ;;  %3768 = vmatpush1.bf16.msra.mxu1 %v5489_v51  ;;  %v5581_v50 = vld [vmem:[%s7409_s1 + $0xec8] ss:$16 sps:$4 sm:$0xff]   ;;  %v5586_v51 = vld [vmem:[%s7409_s1 + $0xee4] ss:$16 sps:$4 sm:$0xff]  }
 0x1a0   :  { %3441 = vmatprep.subr.bf16.mxu0 %v5494_v52  ;;  %3769 = vmatprep.subr.bf16.mxu1 %v5497_v53  ;;  %v5589_v52 = vld [vmem:[%s7409_s1 + $0xeec] ss:$16 sps:$4 sm:$0xff]   ;;  %v5584_v53 = vld [vmem:[%s7409_s1 + $0xee0] ss:$16 sps:$4 sm:$0xff]  }
 0x1a3   :  { %3442 = vmatpush1.bf16.msra.mxu0 %v5492_v54  ;;  %3770 = vmatpush1.bf16.msra.mxu1 %v5495_v55  ;;  %v5587_v54 = vld [vmem:[%s7409_s1 + $0xee8] ss:$16 sps:$4 sm:$0xff]   ;;  %v5592_v55 = vld [vmem:[%s7409_s1 + $0xf04] ss:$16 sps:$4 sm:$0xff]  }
 0x1a4   :  { %3443 = vmatprep.subr.bf16.mxu0 %v5500_v56  ;;  %3771 = vmatprep.subr.bf16.mxu1 %v5503_v57  ;;  %v5595_v56 = vld [vmem:[%s7409_s1 + $0xf0c] ss:$16 sps:$4 sm:$0xff]   ;;  %v5590_v57 = vld [vmem:[%s7409_s1 + $0xf00] ss:$16 sps:$4 sm:$0xff]  }
 0x1a7   :  { %3444 = vmatpush1.bf16.msra.mxu0 %v5498_v58  ;;  %3772 = vmatpush1.bf16.msra.mxu1 %v5501_v59  ;;  %v5593_v58 = vld [vmem:[%s7409_s1 + $0xf08] ss:$16 sps:$4 sm:$0xff]   ;;  %v5598_v59 = vld [vmem:[%s7409_s1 + $0xf24] ss:$16 sps:$4 sm:$0xff]  }
 0x1a8   :  { %3445 = vmatprep.subr.bf16.mxu0 %v5506_v60  ;;  %3773 = vmatprep.subr.bf16.mxu1 %v5509_v61  ;;  %v5601_v60 = vld [vmem:[%s7409_s1 + $0xf2c] ss:$16 sps:$4 sm:$0xff]   ;;  %v5596_v61 = vld [vmem:[%s7409_s1 + $0xf20] ss:$16 sps:$4 sm:$0xff]  }
 0x1ab   :  { %3446 = vmatpush1.bf16.msra.mxu0 %v5504_v62  ;;  %3774 = vmatpush1.bf16.msra.mxu1 %v5507_v63  ;;  %v5599_v62 = vld [vmem:[%s7409_s1 + $0xf28] ss:$16 sps:$4 sm:$0xff]   ;;  %v5604_v63 = vld [vmem:[%s7409_s1 + $0xf44] ss:$16 sps:$4 sm:$0xff]  }
 0x1ac   :  { %3447 = vmatprep.subr.bf16.mxu0 %v5512_v0  ;;  %3775 = vmatprep.subr.bf16.mxu1 %v5515_v1  ;;  %v5607_v0 = vld [vmem:[%s7409_s1 + $0xf4c] ss:$16 sps:$4 sm:$0xff]   ;;  %v5602_v1 = vld [vmem:[%s7409_s1 + $0xf40] ss:$16 sps:$4 sm:$0xff]  }
 0x1af   :  { %3448 = vmatpush1.bf16.msra.mxu0 %v5510_v2  ;;  %3776 = vmatpush1.bf16.msra.mxu1 %v5513_v3  ;;  %v5605_v2 = vld [vmem:[%s7409_s1 + $0xf48] ss:$16 sps:$4 sm:$0xff]   ;;  %v5610_v3 = vld [vmem:[%s7409_s1 + $0xf64] ss:$16 sps:$4 sm:$0xff]  }
 0x1b0   :  { %3449 = vmatprep.subr.bf16.mxu0 %v5518_v4  ;;  %3777 = vmatprep.subr.bf16.mxu1 %v5521_v5  ;;  %v5613_v4 = vld [vmem:[%s7409_s1 + $0xf6c] ss:$16 sps:$4 sm:$0xff]   ;;  %v5608_v5 = vld [vmem:[%s7409_s1 + $0xf60] ss:$16 sps:$4 sm:$0xff]  }
 0x1b3   :  { %3450 = vmatpush1.bf16.msra.mxu0 %v5516_v6  ;;  %3778 = vmatpush1.bf16.msra.mxu1 %v5519_v7  ;;  %v5611_v6 = vld [vmem:[%s7409_s1 + $0xf68] ss:$16 sps:$4 sm:$0xff]   ;;  %v5616_v7 = vld [vmem:[%s7409_s1 + $0xf84] ss:$16 sps:$4 sm:$0xff]  }
 0x1b4   :  { %3451 = vmatprep.subr.bf16.mxu0 %v5524_v8  ;;  %3779 = vmatprep.subr.bf16.mxu1 %v5527_v9  ;;  %v5619_v8 = vld [vmem:[%s7409_s1 + $0xf8c] ss:$16 sps:$4 sm:$0xff]   ;;  %v5614_v9 = vld [vmem:[%s7409_s1 + $0xf80] ss:$16 sps:$4 sm:$0xff]  }
 0x1b7   :  { %3452 = vmatpush1.bf16.msra.mxu0 %v5522_v10  ;;  %3780 = vmatpush1.bf16.msra.mxu1 %v5525_v12  ;;  %v5617_v10 = vld [vmem:[%s7409_s1 + $0xf88] ss:$16 sps:$4 sm:$0xff]   ;;  %v5622_v12 = vld [vmem:[%s7409_s1 + $0xfa4] ss:$16 sps:$4 sm:$0xff]  }
 0x1b8   :  { %3453 = vmatprep.subr.bf16.mxu0 %v5530_v13  ;;  %3781 = vmatprep.subr.bf16.mxu1 %v5533_v15  ;;  %v5625_v13 = vld [vmem:[%s7409_s1 + $0xfac] ss:$16 sps:$4 sm:$0xff]   ;;  %v5620_v15 = vld [vmem:[%s7409_s1 + $0xfa0] ss:$16 sps:$4 sm:$0xff]  }
 0x1bb   :  { %3454 = vmatpush1.bf16.msra.mxu0 %v5528_v11  ;;  %3782 = vmatpush1.bf16.msra.mxu1 %v5531_v17  ;;  %v5623_v11 = vld [vmem:[%s7409_s1 + $0xfa8] ss:$16 sps:$4 sm:$0xff]   ;;  %v5628_v17 = vld [vmem:[%s7409_s1 + $0xfc4] ss:$16 sps:$4 sm:$0xff]  }
 0x1bc   :  { %3455 = vmatprep.subr.bf16.mxu0 %v5536_v14  ;;  %3783 = vmatprep.subr.bf16.mxu1 %v5539_v19  ;;  %v5631_v14 = vld [vmem:[%s7409_s1 + $0xfcc] ss:$16 sps:$4 sm:$0xff]   ;;  %v5626_v19 = vld [vmem:[%s7409_s1 + $0xfc0] ss:$16 sps:$4 sm:$0xff]  }
 0x1bf   :  { %3456 = vmatpush1.bf16.msra.mxu0 %v5534_v20  ;;  %3784 = vmatpush1.bf16.msra.mxu1 %v5537_v21  ;;  %v5629_v20 = vld [vmem:[%s7409_s1 + $0xfc8] ss:$16 sps:$4 sm:$0xff]   ;;  %v5634_v21 = vld [vmem:[%s7409_s1 + $0xfe4] ss:$16 sps:$4 sm:$0xff]  }
 0x1c0   :  { %3466 = vmatprep.subr.bf16.mxu0 %v5544_v22  ;;  %3794 = vmatprep.subr.bf16.mxu1 %v5547_v23  ;;  %v5637_v22 = vld [vmem:[%s7409_s1 + $0xfec] ss:$16 sps:$4 sm:$0xff]   ;;  %v5632_v23 = vld [vmem:[%s7409_s1 + $0xfe0] ss:$16 sps:$4 sm:$0xff]  }
 0x1c2   :  { %3458 = vmatmul.mubr.bf16.vlgmr.msra.gmra.mrb[0].mxu0 %v4203_v18  ;;  %3786 = vmatmul.mubr.bf16.vlgmr.msra.gmra.mrb[0].mxu1 %v4203_v18  ;;  %v5635_v18 = vld [vmem:[%s7409_s1 + $0xfe8] ss:$16 sps:$4 sm:$0xff]  }
 0x1c3   :  { %3467 = vmatpush1.bf16.msra.mxu0 %v5542_v25  ;;  %3795 = vmatpush1.bf16.msra.mxu1 %v5545_v26  ;;  %v5640_v25 = vld [vmem:[%s7411_s3 + $0x40] sm:$0xff]  }
 0x1c4   :  { %3468 = vmatprep.subr.bf16.mxu0 %v5550_v16  ;;  %3796 = vmatprep.subr.bf16.mxu1 %v5553_v27  ;;  %v5641_v26 = vld [vmem:[%s7411_s3 + $0xc0] sm:$0xff]   ;;  %v4205_v16 = vcombine.low %v7112_v24, %v7112_v24  ;;  %v5645_v24 = vld [vmem:[%s7411_s3 + $0xc8] sm:$0xff]  }
 0x1c5   :  { %3498 = vmatprep.mubr.bf16.mxu0 %v4206_v28  ;;  %3826 = vmatprep.mubr.bf16.mxu1 %v4206_v28  ;;  %v5642_v27 = vld [vmem:[%s7411_s3] sm:$0xff]  }
 0x1c6   :  { %v5643_v28 = vld [vmem:[%s7411_s3 + $0x80] sm:$0xff]  }
 0x1c7   :  { %3469 = vmatpush1.bf16.msra.mxu0 %v5548_v29  ;;  %3797 = vmatpush1.bf16.msra.mxu1 %v5551_v30  ;;  %v5644_v29 = vld [vmem:[%s7411_s3 + $0x48] sm:$0xff]  }
 0x1c8   :  { %3470 = vmatprep.subr.bf16.mxu0 %v5556_v31  ;;  %3798 = vmatprep.subr.bf16.mxu1 %v5559_v32  ;;  %v5646_v30 = vld [vmem:[%s7411_s3 + $0x8] sm:$0xff]   ;;  %v5648_v32 = vld [vmem:[%s7411_s3 + $0x50] sm:$0xff]  }
 0x1c9   :  { %v5647_v31 = vld [vmem:[%s7411_s3 + $0x88] sm:$0xff]  }
 0x1cb   :  { %3471 = vmatpush1.bf16.msra.mxu0 %v5554_v33  ;;  %3799 = vmatpush1.bf16.msra.mxu1 %v5557_v34  ;;  %v5649_v33 = vld [vmem:[%s7411_s3 + $0xd0] sm:$0xff]  }
 0x1cc   :  { %3472 = vmatprep.subr.bf16.mxu0 %v5562_v35  ;;  %3800 = vmatprep.subr.bf16.mxu1 %v5565_v36  ;;  %v5650_v34 = vld [vmem:[%s7411_s3 + $0x10] sm:$0xff]   ;;  %v5652_v36 = vld [vmem:[%s7411_s3 + $0x58] sm:$0xff]  }
 0x1cd   :  { %v5651_v35 = vld [vmem:[%s7411_s3 + $0x90] sm:$0xff]  }
 0x1cf   :  { %3473 = vmatpush1.bf16.msra.mxu0 %v5560_v37  ;;  %3801 = vmatpush1.bf16.msra.mxu1 %v5563_v38  ;;  %v5653_v37 = vld [vmem:[%s7411_s3 + $0xd8] sm:$0xff]  }
 0x1d0   :  { %3474 = vmatprep.subr.bf16.mxu0 %v5568_v39  ;;  %3802 = vmatprep.subr.bf16.mxu1 %v5571_v40  ;;  %v5654_v38 = vld [vmem:[%s7411_s3 + $0x18] sm:$0xff]   ;;  %v5656_v40 = vld [vmem:[%s7411_s3 + $0x60] sm:$0xff]  }
 0x1d1   :  { %v5655_v39 = vld [vmem:[%s7411_s3 + $0x98] sm:$0xff]  }
 0x1d3   :  { %3475 = vmatpush1.bf16.msra.mxu0 %v5566_v41  ;;  %3803 = vmatpush1.bf16.msra.mxu1 %v5569_v42  ;;  %v5657_v41 = vld [vmem:[%s7411_s3 + $0xe0] sm:$0xff]  }
 0x1d4   :  { %3476 = vmatprep.subr.bf16.mxu0 %v5574_v43  ;;  %3804 = vmatprep.subr.bf16.mxu1 %v5577_v44  ;;  %v5658_v42 = vld [vmem:[%s7411_s3 + $0x20] sm:$0xff]   ;;  %v5660_v44 = vld [vmem:[%s7411_s3 + $0x68] sm:$0xff]  }
 0x1d5   :  { %v5659_v43 = vld [vmem:[%s7411_s3 + $0xa0] sm:$0xff]  }
 0x1d7   :  { %3477 = vmatpush1.bf16.msra.mxu0 %v5572_v45  ;;  %3805 = vmatpush1.bf16.msra.mxu1 %v5575_v46  ;;  %v5661_v45 = vld [vmem:[%s7411_s3 + $0xe8] sm:$0xff]  }
 0x1d8   :  { %3478 = vmatprep.subr.bf16.mxu0 %v5580_v47  ;;  %3806 = vmatprep.subr.bf16.mxu1 %v5583_v48  ;;  %v5662_v46 = vld [vmem:[%s7411_s3 + $0x28] sm:$0xff]   ;;  %v5664_v48 = vld [vmem:[%s7411_s3 + $0x70] sm:$0xff]  }
 0x1d9   :  { %v5663_v47 = vld [vmem:[%s7411_s3 + $0xa8] sm:$0xff]  }
 0x1db   :  { %3479 = vmatpush1.bf16.msra.mxu0 %v5578_v49  ;;  %3807 = vmatpush1.bf16.msra.mxu1 %v5581_v50  ;;  %v5665_v49 = vld [vmem:[%s7411_s3 + $0xf0] sm:$0xff]  }
 0x1dc   :  { %3480 = vmatprep.subr.bf16.mxu0 %v5586_v51  ;;  %3808 = vmatprep.subr.bf16.mxu1 %v5589_v52  ;;  %v5666_v50 = vld [vmem:[%s7411_s3 + $0x30] sm:$0xff]   ;;  %v5668_v52 = vld [vmem:[%s7411_s3 + $0x78] sm:$0xff]  }
 0x1dd   :  { %v5667_v51 = vld [vmem:[%s7411_s3 + $0xb0] sm:$0xff]  }
 0x1df   :  { %3481 = vmatpush1.bf16.msra.mxu0 %v5584_v53  ;;  %3809 = vmatpush1.bf16.msra.mxu1 %v5587_v54  ;;  %v5669_v53 = vld [vmem:[%s7411_s3 + $0xf8] sm:$0xff]  }
 0x1e0   :  { %3482 = vmatprep.subr.bf16.mxu0 %v5592_v55  ;;  %3810 = vmatprep.subr.bf16.mxu1 %v5595_v56  ;;  %v5670_v54 = vld [vmem:[%s7411_s3 + $0x38] sm:$0xff]   ;;  %v543_v56 = vlaneseq }
 0x1e1   :  { %v5671_v55 = vld [vmem:[%s7411_s3 + $0xb8] sm:$0xff]  }
 0x1e3   :  { %3483 = vmatpush1.bf16.msra.mxu0 %v5590_v57  ;;  %3811 = vmatpush1.bf16.msra.mxu1 %v5593_v58  ;;  %v544_v57 = vshrl.u32 %v543_v56, 7 }
 0x1e4   :  { %3484 = vmatprep.subr.bf16.mxu0 %v5598_v59  ;;  %3812 = vmatprep.subr.bf16.mxu1 %v5601_v60  ;;  %v541_v60 = vld [vmem:[%s7412_s2] sm:$0xf] }
 0x1e5   :  { %v545_v58 = vsub.s32 0, %v544_v57  ;;  %v553_v59 = vsub.s32 2, %v544_v57 }
 0x1e7   :  { %3485 = vmatpush1.bf16.msra.mxu0 %v5596_v61  ;;  %3813 = vmatpush1.bf16.msra.mxu1 %v5599_v62  ;;  %v549_v61 = vsub.s32 1, %v544_v57  ;;  %v557_v62 = vsub.s32 3, %v544_v57 }
 0x1e8   :  { %3486 = vmatprep.subr.bf16.mxu0 %v5604_v63  ;;  %3814 = vmatprep.subr.bf16.mxu1 %v5607_v0  ;;  %v546_v63 = vrot.slane %v541_v60, %v545_v58  ;;  %v554_v0 = vrot.slane %v541_v60, %v553_v59 }
 0x1eb   :  { %3487 = vmatpush1.bf16.msra.mxu0 %v5602_v1  ;;  %3815 = vmatpush1.bf16.msra.mxu1 %v5605_v2  ;;  %v550_v1 = vrot.slane %v541_v60, %v549_v61  ;;  %v558_v2 = vrot.slane %v541_v60, %v557_v62 }
 0x1ec   :  { %3488 = vmatprep.subr.bf16.mxu0 %v5610_v3  ;;  %3816 = vmatprep.subr.bf16.mxu1 %v5613_v4 }
 0x1ef   :  { %3489 = vmatpush1.bf16.msra.mxu0 %v5608_v5  ;;  %3817 = vmatpush1.bf16.msra.mxu1 %v5611_v6 }
 0x1f0   :  { %3490 = vmatprep.subr.bf16.mxu0 %v5616_v7  ;;  %3818 = vmatprep.subr.bf16.mxu1 %v5619_v8 }
 0x1f3   :  { %3491 = vmatpush1.bf16.msra.mxu0 %v5614_v9  ;;  %3819 = vmatpush1.bf16.msra.mxu1 %v5617_v10 }
 0x1f4   :  { %3492 = vmatprep.subr.bf16.mxu0 %v5622_v12  ;;  %3820 = vmatprep.subr.bf16.mxu1 %v5625_v13 }
 0x1f7   :  { %3493 = vmatpush1.bf16.msra.mxu0 %v5620_v15  ;;  %3821 = vmatpush1.bf16.msra.mxu1 %v5623_v11 }
 0x1f8   :  { %3494 = vmatprep.subr.bf16.mxu0 %v5628_v17  ;;  %3822 = vmatprep.subr.bf16.mxu1 %v5631_v14 }
 0x1fb   :  { %3495 = vmatpush1.bf16.msra.mxu0 %v5626_v19  ;;  %3823 = vmatpush1.bf16.msra.mxu1 %v5629_v20 }
 0x1fc   :  { %3496 = vmatprep.subr.bf16.mxu0 %v5634_v21  ;;  %3824 = vmatprep.subr.bf16.mxu1 %v5637_v22 }
 0x1ff   :  { %3497 = vmatpush1.bf16.msra.mxu0 %v5632_v23  ;;  %3825 = vmatpush1.bf16.msra.mxu1 %v5635_v18 }
 0x200   :  { %4752 = vmatprep.subr.bf16.mxu0 %v5640_v25  ;;  %4774 = vmatprep.subr.bf16.mxu1 %v5641_v26 }
 0x202   :  { %3499 = vmatmul.mubr.bf16.vlgmr.msra.gmra.mrb[0].mxu0 %v4205_v16  ;;  %3827 = vmatmul.mubr.bf16.vlgmr.msra.gmra.mrb[0].mxu1 %v4205_v16  ;;  %v4719_v16 = vld [vmem:[%s7413_s4] ss:$0 sm:$0xff] }
 0x203   :  { %4753 = vmatpush3.bf16.msra.mxu0 %v5642_v27  ;;  %4775 = vmatpush3.bf16.msra.mxu1 %v5643_v28 }
 0x204   :  { %4754 = vmatprep.subr.bf16.mxu0 %v5644_v29  ;;  %4776 = vmatprep.subr.bf16.mxu1 %v5645_v24 }
 0x207   :  { %4755 = vmatpush3.bf16.msra.mxu0 %v5646_v30  ;;  %4777 = vmatpush3.bf16.msra.mxu1 %v5647_v31 }
 0x208   :  { %4756 = vmatprep.subr.bf16.mxu0 %v5648_v32  ;;  %4778 = vmatprep.subr.bf16.mxu1 %v5649_v33 }
 0x20b   :  { %4757 = vmatpush3.bf16.msra.mxu0 %v5650_v34  ;;  %4779 = vmatpush3.bf16.msra.mxu1 %v5651_v35 }
 0x20c   :  { %4758 = vmatprep.subr.bf16.mxu0 %v5652_v36  ;;  %4780 = vmatprep.subr.bf16.mxu1 %v5653_v37 }
 0x20f   :  { %4759 = vmatpush3.bf16.msra.mxu0 %v5654_v38  ;;  %4781 = vmatpush3.bf16.msra.mxu1 %v5655_v39 }
 0x210   :  { %4760 = vmatprep.subr.bf16.mxu0 %v5656_v40  ;;  %4782 = vmatprep.subr.bf16.mxu1 %v5657_v41 }
 0x213   :  { %4761 = vmatpush3.bf16.msra.mxu0 %v5658_v42  ;;  %4783 = vmatpush3.bf16.msra.mxu1 %v5659_v43 }
 0x214   :  { %4762 = vmatprep.subr.bf16.mxu0 %v5660_v44  ;;  %4784 = vmatprep.subr.bf16.mxu1 %v5661_v45 }
 0x217   :  { %4763 = vmatpush3.bf16.msra.mxu0 %v5662_v46  ;;  %4785 = vmatpush3.bf16.msra.mxu1 %v5663_v47 }
 0x218   :  { %4764 = vmatprep.subr.bf16.mxu0 %v5664_v48  ;;  %4786 = vmatprep.subr.bf16.mxu1 %v5665_v49 }
 0x21b   :  { %4765 = vmatpush3.bf16.msra.mxu0 %v5666_v50  ;;  %4787 = vmatpush3.bf16.msra.mxu1 %v5667_v51 }
 0x21c   :  { %4766 = vmatprep.subr.bf16.mxu0 %v5668_v52  ;;  %4788 = vmatprep.subr.bf16.mxu1 %v5669_v53 }
 0x21f   :  { %4767 = vmatpush3.bf16.msra.mxu0 %v5670_v54  ;;  %4789 = vmatpush3.bf16.msra.mxu1 %v5671_v55 }
 0x2d5   :  { %v3500_v3 = vpop.f32.mrb[0].mxu0  ;;  %v3828_v4 = vpop.f32.mrb[0].mxu1 }
 0x2d6   :  { %v4796_v5 = vadd.f32 %v3500_v3, %v546_v63  ;;  %v4798_v6 = vadd.f32 %v3828_v4, %v554_v0  ;;  %v3502_v7 = vpop.f32.mrb[1].mxu0  ;;  %v3830_v8 = vpop.f32.mrb[1].mxu1 }
 0x2d7   :  { %v4797_v9 = vadd.f32 %v3502_v7, %v550_v1  ;;  %v4799_v10 = vadd.f32 %v3830_v8, %v558_v2  ;;  %v3504_v12 = vpop.f32.mrb[2].mxu0  ;;  %v3832_v13 = vpop.f32.mrb[2].mxu1 }
 0x2d8   :  { %v3835_v15 = vmax.f32 %v4796_v5, 0.0  ;;  %v3837_v11 = vmax.f32 %v4798_v6, 0.0  ;;  %v3505_v17 = vpop.f32.mrb[3].mxu0  ;;  %v3833_v14 = vpop.f32.mrb[3].mxu1 }
 0x2d9   :  { %v3836_v19 = vmax.f32 %v4797_v9, 0.0  ;;  %v3838_v20 = vmax.f32 %v4799_v10, 0.0 }
 0x2da   :  { %v3839_v23 = vpack.c.bf16 %v3835_v15, %v3835_v15  ;;  %v3841_v18 = vpack.c.bf16 %v3837_v11, %v3837_v11 }
 0x2db   :  { %v3840_v21 = vpack.c.bf16 %v3836_v19, %v3836_v19  ;;  %v3842_v22 = vpack.c.bf16 %v3838_v20, %v3838_v20 }
 0x2dd   :  { %4138 = vmatprep.mubr.bf16.mxu0 %v3840_v21  ;;  %4178 = vmatprep.mubr.bf16.mxu1 %v3842_v22 }
 0x2de   :  { %4139 = vmatmul.mubr.bf16.vlgmr.msra.gmra.mrb[4].mxu0 %v3839_v23  ;;  %4179 = vmatmul.mubr.bf16.vlgmr.msra.gmra.mrb[4].mxu1 %v3841_v18 }
 0x3b1   :  { %v4768_v25 = vpop.f32.mrb[4].mxu0  ;;  %v4790_v26 = vpop.f32.mrb[4].mxu1 }
 0x3b2   :  { %v4769_v27 = vpop.f32.mrb[5].mxu0  ;;  %v4791_v28 = vpop.f32.mrb[5].mxu1 }
 0x3b3   :  { %v4770_v29 = vadd.f32 %v4769_v27, %v4768_v25  ;;  %v4792_v24 = vadd.f32 %v4791_v28, %v4790_v26  ;;  %v4771_v30 = vpop.f32.mrb[6].mxu0  ;;  %v4793_v31 = vpop.f32.mrb[6].mxu1 }
 0x3b4   :  { %v4772_v32 = vpop.f32.mrb[7].mxu0  ;;  %v4794_v33 = vpop.f32.mrb[7].mxu1 }
 0x3b5   :  { %v4141_v34 = vadd.f32 %v4770_v29, %v4719_v16 }
 0x3b7   :  { %v4181_v35 = vadd.f32 %v4792_v24, %v4141_v34 }
 0x3b9   :  { %4186 = vst [vmem:[%s7414_s5] sm:$0xff] %v4181_v35 }

</bundles_post_ra>
